<compile_context>
chip_gen: v5e
topology: v5e:2x2
jax: 0.10.0
libtpu: 0.0.40
codegen_flags: <defaults>
</compile_context>

<pallas_src>
import functools

import jax
import jax.numpy as jnp
from jax.experimental import pallas as pl
from jax.experimental.pallas import tpu as pltpu


def _round_up(x, m):
    return ((x + m - 1) // m) * m


# ------------------------------- fused kernel ------------------------------ #
def _fused_tcn_kernel(x_ref, w1, b1, w2, b2, w3, b3, w4, b4, o_ref,
                      act_a, act_b, *, layer_cfg, k, img_w, m_cols, neg_slope):
    """Four conv + bias + LeakyReLU stages back-to-back on VMEM-resident slabs.

    x_ref        : (Cin1_p, M_slab)      bf16  flat dense input (zero padded)
    w{l}         : (k*k, Cout_p, Cin_p)  bf16  per-tap weight matrices
    b{l}         : (Cout_p, 1)           f32   bias
    o_ref        : (Cout4_p, m_cols)     f32   layer-4 dense output (flat grid)
    act_a, act_b : (Cmax_p, M_slab)      bf16  ping-pong activation scratch slabs
    layer_cfg    : ((cin_p, cout_p, eff_dil), ...) static per-layer config
    """
    # Zero the scratch slabs once so shifted reads into the halo tail / padded rows
    # are well defined (they only ever feed garbage output columns, but must be finite).
    act_a[...] = jnp.zeros_like(act_a)
    act_b[...] = jnp.zeros_like(act_b)

    def layer(src, w_ref, b_ref, dst, cin_p, cout_p, eff_dil):
        acc = None
        for dh in range(k):
            for dw in range(k):
                off = eff_dil * (dh * img_w + dw)
                xs = src[:cin_p, off:off + m_cols]               # shifted lane window
                p = jnp.dot(w_ref[dh * k + dw], xs,
                            preferred_element_type=jnp.float32)  # (cout_p, m_cols) f32
                acc = p if acc is None else acc + p
        y = acc + b_ref[...]                                     # (cout_p, 1) broadcast
        y = jnp.where(y >= 0, y, neg_slope * y)                  # LeakyReLU(0.1)
        dst[:cout_p, :m_cols] = y.astype(dst.dtype)
        # Dropout (eval mode) == identity.

    srcs = (x_ref, act_a, act_b, act_a)
    dsts = (act_a, act_b, act_a, o_ref)
    wbs = ((w1, b1), (w2, b2), (w3, b3), (w4, b4))
    for l in range(4):
        cin_p, cout_p, eff_dil = layer_cfg[l]
        layer(srcs[l], wbs[l][0], wbs[l][1], dsts[l], cin_p, cout_p, eff_dil)


# --------------------------- module equivalent ----------------------------- #
class TemporalConvNet2DPallas:
    def __init__(self, in_channels, out_channels, kernel_size=2, dropout=0.2,
                 stride=1, base_dilation=1, key=None):
        assert out_channels % 4 == 0
        if key is None:
            key = jax.random.PRNGKey(0)
        k = kernel_size
        self.k = k
        self.dropout = dropout  # eval-mode identity (see TODO at top)
        # (cin, cout, stride, dilation) per layer, mirroring the PyTorch __init__
        self.cfg = [
            (in_channels,       out_channels // 4, stride,     base_dilation * 1),
            (out_channels // 4, out_channels // 3, stride,     base_dilation * 2),
            (out_channels // 3, out_channels // 2, stride * 2, base_dilation * 3),
            (out_channels // 2, out_channels // 1, stride * 2, base_dilation * 4),
        ]
        self.params = []   # raw weight_norm params (v, g, b) -- for the reference check
        self.packed = []   # (w_taps bf16 (k*k, cout_p, cin_p), bias f32 (cout_p, 1))
        self.cpad = []     # (cin_p, cout_p) per layer (multiples of 16 for bf16 packing)
        for (cin, cout, _, _) in self.cfg:
            key, kv, kg, kb = jax.random.split(key, 4)
            fan_in = cin * k * k
            bound = 1.0 / (fan_in ** 0.5)
            v = jax.random.uniform(kv, (cout, cin, k, k), jnp.float32, -bound, bound)
            g = 0.5 + jax.random.uniform(kg, (cout, 1, 1, 1), jnp.float32)
            b = jax.random.uniform(kb, (cout,), jnp.float32, -bound, bound)
            self.params.append((v, g, b))

            # weight_norm reparam (w = g * v / ||v||), hoisted out of the forward pass
            norm = jnp.sqrt(jnp.sum(v * v, axis=(1, 2, 3), keepdims=True))
            w = g * v / norm                                       # (cout, cin, k, k)
            cin_p = _round_up(cin, 16)
            cout_p = _round_up(cout, 16)
            w_taps = jnp.transpose(w, (2, 3, 0, 1)).reshape(k * k, cout, cin)
            w_taps = jnp.pad(w_taps, ((0, 0), (0, cout_p - cout), (0, cin_p - cin)))
            bias = jnp.pad(b, (0, cout_p - cout)).reshape(cout_p, 1)
            self.packed.append((w_taps.astype(jnp.bfloat16), bias.astype(jnp.float32)))
            self.cpad.append((cin_p, cout_p))

    def __call__(self, x_nchw):
        B, C_in, H, W = x_nchw.shape
        k = self.k
        assert C_in == self.cfg[0][0]

        # Static geometry: true (strided) output sizes, cumulative strides, and the
        # effective ("a trous") dilations on the original dense grid.
        eff_dil = []
        cum_stride = 1
        h_out, w_out = H, W
        for (_, _, s, d) in self.cfg:
            eff_dil.append(d * cum_stride)
            h_out = (h_out - d * (k - 1) - 1) // s + 1
            w_out = (w_out - d * (k - 1) - 1) // s + 1
            assert h_out > 0 and w_out > 0, "input spatially too small for this config"
            cum_stride *= s
        total_stride = cum_stride
        cout_final = self.cfg[-1][1]

        m_valid = B * H * W
        m_cols = _round_up(m_valid, 128)                      # computed/stored columns
        off_max = max((k - 1) * D * (W + 1) for D in eff_dil)
        m_slab = m_cols + _round_up(off_max, 128)             # slab width incl. shift halo
        cin1_p = self.cpad[0][0]
        cout4_p = self.cpad[-1][1]
        cmax_p = max(max(cp) for cp in self.cpad)

        # Flat, lane-dense, bf16 input slab (cast BEFORE reshape/pad -- review item).
        x = jnp.transpose(x_nchw, (1, 0, 2, 3)).astype(jnp.bfloat16)   # (C, B, H, W)
        x = x.reshape(C_in, m_valid)
        x = jnp.pad(x, ((0, cin1_p - C_in), (0, m_slab - m_valid)))

        layer_cfg = tuple((self.cpad[l][0], self.cpad[l][1], eff_dil[l])
                          for l in range(4))
        kernel = functools.partial(_fused_tcn_kernel, layer_cfg=layer_cfg, k=k,
                                   img_w=W, m_cols=m_cols, neg_slope=0.1)

        def _full_spec(shape):
            n = len(shape)
            return pl.BlockSpec(shape, lambda i: (0,) * n)

        in_specs = [_full_spec((cin1_p, m_slab))]
        operands = [x]
        for (w_taps, bias) in self.packed:
            in_specs.append(_full_spec(tuple(w_taps.shape)))
            in_specs.append(_full_spec(tuple(bias.shape)))
            operands.extend([w_taps, bias])

        out = pl.pallas_call(
            kernel,
            out_shape=jax.ShapeDtypeStruct((cout4_p, m_cols), jnp.float32),
            grid_spec=pltpu.PrefetchScalarGridSpec(
                num_scalar_prefetch=0,
                grid=(1,),
                in_specs=in_specs,
                out_specs=_full_spec((cout4_p, m_cols)),
                scratch_shapes=[pltpu.VMEM((cmax_p, m_slab), jnp.bfloat16),
                                pltpu.VMEM((cmax_p, m_slab), jnp.bfloat16)],
            ),
            compiler_params=pltpu.CompilerParams(
                dimension_semantics=("arbitrary",),
                vmem_limit_bytes=32 * 1024 * 1024,   # safe on v7x (64 MiB physical)
            ),
        )(*operands)

        # Crop the anchored (strided) positions from the dense grid, back to NCHW.
        y = out[:cout_final, :m_valid].reshape(cout_final, B, H, W)
        y = y[:, :,
              0:(h_out - 1) * total_stride + 1:total_stride,
              0:(w_out - 1) * total_stride + 1:total_stride]
        return jnp.transpose(y, (1, 0, 2, 3))                 # (B, Cout, Ho, Wo)


# ----------------------- pure-JAX reference (check) ------------------------ #
def _reference(x, model):
    for (v, g, b), (_, _, s, d) in zip(model.params, model.cfg):
        norm = jnp.sqrt(jnp.sum(v * v, axis=(1, 2, 3), keepdims=True))
        w = g * v / norm
        y = jax.lax.conv_general_dilated(
            x, w, window_strides=(s, s), padding="VALID",
            rhs_dilation=(d, d),
            dimension_numbers=("NCHW", "OIHW", "NCHW"))
        y = y + b.reshape(1, -1, 1, 1)
        x = jnp.where(y >= 0, y, 0.1 * y)
    return x


if __name__ == "__main__":
    key = jax.random.PRNGKey(0)
    kx, kp = jax.random.split(key)

    B, C_in, H, W = 2, 4, 24, 24
    C_out = 16
    x = jax.random.normal(kx, (B, C_in, H, W), jnp.float32)

    model = TemporalConvNet2DPallas(C_in, C_out, kernel_size=2, dropout=0.2,
                                    stride=1, base_dilation=1, key=kp)

    fwd = jax.jit(model.__call__)
    out = jax.block_until_ready(fwd(x))

    ref = jax.block_until_ready(_reference(x, model))
    assert out.shape == ref.shape == (2, 16, 3, 3), (out.shape, ref.shape)
    err = float(jnp.max(jnp.abs(out - ref)))
    scale = max(float(jnp.max(jnp.abs(ref))), 1.0)
    # bf16 operands + bf16 inter-layer activations across 4 stacked layers
    assert err <= 5e-2 * scale, (err, scale)

    print("KERNEL_OK")
</pallas_src>

<mosaic_0001>
module attributes {stable_mosaic.version = 11 : i64} {
  func.func @_fused_tcn_kernel(%arg0: i32, %arg1: memref<16x1408xbf16, #tpu.memory_space<vmem>>, %arg2: memref<4x16x16xbf16, #tpu.memory_space<vmem>>, %arg3: memref<16x1xf32, #tpu.memory_space<vmem>>, %arg4: memref<4x16x16xbf16, #tpu.memory_space<vmem>>, %arg5: memref<16x1xf32, #tpu.memory_space<vmem>>, %arg6: memref<4x16x16xbf16, #tpu.memory_space<vmem>>, %arg7: memref<16x1xf32, #tpu.memory_space<vmem>>, %arg8: memref<4x16x16xbf16, #tpu.memory_space<vmem>>, %arg9: memref<16x1xf32, #tpu.memory_space<vmem>>, %arg10: memref<16x1152xf32, #tpu.memory_space<vmem>>, %arg11: memref<16x1408xbf16, #tpu.memory_space<vmem>>, %arg12: memref<16x1408xbf16, #tpu.memory_space<vmem>>) attributes {dimension_semantics = [#tpu.dimension_semantics<arbitrary>], iteration_bounds = array<i64: 1>, scalar_prefetch = 0 : i64, scratch_operands = 2 : i64, tpu.core_type = #tpu.core_type<tc>, window_params = [{pipeline_mode = #tpu.pipeline_mode<synchronous>, transform_indices = @transform_0, window_bounds = array<i64: 16, 1408>}, {pipeline_mode = #tpu.pipeline_mode<synchronous>, transform_indices = @transform_1, window_bounds = array<i64: 4, 16, 16>}, {pipeline_mode = #tpu.pipeline_mode<synchronous>, transform_indices = @transform_2, window_bounds = array<i64: 16, 1>}, {pipeline_mode = #tpu.pipeline_mode<synchronous>, transform_indices = @transform_3, window_bounds = array<i64: 4, 16, 16>}, {pipeline_mode = #tpu.pipeline_mode<synchronous>, transform_indices = @transform_4, window_bounds = array<i64: 16, 1>}, {pipeline_mode = #tpu.pipeline_mode<synchronous>, transform_indices = @transform_5, window_bounds = array<i64: 4, 16, 16>}, {pipeline_mode = #tpu.pipeline_mode<synchronous>, transform_indices = @transform_6, window_bounds = array<i64: 16, 1>}, {pipeline_mode = #tpu.pipeline_mode<synchronous>, transform_indices = @transform_7, window_bounds = array<i64: 4, 16, 16>}, {pipeline_mode = #tpu.pipeline_mode<synchronous>, transform_indices = @transform_8, window_bounds = array<i64: 16, 1>}, {pipeline_mode = #tpu.pipeline_mode<synchronous>, transform_indices = @transform_9, window_bounds = array<i64: 16, 1152>}]} {
    %cst = arith.constant 0.000000e+00 : bf16
    %0 = vector.broadcast %cst : bf16 to vector<16x1408xbf16>
    %c0 = arith.constant 0 : index
    %c0_0 = arith.constant 0 : index
    %1 = vector.load %arg11[%c0, %c0_0] : memref<16x1408xbf16, #tpu.memory_space<vmem>>, vector<16x1408xbf16>
    tpu.vector_store %arg11[%c0, %c0_0], %0 {strides = array<i32>} : memref<16x1408xbf16, #tpu.memory_space<vmem>>, vector<16x1408xbf16>,
    %cst_1 = arith.constant 0.000000e+00 : bf16
    %2 = vector.broadcast %cst_1 : bf16 to vector<16x1408xbf16>
    %c0_2 = arith.constant 0 : index
    %c0_3 = arith.constant 0 : index
    %3 = vector.load %arg12[%c0_2, %c0_3] : memref<16x1408xbf16, #tpu.memory_space<vmem>>, vector<16x1408xbf16>
    tpu.vector_store %arg12[%c0_2, %c0_3], %2 {strides = array<i32>} : memref<16x1408xbf16, #tpu.memory_space<vmem>>, vector<16x1408xbf16>,
    %c0_4 = arith.constant 0 : index
    %c0_5 = arith.constant 0 : index
    %4 = vector.load %arg1[%c0_4, %c0_5] : memref<16x1408xbf16, #tpu.memory_space<vmem>>, vector<16x1152xbf16>
    %c0_6 = arith.constant 0 : index
    %c0_7 = arith.constant 0 : index
    %c0_8 = arith.constant 0 : index
    %5 = vector.load %arg2[%c0_6, %c0_7, %c0_8] : memref<4x16x16xbf16, #tpu.memory_space<vmem>>, vector<1x16x16xbf16>
    %6 = vector.shape_cast %5 : vector<1x16x16xbf16> to vector<16x16xbf16>
    %cst_9 = arith.constant dense<0.000000e+00> : vector<16x1152xf32>
    %7 = tpu.matmul %6, %4, %cst_9 {dimension_numbers = #tpu.dot_dimension_numbers<[1], [0], [0], [1], [0, 0, 1, 1], [], []>} : vector<16x16xbf16>, vector<16x1152xbf16>, vector<16x1152xf32> -> vector<16x1152xf32>
    %c0_10 = arith.constant 0 : index
    %c1 = arith.constant 1 : index
    %8 = vector.load %arg1[%c0_10, %c1] : memref<16x1408xbf16, #tpu.memory_space<vmem>>, vector<16x1152xbf16>
    %c1_11 = arith.constant 1 : index
    %c0_12 = arith.constant 0 : index
    %c0_13 = arith.constant 0 : index
    %9 = vector.load %arg2[%c1_11, %c0_12, %c0_13] : memref<4x16x16xbf16, #tpu.memory_space<vmem>>, vector<1x16x16xbf16>
    %10 = vector.shape_cast %9 : vector<1x16x16xbf16> to vector<16x16xbf16>
    %cst_14 = arith.constant dense<0.000000e+00> : vector<16x1152xf32>
    %11 = tpu.matmul %10, %8, %cst_14 {dimension_numbers = #tpu.dot_dimension_numbers<[1], [0], [0], [1], [0, 0, 1, 1], [], []>} : vector<16x16xbf16>, vector<16x1152xbf16>, vector<16x1152xf32> -> vector<16x1152xf32>
    %12 = arith.addf %7, %11 : vector<16x1152xf32>
    %c0_15 = arith.constant 0 : index
    %c24 = arith.constant 24 : index
    %13 = vector.load %arg1[%c0_15, %c24] : memref<16x1408xbf16, #tpu.memory_space<vmem>>, vector<16x1152xbf16>
    %c2 = arith.constant 2 : index
    %c0_16 = arith.constant 0 : index
    %c0_17 = arith.constant 0 : index
    %14 = vector.load %arg2[%c2, %c0_16, %c0_17] : memref<4x16x16xbf16, #tpu.memory_space<vmem>>, vector<1x16x16xbf16>
    %15 = vector.shape_cast %14 : vector<1x16x16xbf16> to vector<16x16xbf16>
    %cst_18 = arith.constant dense<0.000000e+00> : vector<16x1152xf32>
    %16 = tpu.matmul %15, %13, %cst_18 {dimension_numbers = #tpu.dot_dimension_numbers<[1], [0], [0], [1], [0, 0, 1, 1], [], []>} : vector<16x16xbf16>, vector<16x1152xbf16>, vector<16x1152xf32> -> vector<16x1152xf32>
    %17 = arith.addf %12, %16 : vector<16x1152xf32>
    %c0_19 = arith.constant 0 : index
    %c25 = arith.constant 25 : index
    %18 = vector.load %arg1[%c0_19, %c25] : memref<16x1408xbf16, #tpu.memory_space<vmem>>, vector<16x1152xbf16>
    %c3 = arith.constant 3 : index
    %c0_20 = arith.constant 0 : index
    %c0_21 = arith.constant 0 : index
    %19 = vector.load %arg2[%c3, %c0_20, %c0_21] : memref<4x16x16xbf16, #tpu.memory_space<vmem>>, vector<1x16x16xbf16>
    %20 = vector.shape_cast %19 : vector<1x16x16xbf16> to vector<16x16xbf16>
    %cst_22 = arith.constant dense<0.000000e+00> : vector<16x1152xf32>
    %21 = tpu.matmul %20, %18, %cst_22 {dimension_numbers = #tpu.dot_dimension_numbers<[1], [0], [0], [1], [0, 0, 1, 1], [], []>} : vector<16x16xbf16>, vector<16x1152xbf16>, vector<16x1152xf32> -> vector<16x1152xf32>
    %22 = arith.addf %17, %21 : vector<16x1152xf32>
    %c0_23 = arith.constant 0 : index
    %c0_24 = arith.constant 0 : index
    %23 = vector.load %arg3[%c0_23, %c0_24] : memref<16x1xf32, #tpu.memory_space<vmem>>, vector<16x1xf32>
    %24 = vector.broadcast %23 : vector<16x1xf32> to vector<16x1152xf32>
    %25 = arith.addf %22, %24 : vector<16x1152xf32>
    %cst_25 = arith.constant 0.000000e+00 : f32
    %26 = vector.broadcast %cst_25 : f32 to vector<16x1152xf32>
    %27 = arith.cmpf oge, %25, %26 : vector<16x1152xf32>
    %cst_26 = arith.constant 1.000000e-01 : f32
    %28 = vector.broadcast %cst_26 : f32 to vector<16x1152xf32>
    %29 = arith.mulf %28, %25 : vector<16x1152xf32>
    %30 = arith.select %27, %25, %29 : vector<16x1152xi1>, vector<16x1152xf32>
    %31 = arith.truncf %30 : vector<16x1152xf32> to vector<16x1152xbf16>
    %c0_27 = arith.constant 0 : index
    %c0_28 = arith.constant 0 : index
    %32 = vector.load %arg11[%c0_27, %c0_28] : memref<16x1408xbf16, #tpu.memory_space<vmem>>, vector<16x1152xbf16>
    tpu.vector_store %arg11[%c0_27, %c0_28], %31 {strides = array<i32>} : memref<16x1408xbf16, #tpu.memory_space<vmem>>, vector<16x1152xbf16>,
    %c0_29 = arith.constant 0 : index
    %c0_30 = arith.constant 0 : index
    %33 = vector.load %arg11[%c0_29, %c0_30] : memref<16x1408xbf16, #tpu.memory_space<vmem>>, vector<16x1152xbf16>
    %c0_31 = arith.constant 0 : index
    %c0_32 = arith.constant 0 : index
    %c0_33 = arith.constant 0 : index
    %34 = vector.load %arg4[%c0_31, %c0_32, %c0_33] : memref<4x16x16xbf16, #tpu.memory_space<vmem>>, vector<1x16x16xbf16>
    %35 = vector.shape_cast %34 : vector<1x16x16xbf16> to vector<16x16xbf16>
    %cst_34 = arith.constant dense<0.000000e+00> : vector<16x1152xf32>
    %36 = tpu.matmul %35, %33, %cst_34 {dimension_numbers = #tpu.dot_dimension_numbers<[1], [0], [0], [1], [0, 0, 1, 1], [], []>} : vector<16x16xbf16>, vector<16x1152xbf16>, vector<16x1152xf32> -> vector<16x1152xf32>
    %c0_35 = arith.constant 0 : index
    %c2_36 = arith.constant 2 : index
    %37 = vector.load %arg11[%c0_35, %c2_36] : memref<16x1408xbf16, #tpu.memory_space<vmem>>, vector<16x1152xbf16>
    %c1_37 = arith.constant 1 : index
    %c0_38 = arith.constant 0 : index
    %c0_39 = arith.constant 0 : index
    %38 = vector.load %arg4[%c1_37, %c0_38, %c0_39] : memref<4x16x16xbf16, #tpu.memory_space<vmem>>, vector<1x16x16xbf16>
    %39 = vector.shape_cast %38 : vector<1x16x16xbf16> to vector<16x16xbf16>
    %cst_40 = arith.constant dense<0.000000e+00> : vector<16x1152xf32>
    %40 = tpu.matmul %39, %37, %cst_40 {dimension_numbers = #tpu.dot_dimension_numbers<[1], [0], [0], [1], [0, 0, 1, 1], [], []>} : vector<16x16xbf16>, vector<16x1152xbf16>, vector<16x1152xf32> -> vector<16x1152xf32>
    %41 = arith.addf %36, %40 : vector<16x1152xf32>
    %c0_41 = arith.constant 0 : index
    %c48 = arith.constant 48 : index
    %42 = vector.load %arg11[%c0_41, %c48] : memref<16x1408xbf16, #tpu.memory_space<vmem>>, vector<16x1152xbf16>
    %c2_42 = arith.constant 2 : index
    %c0_43 = arith.constant 0 : index
    %c0_44 = arith.constant 0 : index
    %43 = vector.load %arg4[%c2_42, %c0_43, %c0_44] : memref<4x16x16xbf16, #tpu.memory_space<vmem>>, vector<1x16x16xbf16>
    %44 = vector.shape_cast %43 : vector<1x16x16xbf16> to vector<16x16xbf16>
    %cst_45 = arith.constant dense<0.000000e+00> : vector<16x1152xf32>
    %45 = tpu.matmul %44, %42, %cst_45 {dimension_numbers = #tpu.dot_dimension_numbers<[1], [0], [0], [1], [0, 0, 1, 1], [], []>} : vector<16x16xbf16>, vector<16x1152xbf16>, vector<16x1152xf32> -> vector<16x1152xf32>
    %46 = arith.addf %41, %45 : vector<16x1152xf32>
    %c0_46 = arith.constant 0 : index
    %c50 = arith.constant 50 : index
    %47 = vector.load %arg11[%c0_46, %c50] : memref<16x1408xbf16, #tpu.memory_space<vmem>>, vector<16x1152xbf16>
    %c3_47 = arith.constant 3 : index
    %c0_48 = arith.constant 0 : index
    %c0_49 = arith.constant 0 : index
    %48 = vector.load %arg4[%c3_47, %c0_48, %c0_49] : memref<4x16x16xbf16, #tpu.memory_space<vmem>>, vector<1x16x16xbf16>
    %49 = vector.shape_cast %48 : vector<1x16x16xbf16> to vector<16x16xbf16>
    %cst_50 = arith.constant dense<0.000000e+00> : vector<16x1152xf32>
    %50 = tpu.matmul %49, %47, %cst_50 {dimension_numbers = #tpu.dot_dimension_numbers<[1], [0], [0], [1], [0, 0, 1, 1], [], []>} : vector<16x16xbf16>, vector<16x1152xbf16>, vector<16x1152xf32> -> vector<16x1152xf32>
    %51 = arith.addf %46, %50 : vector<16x1152xf32>
    %c0_51 = arith.constant 0 : index
    %c0_52 = arith.constant 0 : index
    %52 = vector.load %arg5[%c0_51, %c0_52] : memref<16x1xf32, #tpu.memory_space<vmem>>, vector<16x1xf32>
    %53 = vector.broadcast %52 : vector<16x1xf32> to vector<16x1152xf32>
    %54 = arith.addf %51, %53 : vector<16x1152xf32>
    %cst_53 = arith.constant 0.000000e+00 : f32
    %55 = vector.broadcast %cst_53 : f32 to vector<16x1152xf32>
    %56 = arith.cmpf oge, %54, %55 : vector<16x1152xf32>
    %cst_54 = arith.constant 1.000000e-01 : f32
    %57 = vector.broadcast %cst_54 : f32 to vector<16x1152xf32>
    %58 = arith.mulf %57, %54 : vector<16x1152xf32>
    %59 = arith.select %56, %54, %58 : vector<16x1152xi1>, vector<16x1152xf32>
    %60 = arith.truncf %59 : vector<16x1152xf32> to vector<16x1152xbf16>
    %c0_55 = arith.constant 0 : index
    %c0_56 = arith.constant 0 : index
    %61 = vector.load %arg12[%c0_55, %c0_56] : memref<16x1408xbf16, #tpu.memory_space<vmem>>, vector<16x1152xbf16>
    tpu.vector_store %arg12[%c0_55, %c0_56], %60 {strides = array<i32>} : memref<16x1408xbf16, #tpu.memory_space<vmem>>, vector<16x1152xbf16>,
    %c0_57 = arith.constant 0 : index
    %c0_58 = arith.constant 0 : index
    %62 = vector.load %arg12[%c0_57, %c0_58] : memref<16x1408xbf16, #tpu.memory_space<vmem>>, vector<16x1152xbf16>
    %c0_59 = arith.constant 0 : index
    %c0_60 = arith.constant 0 : index
    %c0_61 = arith.constant 0 : index
    %63 = vector.load %arg6[%c0_59, %c0_60, %c0_61] : memref<4x16x16xbf16, #tpu.memory_space<vmem>>, vector<1x16x16xbf16>
    %64 = vector.shape_cast %63 : vector<1x16x16xbf16> to vector<16x16xbf16>
    %cst_62 = arith.constant dense<0.000000e+00> : vector<16x1152xf32>
    %65 = tpu.matmul %64, %62, %cst_62 {dimension_numbers = #tpu.dot_dimension_numbers<[1], [0], [0], [1], [0, 0, 1, 1], [], []>} : vector<16x16xbf16>, vector<16x1152xbf16>, vector<16x1152xf32> -> vector<16x1152xf32>
    %c0_63 = arith.constant 0 : index
    %c3_64 = arith.constant 3 : index
    %66 = vector.load %arg12[%c0_63, %c3_64] : memref<16x1408xbf16, #tpu.memory_space<vmem>>, vector<16x1152xbf16>
    %c1_65 = arith.constant 1 : index
    %c0_66 = arith.constant 0 : index
    %c0_67 = arith.constant 0 : index
    %67 = vector.load %arg6[%c1_65, %c0_66, %c0_67] : memref<4x16x16xbf16, #tpu.memory_space<vmem>>, vector<1x16x16xbf16>
    %68 = vector.shape_cast %67 : vector<1x16x16xbf16> to vector<16x16xbf16>
    %cst_68 = arith.constant dense<0.000000e+00> : vector<16x1152xf32>
    %69 = tpu.matmul %68, %66, %cst_68 {dimension_numbers = #tpu.dot_dimension_numbers<[1], [0], [0], [1], [0, 0, 1, 1], [], []>} : vector<16x16xbf16>, vector<16x1152xbf16>, vector<16x1152xf32> -> vector<16x1152xf32>
    %70 = arith.addf %65, %69 : vector<16x1152xf32>
    %c0_69 = arith.constant 0 : index
    %c72 = arith.constant 72 : index
    %71 = vector.load %arg12[%c0_69, %c72] : memref<16x1408xbf16, #tpu.memory_space<vmem>>, vector<16x1152xbf16>
    %c2_70 = arith.constant 2 : index
    %c0_71 = arith.constant 0 : index
    %c0_72 = arith.constant 0 : index
    %72 = vector.load %arg6[%c2_70, %c0_71, %c0_72] : memref<4x16x16xbf16, #tpu.memory_space<vmem>>, vector<1x16x16xbf16>
    %73 = vector.shape_cast %72 : vector<1x16x16xbf16> to vector<16x16xbf16>
    %cst_73 = arith.constant dense<0.000000e+00> : vector<16x1152xf32>
    %74 = tpu.matmul %73, %71, %cst_73 {dimension_numbers = #tpu.dot_dimension_numbers<[1], [0], [0], [1], [0, 0, 1, 1], [], []>} : vector<16x16xbf16>, vector<16x1152xbf16>, vector<16x1152xf32> -> vector<16x1152xf32>
    %75 = arith.addf %70, %74 : vector<16x1152xf32>
    %c0_74 = arith.constant 0 : index
    %c75 = arith.constant 75 : index
    %76 = vector.load %arg12[%c0_74, %c75] : memref<16x1408xbf16, #tpu.memory_space<vmem>>, vector<16x1152xbf16>
    %c3_75 = arith.constant 3 : index
    %c0_76 = arith.constant 0 : index
    %c0_77 = arith.constant 0 : index
    %77 = vector.load %arg6[%c3_75, %c0_76, %c0_77] : memref<4x16x16xbf16, #tpu.memory_space<vmem>>, vector<1x16x16xbf16>
    %78 = vector.shape_cast %77 : vector<1x16x16xbf16> to vector<16x16xbf16>
    %cst_78 = arith.constant dense<0.000000e+00> : vector<16x1152xf32>
    %79 = tpu.matmul %78, %76, %cst_78 {dimension_numbers = #tpu.dot_dimension_numbers<[1], [0], [0], [1], [0, 0, 1, 1], [], []>} : vector<16x16xbf16>, vector<16x1152xbf16>, vector<16x1152xf32> -> vector<16x1152xf32>
    %80 = arith.addf %75, %79 : vector<16x1152xf32>
    %c0_79 = arith.constant 0 : index
    %c0_80 = arith.constant 0 : index
    %81 = vector.load %arg7[%c0_79, %c0_80] : memref<16x1xf32, #tpu.memory_space<vmem>>, vector<16x1xf32>
    %82 = vector.broadcast %81 : vector<16x1xf32> to vector<16x1152xf32>
    %83 = arith.addf %80, %82 : vector<16x1152xf32>
    %cst_81 = arith.constant 0.000000e+00 : f32
    %84 = vector.broadcast %cst_81 : f32 to vector<16x1152xf32>
    %85 = arith.cmpf oge, %83, %84 : vector<16x1152xf32>
    %cst_82 = arith.constant 1.000000e-01 : f32
    %86 = vector.broadcast %cst_82 : f32 to vector<16x1152xf32>
    %87 = arith.mulf %86, %83 : vector<16x1152xf32>
    %88 = arith.select %85, %83, %87 : vector<16x1152xi1>, vector<16x1152xf32>
    %89 = arith.truncf %88 : vector<16x1152xf32> to vector<16x1152xbf16>
    %c0_83 = arith.constant 0 : index
    %c0_84 = arith.constant 0 : index
    %90 = vector.load %arg11[%c0_83, %c0_84] : memref<16x1408xbf16, #tpu.memory_space<vmem>>, vector<16x1152xbf16>
    tpu.vector_store %arg11[%c0_83, %c0_84], %89 {strides = array<i32>} : memref<16x1408xbf16, #tpu.memory_space<vmem>>, vector<16x1152xbf16>,
    %c0_85 = arith.constant 0 : index
    %c0_86 = arith.constant 0 : index
    %91 = vector.load %arg11[%c0_85, %c0_86] : memref<16x1408xbf16, #tpu.memory_space<vmem>>, vector<16x1152xbf16>
    %c0_87 = arith.constant 0 : index
    %c0_88 = arith.constant 0 : index
    %c0_89 = arith.constant 0 : index
    %92 = vector.load %arg8[%c0_87, %c0_88, %c0_89] : memref<4x16x16xbf16, #tpu.memory_space<vmem>>, vector<1x16x16xbf16>
    %93 = vector.shape_cast %92 : vector<1x16x16xbf16> to vector<16x16xbf16>
    %cst_90 = arith.constant dense<0.000000e+00> : vector<16x1152xf32>
    %94 = tpu.matmul %93, %91, %cst_90 {dimension_numbers = #tpu.dot_dimension_numbers<[1], [0], [0], [1], [0, 0, 1, 1], [], []>} : vector<16x16xbf16>, vector<16x1152xbf16>, vector<16x1152xf32> -> vector<16x1152xf32>
    %c0_91 = arith.constant 0 : index
    %c8 = arith.constant 8 : index
    %95 = vector.load %arg11[%c0_91, %c8] : memref<16x1408xbf16, #tpu.memory_space<vmem>>, vector<16x1152xbf16>
    %c1_92 = arith.constant 1 : index
    %c0_93 = arith.constant 0 : index
    %c0_94 = arith.constant 0 : index
    %96 = vector.load %arg8[%c1_92, %c0_93, %c0_94] : memref<4x16x16xbf16, #tpu.memory_space<vmem>>, vector<1x16x16xbf16>
    %97 = vector.shape_cast %96 : vector<1x16x16xbf16> to vector<16x16xbf16>
    %cst_95 = arith.constant dense<0.000000e+00> : vector<16x1152xf32>
    %98 = tpu.matmul %97, %95, %cst_95 {dimension_numbers = #tpu.dot_dimension_numbers<[1], [0], [0], [1], [0, 0, 1, 1], [], []>} : vector<16x16xbf16>, vector<16x1152xbf16>, vector<16x1152xf32> -> vector<16x1152xf32>
    %99 = arith.addf %94, %98 : vector<16x1152xf32>
    %c0_96 = arith.constant 0 : index
    %c192 = arith.constant 192 : index
    %100 = vector.load %arg11[%c0_96, %c192] : memref<16x1408xbf16, #tpu.memory_space<vmem>>, vector<16x1152xbf16>
    %c2_97 = arith.constant 2 : index
    %c0_98 = arith.constant 0 : index
    %c0_99 = arith.constant 0 : index
    %101 = vector.load %arg8[%c2_97, %c0_98, %c0_99] : memref<4x16x16xbf16, #tpu.memory_space<vmem>>, vector<1x16x16xbf16>
    %102 = vector.shape_cast %101 : vector<1x16x16xbf16> to vector<16x16xbf16>
    %cst_100 = arith.constant dense<0.000000e+00> : vector<16x1152xf32>
    %103 = tpu.matmul %102, %100, %cst_100 {dimension_numbers = #tpu.dot_dimension_numbers<[1], [0], [0], [1], [0, 0, 1, 1], [], []>} : vector<16x16xbf16>, vector<16x1152xbf16>, vector<16x1152xf32> -> vector<16x1152xf32>
    %104 = arith.addf %99, %103 : vector<16x1152xf32>
    %c0_101 = arith.constant 0 : index
    %c200 = arith.constant 200 : index
    %105 = vector.load %arg11[%c0_101, %c200] : memref<16x1408xbf16, #tpu.memory_space<vmem>>, vector<16x1152xbf16>
    %c3_102 = arith.constant 3 : index
    %c0_103 = arith.constant 0 : index
    %c0_104 = arith.constant 0 : index
    %106 = vector.load %arg8[%c3_102, %c0_103, %c0_104] : memref<4x16x16xbf16, #tpu.memory_space<vmem>>, vector<1x16x16xbf16>
    %107 = vector.shape_cast %106 : vector<1x16x16xbf16> to vector<16x16xbf16>
    %cst_105 = arith.constant dense<0.000000e+00> : vector<16x1152xf32>
    %108 = tpu.matmul %107, %105, %cst_105 {dimension_numbers = #tpu.dot_dimension_numbers<[1], [0], [0], [1], [0, 0, 1, 1], [], []>} : vector<16x16xbf16>, vector<16x1152xbf16>, vector<16x1152xf32> -> vector<16x1152xf32>
    %109 = arith.addf %104, %108 : vector<16x1152xf32>
    %c0_106 = arith.constant 0 : index
    %c0_107 = arith.constant 0 : index
    %110 = vector.load %arg9[%c0_106, %c0_107] : memref<16x1xf32, #tpu.memory_space<vmem>>, vector<16x1xf32>
    %111 = vector.broadcast %110 : vector<16x1xf32> to vector<16x1152xf32>
    %112 = arith.addf %109, %111 : vector<16x1152xf32>
    %cst_108 = arith.constant 0.000000e+00 : f32
    %113 = vector.broadcast %cst_108 : f32 to vector<16x1152xf32>
    %114 = arith.cmpf oge, %112, %113 : vector<16x1152xf32>
    %cst_109 = arith.constant 1.000000e-01 : f32
    %115 = vector.broadcast %cst_109 : f32 to vector<16x1152xf32>
    %116 = arith.mulf %115, %112 : vector<16x1152xf32>
    %117 = arith.select %114, %112, %116 : vector<16x1152xi1>, vector<16x1152xf32>
    %c0_110 = arith.constant 0 : index
    %c0_111 = arith.constant 0 : index
    %118 = vector.load %arg10[%c0_110, %c0_111] : memref<16x1152xf32, #tpu.memory_space<vmem>>, vector<16x1152xf32>
    tpu.vector_store %arg10[%c0_110, %c0_111], %117 {strides = array<i32>} : memref<16x1152xf32, #tpu.memory_space<vmem>>, vector<16x1152xf32>,
    return
  }
  func.func @transform_0(%arg0: i32) -> (i32, i32) {
    %c0_i32 = arith.constant 0 : i32
    %c0_i32_0 = arith.constant 0 : i32
    %c0_i32_1 = arith.constant 0 : i32
    return %c0_i32, %c0_i32_0 : i32, i32
  }
  func.func @transform_1(%arg0: i32) -> (i32, i32, i32) {
    %c0_i32 = arith.constant 0 : i32
    %c0_i32_0 = arith.constant 0 : i32
    %c0_i32_1 = arith.constant 0 : i32
    %c0_i32_2 = arith.constant 0 : i32
    return %c0_i32, %c0_i32_0, %c0_i32_1 : i32, i32, i32
  }
  func.func @transform_2(%arg0: i32) -> (i32, i32) {
    %c0_i32 = arith.constant 0 : i32
    %c0_i32_0 = arith.constant 0 : i32
    %c0_i32_1 = arith.constant 0 : i32
    return %c0_i32, %c0_i32_0 : i32, i32
  }
  func.func @transform_3(%arg0: i32) -> (i32, i32, i32) {
    %c0_i32 = arith.constant 0 : i32
    %c0_i32_0 = arith.constant 0 : i32
    %c0_i32_1 = arith.constant 0 : i32
    %c0_i32_2 = arith.constant 0 : i32
    return %c0_i32, %c0_i32_0, %c0_i32_1 : i32, i32, i32
  }
  func.func @transform_4(%arg0: i32) -> (i32, i32) {
    %c0_i32 = arith.constant 0 : i32
    %c0_i32_0 = arith.constant 0 : i32
    %c0_i32_1 = arith.constant 0 : i32
    return %c0_i32, %c0_i32_0 : i32, i32
  }
  func.func @transform_5(%arg0: i32) -> (i32, i32, i32) {
    %c0_i32 = arith.constant 0 : i32
    %c0_i32_0 = arith.constant 0 : i32
    %c0_i32_1 = arith.constant 0 : i32
    %c0_i32_2 = arith.constant 0 : i32
    return %c0_i32, %c0_i32_0, %c0_i32_1 : i32, i32, i32
  }
  func.func @transform_6(%arg0: i32) -> (i32, i32) {
    %c0_i32 = arith.constant 0 : i32
    %c0_i32_0 = arith.constant 0 : i32
    %c0_i32_1 = arith.constant 0 : i32
    return %c0_i32, %c0_i32_0 : i32, i32
  }
  func.func @transform_7(%arg0: i32) -> (i32, i32, i32) {
    %c0_i32 = arith.constant 0 : i32
    %c0_i32_0 = arith.constant 0 : i32
    %c0_i32_1 = arith.constant 0 : i32
    %c0_i32_2 = arith.constant 0 : i32
    return %c0_i32, %c0_i32_0, %c0_i32_1 : i32, i32, i32
  }
  func.func @transform_8(%arg0: i32) -> (i32, i32) {
    %c0_i32 = arith.constant 0 : i32
    %c0_i32_0 = arith.constant 0 : i32
    %c0_i32_1 = arith.constant 0 : i32
    return %c0_i32, %c0_i32_0 : i32, i32
  }
  func.func @transform_9(%arg0: i32) -> (i32, i32) {
    %c0_i32 = arith.constant 0 : i32
    %c0_i32_0 = arith.constant 0 : i32
    %c0_i32_1 = arith.constant 0 : i32
    return %c0_i32, %c0_i32_0 : i32, i32
  }
}

</mosaic_0001>

<bundles_post_ra>
// kernel: a_call__.1
= control target key start
LH: loop header
LB: loop body
LE: loop exit
PB: predicated region body
PF: predicated region fallthrough
CT: control target
= control target key end

     0   :  { %s4122_s17 = smov 127   ;;  %s4123_s30 = smov 104   ;;  %vm139_vm0 = vcmask 1039360   ;;  %vm158_vm1 = vcmask 130048   ;;  %vm464_vm2 = vcmask 850944   ;;  %vm658_vm3 = vcmask 842752   ;;  %s5312_s0 = inlined_call_operand.vmem [shape: bf16[16,1408], index: 0, kind: input, shape index: {}]   ;;  %s5313_s1 = inlined_call_operand.vmem [shape: bf16[4,16,16], index: 1, kind: input, shape index: {}]   ;;  %s5314_s2 = inlined_call_operand.vmem [shape: f32[16,1], index: 2, kind: input, shape index: {}]   ;;  %s5315_s4 = inlined_call_operand.vmem [shape: f32[16,1], index: 4, kind: input, shape index: {}]   ;;  %s5316_s3 = inlined_call_operand.vmem [shape: bf16[4,16,16], index: 3, kind: input, shape index: {}]   ;;  %s5317_s6 = inlined_call_operand.vmem [shape: f32[16,1], index: 6, kind: input, shape index: {}]   ;;  %s5318_s5 = inlined_call_operand.vmem [shape: bf16[4,16,16], index: 5, kind: input, shape index: {}]   ;;  %s5319_s8 = inlined_call_operand.vmem [shape: f32[16,1], index: 8, kind: input, shape index: {}]   ;;  %s5320_s7 = inlined_call_operand.vmem [shape: bf16[4,16,16], index: 7, kind: input, shape index: {}]   ;;  %s5321_s9 = inlined_call_operand.vmem [shape: f32[16,1152], index: 9, kind: output, shape index: {}]  }
   0x1   :  { %v3605_v0 = vld [vmem:[%s5312_s0 + $0x8] sm:$0xf]  ;;  %v4042_v1 = vld [vmem:[%s5312_s0 + $0x30] sm:$0xf0]  ;;  %v3597_v2 = vld [vmem:[%s5312_s0] sm:$0xf] }
   0x2   :  { %v4193_v3 = vor.u32 %v4042_v1, %v3605_v0  ;;  %v4041_v4 = vld [vmem:[%s5312_s0 + $0x28] sm:$0xf0]  ;;  %v3607_v7 = vld [vmem:[%s5312_s0 + $0x34] sm:$0xf0]  ;;  %v3613_v8 = vld [vmem:[%s5312_s0 + $0x10] sm:$0xf] }
   0x3   :  { %v4198_v5 = vor.u32 %v4041_v4, %v3597_v2  ;;  %v4038_v6 = vld [vmem:[%s5312_s0 + $0xc] sm:$0xf]  ;;  %v4043_v9 = vld [vmem:[%s5312_s0 + $0x38] sm:$0xf0]  ;;  %v4037_v10 = vld [vmem:[%s5312_s0 + $0x4] sm:$0xf] }
   0x4   :  { %123 = vrot.lane.b32.xlu1 %v4193_v3, %s4122_s17  ;;  %v3599_v11 = vld [vmem:[%s5312_s0 + $0x2c] sm:$0xf0]  ;;  %v4222_v12 = vor.u32 %v4043_v9, %v3613_v8  ;;  %v4224_v13 = vor.u32 %v4038_v6, %v3607_v7  ;;  %v4039_v15 = vld [vmem:[%s5312_s0 + $0x14] sm:$0xf]  ;;  %v3615_v16 = vld [vmem:[%s5312_s0 + $0x3c] sm:$0xf0] }
   0x5   :  { %119 = vrot.lane.b32.xlu0 %v4198_v5, %s4122_s17  ;;  %v4228_v14 = vor.u32 %v4037_v10, %v3599_v11  ;;  %v4238_v17 = vor.u32 %v4039_v15, %v3615_v16  ;;  %v4040_v18 = vld [vmem:[%s5312_s0 + $0x1c] sm:$0xf]  ;;  %v3623_v19 = vld [vmem:[%s5312_s0 + $0x44] sm:$0xf0]  ;;  %v3621_v20 = vld [vmem:[%s5312_s0 + $0x18] sm:$0xf] }
   0x6   :  { %127 = vrot.lane.b32.xlu2 %v4222_v12, %s4122_s17  ;;  %v4044_v21 = vld [vmem:[%s5312_s0 + $0x40] sm:$0xf0]  ;;  %v4254_v22 = vor.u32 %v4040_v18, %v3623_v19  ;;  %v3629_v24 = vld [vmem:[%s5312_s0 + $0x20] sm:$0xf]  ;;  %v4048_v25 = vld [vmem:[%s5312_s0 + $0x48] sm:$0xf0] }
   0x7   :  { %v4258_v23 = vor.u32 %v4044_v21, %v3621_v20  ;;  %v3630_v26 = vor.u32 %v4048_v25, %v3629_v24  ;;  %v4047_v27 = vld [vmem:[%s5312_s0 + $0x24] sm:$0xf]  ;;  %v3631_v28 = vld [vmem:[%s5312_s0 + $0x4c] sm:$0xf0]  ;;  %s4124_s10 = smov 103   ;;  %v4049_v38 = vld [vmem:[%s5313_s1 + $0x8] sm:$0xff] }
   0x8   :  { %v3634_v29 = vor.u32 %v4047_v27, %v3631_v28  ;;  %v3650_v51 = vld [vmem:[%s5312_s0 + $0x20] sm:$0xf]  ;;  %v4045_v52 = vld [vmem:[%s5312_s0 + $0x48] sm:$0xf0]  ;;  %v4050_v6 = vld [vmem:[%s5313_s1 + $0x10] sm:$0xff]  ;;  %v4125_v21 = vmov 0  }
   0x9   :  { %v4046_v53 = vld [vmem:[%s5313_s1] sm:$0xff]  ;;  %v3651_v56 = vor.u32 %v4045_v52, %v3650_v51  ;;  %37 = vst [vmem:[#allocation2 + $0x20] sm:$0xff] %v4125_v21  ;;  %4119 = vset.pattern.permute.xlu0 %v4125_v21  ;;  %4120 = vset.pattern.permute.xlu1 %v4125_v21  ;;  %v4051_v25 = vld [vmem:[%s5313_s1 + $0x18] sm:$0xff]  ;;  %s4126_s1 = smov 126   ;;  %s4128_s26 = smov 78  }
   0xa   :  { %38 = vst [vmem:[#allocation2 + $0x28] sm:$0xf] %v4125_v21  ;;  %4121 = vset.pattern.permute.xlu2 %v4125_v21  ;;  %s4130_s16 = smov 56   ;;  %s4131_s18 = smov 53  }
   0xb   :  { %43 = vst [vmem:[#allocation2 + $0x4c] sm:$0xff] %v4125_v21 }
   0xc   :  { %125 = vrot.lane.b32.xlu1 %v4224_v13, %s4122_s17  ;;  %44 = vst [vmem:[#allocation2 + $0x54] sm:$0xf] %v4125_v21 }
   0xd   :  { %121 = vrot.lane.b32.xlu0 %v4228_v14, %s4122_s17  ;;  %49 = vst [vmem:[#allocation3 + $0x20] sm:$0xff] %v4125_v21 }
   0xe   :  { %129 = vrot.lane.b32.xlu2 %v4238_v17, %s4122_s17  ;;  %55 = vst [vmem:[#allocation3 + $0x4c] sm:$0xff] %v4125_v21 }
  0x14   :  { %133 = vrot.lane.b32.xlu1 %v4254_v22, %s4122_s17 }
  0x15   :  { %131 = vrot.lane.b32.xlu0 %v4258_v23, %s4122_s17 }
  0x16   :  { %135 = vrot.lane.b32.xlu2 %v3630_v26, %s4122_s17 }
  0x1c   :  { %444 = vrot.lane.b32.xlu1 %v4198_v5, %s4123_s30 }
  0x1d   :  { %137 = vrot.lane.b32.xlu0 %v3634_v29, %s4122_s17 }
  0x1e   :  { %446 = vrot.lane.b32.xlu2 %v4228_v14, %s4123_s30 }
  0x24   :  { %450 = vrot.lane.b32.xlu1 %v4224_v13, %s4123_s30 }
  0x25   :  { %448 = vrot.lane.b32.xlu0 %v4193_v3, %s4123_s30 }
  0x26   :  { %452 = vrot.lane.b32.xlu2 %v4222_v12, %s4123_s30 }
  0x2c   :  { %456 = vrot.lane.b32.xlu1 %v4258_v23, %s4123_s30 }
  0x2d   :  { %454 = vrot.lane.b32.xlu0 %v4238_v17, %s4123_s30 }
  0x2e   :  { %458 = vrot.lane.b32.xlu2 %v4254_v22, %s4123_s30 }
  0x34   :  { %462 = vrot.lane.b32.xlu1 %v3634_v29, %s4123_s30 }
  0x35   :  { %460 = vrot.lane.b32.xlu0 %v3630_v26, %s4123_s30 }
  0x36   :  { %638 = vrot.lane.b32.xlu2 %v4198_v5, %s4124_s10 }
  0x3c   :  { %642 = vrot.lane.b32.xlu1 %v4193_v3, %s4124_s10 }
  0x3d   :  { %640 = vrot.lane.b32.xlu0 %v4228_v14, %s4124_s10 }
  0x3e   :  { %644 = vrot.lane.b32.xlu2 %v4224_v13, %s4124_s10 }
  0x44   :  { %648 = vrot.lane.b32.xlu1 %v4238_v17, %s4124_s10 }
  0x45   :  { %646 = vrot.lane.b32.xlu0 %v4222_v12, %s4124_s10 }
  0x46   :  { %650 = vrot.lane.b32.xlu2 %v4258_v23, %s4124_s10 }
  0x4c   :  { %654 = vrot.lane.b32.xlu1 %v3630_v26, %s4124_s10 }
  0x4d   :  { %652 = vrot.lane.b32.xlu0 %v4254_v22, %s4124_s10 }
  0x4e   :  { %656 = vrot.lane.b32.xlu2 %v3634_v29, %s4124_s10 }
  0x60   :  { %v128_v30 = vpop.permute.xlu2 %127 }
  0x68   :  { %v130_v33 = vpop.permute.xlu2 %129 }
  0x69   :  { %v144_v39 = vsel %vm139_vm0, %v128_v30, %v130_v33 }
  0x70   :  { %v136_v42 = vpop.permute.xlu2 %135 }
  0x76   :  { %v124_v31 = vpop.permute.xlu1 %123 }
  0x77   :  { %v120_v32 = vpop.permute.xlu0 %119 }
  0x78   :  { %v447_v54 = vpop.permute.xlu2 %446 }
  0x7e   :  { %v126_v34 = vpop.permute.xlu1 %125 }
  0x7f   :  { %v122_v35 = vpop.permute.xlu0 %121  ;;  %v142_v36 = vsel %vm139_vm0, %v124_v31, %v126_v34  ;;  %v143_v37 = vsel %vm139_vm0, %v126_v34, %v128_v30 }
  0x80   :  { %v140_v40 = vsel %vm139_vm0, %v120_v32, %v122_v35  ;;  %v141_v41 = vsel %vm139_vm0, %v122_v35, %v124_v31  ;;  %197 = vmatpush.bf16.msra.mxu2 %v142_v36  ;;  %211 = vmatpush.bf16.msra.mxu3 %v143_v37  ;;  %v453_v60 = vpop.permute.xlu2 %452 }
  0x81   :  { %169 = vmatpush.bf16.msra.mxu0 %v140_v40  ;;  %183 = vmatpush.bf16.msra.mxu1 %v141_v41 }
  0x83   :  { %3637 = vmatmul.msk.bf16.vlgmr.msra.gmra.mxu2 %vm158_vm1, %v4049_v38  ;;  %3638 = vmatmul.msk.bf16.vlgmr.msra.gmra.mxu3 %vm158_vm1, %v4049_v38 }
  0x84   :  { %3635 = vmatmul.msk.bf16.vlgmr.msra.gmra.mxu0 %vm158_vm1, %v4049_v38  ;;  %3636 = vmatmul.msk.bf16.vlgmr.msra.gmra.mxu1 %vm158_vm1, %v4049_v38 }
  0x85   :  { %225 = vmatpush.bf16.msrb.mxu0 %v144_v39 }
  0x86   :  { %v134_v43 = vpop.permute.xlu1 %133 }
  0x87   :  { %v132_v44 = vpop.permute.xlu0 %131  ;;  %v147_v45 = vsel %vm139_vm0, %v134_v43, %v136_v42 }
  0x88   :  { %v145_v46 = vsel %vm139_vm0, %v130_v33, %v132_v44  ;;  %v146_v47 = vsel %vm139_vm0, %v132_v44, %v134_v43  ;;  %267 = vmatpush.bf16.msrb.mxu3 %v147_v45 }
  0x89   :  { %239 = vmatpush.bf16.msrb.mxu1 %v145_v46  ;;  %253 = vmatpush.bf16.msrb.mxu2 %v146_v47 }
  0x8c   :  { %345 = vmatpush.bf16.msra.mxu3 %v4193_v3  ;;  %v459_v3 = vpop.permute.xlu2 %458 }
  0x8d   :  { %317 = vmatpush.bf16.msra.mxu1 %v4198_v5  ;;  %331 = vmatpush.bf16.msra.mxu2 %v4228_v14 }
  0x8e   :  { %v445_v50 = vpop.permute.xlu1 %444 }
  0x8f   :  { %v138_v48 = vpop.permute.xlu0 %137  ;;  %v465_v57 = vsel %vm464_vm2, %v445_v50, %v447_v54 }
  0x90   :  { %v148_v49 = vsel %vm139_vm0, %v136_v42, %v138_v48 }
  0x91   :  { %281 = vmatpush.bf16.msra.mxu0 %v148_v49 }
  0x93   :  { %3641 = vmatmul.msk.bf16.vlgmr.msrb.gmra.mxu2 %vm158_vm1, %v4049_v38  ;;  %3642 = vmatmul.msk.bf16.vlgmr.msrb.gmra.mxu3 %vm158_vm1, %v4049_v38 }
  0x94   :  { %3639 = vmatmul.msk.bf16.vlgmr.msrb.gmra.mxu0 %vm158_vm1, %v4049_v38  ;;  %3640 = vmatmul.msk.bf16.vlgmr.msrb.gmra.mxu1 %vm158_vm1, %v4049_v38  ;;  %v639_v7 = vpop.permute.xlu2 %638 }
  0x95   :  { %359 = vmatpush.bf16.msrb.mxu0 %v4224_v13  ;;  %373 = vmatpush.bf16.msrb.mxu1 %v4222_v12 }
  0x96   :  { %387 = vmatpush.bf16.msrb.mxu2 %v4238_v17  ;;  %401 = vmatpush.bf16.msrb.mxu3 %v4258_v23  ;;  %v451_v59 = vpop.permute.xlu1 %450  ;;  %v825_v23 = vld [vmem:[%s5314_s2 + $0x8] sm:$0xff] }
  0x97   :  { %v449_v55 = vpop.permute.xlu0 %448  ;;  %v468_v0 = vsel %vm464_vm2, %v451_v59, %v453_v60  ;;  %833 = vperm.xlu1 %4120, %v825_v23  }
  0x98   :  { %v466_v58 = vsel %vm464_vm2, %v447_v54, %v449_v55  ;;  %v467_v63 = vsel %vm464_vm2, %v449_v55, %v451_v59 }
  0x9c   :  { %v645_v14 = vpop.permute.xlu2 %644 }
  0x9e   :  { %v457_v62 = vpop.permute.xlu1 %456 }
  0x9f   :  { %v455_v61 = vpop.permute.xlu0 %454  ;;  %v471_v9 = vsel %vm464_vm2, %v457_v62, %v459_v3 }
  0xa0   :  { %v469_v1 = vsel %vm464_vm2, %v453_v60, %v455_v61  ;;  %v470_v2 = vsel %vm464_vm2, %v455_v61, %v457_v62 }
  0xa3   :  { %3653 = vmatmul.msk.bf16.vlgmr.msra.gmra.mxu2 %vm158_vm1, %v4046_v53  ;;  %3654 = vmatmul.msk.bf16.vlgmr.msra.gmra.mxu3 %vm158_vm1, %v4046_v53 }
  0xa4   :  { %3643 = vmatmul.msk.bf16.vlgmr.msra.gmra.mxu0 %vm158_vm1, %v4049_v38  ;;  %3652 = vmatmul.msk.bf16.vlgmr.msra.gmra.mxu1 %vm158_vm1, %v4046_v53  ;;  %v651_v24 = vpop.permute.xlu2 %650 }
  0xa5   :  { %415 = vmatpush.bf16.msra.mxu0 %v4254_v22  ;;  %429 = vmatpush.bf16.msra.mxu1 %v3651_v56  ;;  %v824_v22 = vld [vmem:[%s5314_s2] sm:$0xff]  ;;  %s4127_s2 = smov 80  }
  0xa6   :  { %493 = vmatpush.bf16.msra.mxu2 %v465_v57  ;;  %507 = vmatpush.bf16.msra.mxu3 %v466_v58  ;;  %v463_v5 = vpop.permute.xlu1 %462 }
  0xa7   :  { %v461_v4 = vpop.permute.xlu0 %460  ;;  %828 = vperm.xlu0 %4119, %v824_v22  }
  0xa8   :  { %v472_v10 = vsel %vm464_vm2, %v459_v3, %v461_v4  ;;  %v473_v11 = vsel %vm464_vm2, %v461_v4, %v463_v5 }
  0xac   :  { %v657_v28 = vpop.permute.xlu2 %656 }
  0xae   :  { %v643_v13 = vpop.permute.xlu1 %642 }
  0xaf   :  { %v641_v8 = vpop.permute.xlu0 %640  ;;  %v661_v18 = vsel %vm658_vm3, %v643_v13, %v645_v14 }
  0xb0   :  { %v659_v12 = vsel %vm658_vm3, %v639_v7, %v641_v8  ;;  %v660_v17 = vsel %vm658_vm3, %v641_v8, %v643_v13 }
  0xb3   :  { %3657 = vmatmul.msk.bf16.vlgmr.msrb.gmra.mxu2 %vm158_vm1, %v4046_v53  ;;  %3658 = vmatmul.msk.bf16.vlgmr.msrb.gmra.mxu3 %vm158_vm1, %v4046_v53 }
  0xb4   :  { %3655 = vmatmul.msk.bf16.vlgmr.msrb.gmra.mxu0 %vm158_vm1, %v4046_v53  ;;  %3656 = vmatmul.msk.bf16.vlgmr.msrb.gmra.mxu1 %vm158_vm1, %v4046_v53 }
  0xb5   :  { %521 = vmatpush.bf16.msrb.mxu0 %v467_v63  ;;  %535 = vmatpush.bf16.msrb.mxu1 %v468_v0 }
  0xb6   :  { %549 = vmatpush.bf16.msrb.mxu2 %v469_v1  ;;  %563 = vmatpush.bf16.msrb.mxu3 %v470_v2  ;;  %v649_v15 = vpop.permute.xlu1 %648 }
  0xb7   :  { %v647_v16 = vpop.permute.xlu0 %646  ;;  %v664_v29 = vsel %vm658_vm3, %v649_v15, %v651_v24 }
  0xb8   :  { %v662_v19 = vsel %vm658_vm3, %v645_v14, %v647_v16  ;;  %v663_v20 = vsel %vm658_vm3, %v647_v16, %v649_v15 }
  0xbe   :  { %v655_v27 = vpop.permute.xlu1 %654 }
  0xbf   :  { %v653_v26 = vpop.permute.xlu0 %652  ;;  %v667_v31 = vsel %vm658_vm3, %v655_v27, %v657_v28 }
  0xc0   :  { %v665_v30 = vsel %vm658_vm3, %v651_v24, %v653_v26  ;;  %v666_v32 = vsel %vm658_vm3, %v653_v26, %v655_v27 }
  0xc3   :  { %3667 = vmatmul.msk.bf16.vlgmr.msra.gmra.mxu2 %vm158_vm1, %v4050_v6  ;;  %3668 = vmatmul.msk.bf16.vlgmr.msra.gmra.mxu3 %vm158_vm1, %v4050_v6 }
  0xc4   :  { %3659 = vmatmul.msk.bf16.vlgmr.msra.gmra.mxu0 %vm158_vm1, %v4046_v53  ;;  %3660 = vmatmul.msk.bf16.vlgmr.msra.gmra.mxu1 %vm158_vm1, %v4046_v53 }
  0xc5   :  { %577 = vmatpush.bf16.msra.mxu0 %v471_v9  ;;  %591 = vmatpush.bf16.msra.mxu1 %v472_v10 }
  0xc6   :  { %605 = vmatpush.bf16.msra.mxu2 %v473_v11  ;;  %687 = vmatpush.bf16.msra.mxu3 %v659_v12 }
  0xd3   :  { %3671 = vmatmul.msk.bf16.vlgmr.msrb.gmra.mxu2 %vm158_vm1, %v4050_v6  ;;  %3672 = vmatmul.msk.bf16.vlgmr.msrb.gmra.mxu3 %vm158_vm1, %v4050_v6 }
  0xd4   :  { %3669 = vmatmul.msk.bf16.vlgmr.msrb.gmra.mxu0 %vm158_vm1, %v4050_v6  ;;  %3670 = vmatmul.msk.bf16.vlgmr.msrb.gmra.mxu1 %vm158_vm1, %v4050_v6 }
  0xd5   :  { %701 = vmatpush.bf16.msrb.mxu0 %v660_v17  ;;  %715 = vmatpush.bf16.msrb.mxu1 %v661_v18 }
  0xd6   :  { %729 = vmatpush.bf16.msrb.mxu2 %v662_v19  ;;  %743 = vmatpush.bf16.msrb.mxu3 %v663_v20 }
  0xe3   :  { %3675 = vmatmul.msk.bf16.vlgmr.msra.gmra.mxu2 %vm158_vm1, %v4050_v6  ;;  %3682 = vmatmul.msk.bf16.vlgmr.msra.gmra.mxu3 %vm158_vm1, %v4051_v25 }
  0xe4   :  { %3673 = vmatmul.msk.bf16.vlgmr.msra.gmra.mxu0 %vm158_vm1, %v4050_v6  ;;  %3674 = vmatmul.msk.bf16.vlgmr.msra.gmra.mxu1 %vm158_vm1, %v4050_v6 }
  0xe5   :  { %757 = vmatpush.bf16.msra.mxu0 %v664_v29  ;;  %771 = vmatpush.bf16.msra.mxu1 %v665_v30 }
  0xe6   :  { %785 = vmatpush.bf16.msra.mxu2 %v666_v32  ;;  %799 = vmatpush.bf16.msra.mxu3 %v667_v31 }
  0xf3   :  { %3685 = vmatmul.msk.bf16.vlgmr.msrb.gmra.mxu2 %vm158_vm1, %v4051_v25  ;;  %3686 = vmatmul.msk.bf16.vlgmr.msrb.gmra.mxu3 %vm158_vm1, %v4051_v25 }
  0xf4   :  { %3683 = vmatmul.msk.bf16.vlgmr.msrb.gmra.mxu0 %vm158_vm1, %v4051_v25  ;;  %3684 = vmatmul.msk.bf16.vlgmr.msrb.gmra.mxu1 %vm158_vm1, %v4051_v25 }
 0x101   :  { %v171_v33 = vpop.f32.mrf.mxu0  ;;  %v185_v34 = vpop.f32.mrf.mxu1 }
 0x103   :  { %3689 = vmatmul.msk.bf16.vlgmr.msra.gmra.mxu2 %vm158_vm1, %v4051_v25  ;;  %3690 = vmatmul.msk.bf16.vlgmr.msra.gmra.mxu3 %vm158_vm1, %v4051_v25 }
 0x104   :  { %3687 = vmatmul.msk.bf16.vlgmr.msra.gmra.mxu0 %vm158_vm1, %v4051_v25  ;;  %3688 = vmatmul.msk.bf16.vlgmr.msra.gmra.mxu1 %vm158_vm1, %v4051_v25 }
 0x106   :  { %v199_v35 = vpop.f32.mrf.mxu2  ;;  %v213_v36 = vpop.f32.mrf.mxu3 }
 0x109   :  { %v4389_v37 = vpop.f32.mrf.mxu0  ;;  %v4391_v38 = vpop.f32.mrf.mxu1 }
 0x10e   :  { %v4393_v39 = vpop.f32.mrf.mxu2  ;;  %v4395_v40 = vpop.f32.mrf.mxu3 }
 0x111   :  { %v227_v41 = vpop.f32.mrf.mxu0  ;;  %v241_v42 = vpop.f32.mrf.mxu1 }
 0x116   :  { %v255_v43 = vpop.f32.mrf.mxu2  ;;  %v269_v44 = vpop.f32.mrf.mxu3 }
 0x119   :  { %v4397_v45 = vpop.f32.mrf.mxu0  ;;  %v4399_v46 = vpop.f32.mrf.mxu1 }
 0x11e   :  { %v4401_v47 = vpop.f32.mrf.mxu2  ;;  %v4403_v48 = vpop.f32.mrf.mxu3 }
 0x121   :  { %v4405_v49 = vpop.f32.mrf.mxu0  ;;  %v319_v50 = vpop.f32.mrf.mxu1 }
 0x122   :  { %v320_v51 = vadd.f32 %v319_v50, %v171_v33  ;;  %v4445_v33 = vpop.permute.xlu0 %828 }
 0x126   :  { %v333_v52 = vpop.f32.mrf.mxu2  ;;  %v347_v53 = vpop.f32.mrf.mxu3 }
 0x127   :  { %v334_v54 = vadd.f32 %v333_v52, %v185_v34  ;;  %v348_v55 = vadd.f32 %v347_v53, %v199_v35 }
 0x129   :  { %v4407_v56 = vpop.f32.mrf.mxu0  ;;  %v321_v57 = vpop.f32.mrf.mxu1 }
 0x12e   :  { %v335_v58 = vpop.f32.mrf.mxu2  ;;  %v349_v59 = vpop.f32.mrf.mxu3 }
 0x131   :  { %v361_v60 = vpop.f32.mrf.mxu0  ;;  %v375_v61 = vpop.f32.mrf.mxu1 }
 0x132   :  { %v362_v62 = vadd.f32 %v361_v60, %v213_v36  ;;  %v4409_v63 = vadd.f32 %v375_v61, %v227_v41  ;;  %v322_v36 = vadd.f32 %v321_v57, %v4389_v37 }
 0x136   :  { %v389_v0 = vpop.f32.mrf.mxu2  ;;  %v403_v1 = vpop.f32.mrf.mxu3 }
 0x137   :  { %v4411_v2 = vadd.f32 %v389_v0, %v241_v42  ;;  %v4413_v3 = vadd.f32 %v403_v1, %v255_v43  ;;  %v336_v1 = vadd.f32 %v335_v58, %v4391_v38 }
 0x139   :  { %v363_v4 = vpop.f32.mrf.mxu0  ;;  %v4415_v5 = vpop.f32.mrf.mxu1 }
 0x13a   :  { %v364_v38 = vadd.f32 %v363_v4, %v4395_v40 }
 0x13e   :  { %v4417_v6 = vpop.f32.mrf.mxu2  ;;  %v4419_v7 = vpop.f32.mrf.mxu3 }
 0x141   :  { %v417_v8 = vpop.f32.mrf.mxu0  ;;  %v4421_v9 = vpop.f32.mrf.mxu1 }
 0x142   :  { %v4423_v10 = vadd.f32 %v417_v8, %v269_v44 }
 0x146   :  { %v495_v11 = vpop.f32.mrf.mxu2  ;;  %v509_v12 = vpop.f32.mrf.mxu3 }
 0x147   :  { %v612_v31 = vadd.f32 %v495_v11, %v320_v51  ;;  %v613_v41 = vadd.f32 %v509_v12, %v334_v54  ;;  %v4453_v11 = vpop.permute.xlu1 %833  ;;  %v350_v54 = vadd.f32 %v349_v59, %v4393_v39 }
 0x149   :  { %v4425_v13 = vpop.f32.mrf.mxu0  ;;  %v4427_v14 = vpop.f32.mrf.mxu1 }
 0x14e   :  { %v497_v15 = vpop.f32.mrf.mxu2  ;;  %v511_v16 = vpop.f32.mrf.mxu3 }
 0x14f   :  { %v621_v52 = vadd.f32 %v497_v15, %v322_v36  ;;  %v622_v15 = vadd.f32 %v511_v16, %v336_v1 }
 0x151   :  { %v523_v17 = vpop.f32.mrf.mxu0  ;;  %v537_v18 = vpop.f32.mrf.mxu1 }
 0x152   :  { %v614_v42 = vadd.f32 %v523_v17, %v348_v55  ;;  %v615_v8 = vadd.f32 %v537_v18, %v362_v62 }
 0x156   :  { %v551_v19 = vpop.f32.mrf.mxu2  ;;  %v4429_v20 = vpop.f32.mrf.mxu3 }
 0x157   :  { %v616_v39 = vadd.f32 %v551_v19, %v4409_v63 }
 0x159   :  { %v525_v21 = vpop.f32.mrf.mxu0  ;;  %v539_v22 = vpop.f32.mrf.mxu1 }
 0x15e   :  { %v4431_v23 = vpop.f32.mrf.mxu2  ;;  %v4433_v24 = vpop.f32.mrf.mxu3 }
 0x161   :  { %v4435_v25 = vpop.f32.mrf.mxu0  ;;  %v4437_v26 = vpop.f32.mrf.mxu1 }
 0x166   :  { %v4439_v27 = vpop.f32.mrf.mxu2  ;;  %v689_v28 = vpop.f32.mrf.mxu3 }
 0x167   :  { %v806_v32 = vadd.f32 %v689_v28, %v612_v31  ;;  %v623_v28 = vadd.f32 %v525_v21, %v350_v54  ;;  %v624_v21 = vadd.f32 %v539_v22, %v364_v38  ;;  %v392_v22 = vadd.f32 %v4417_v6, %v4399_v46 }
 0x168   :  { %v432_v54 = vadd.f32 %v4421_v9, %v4405_v49 }
 0x169   :  { %v4441_v29 = vpop.f32.mrf.mxu0  ;;  %v4443_v30 = vpop.f32.mrf.mxu1  ;;  %v836_v43 = vadd.f32 %v4445_v33, %v806_v32 }
 0x16a   :  { %v620_v9 = vadd.f32 %v4439_v27, %v432_v54 }
 0x16b   :  { %v872_v0 = vmul.f32 0.1, %v836_v43  ;;  %vm854_vm4 = vcmp.ge.f32.partialorder %v836_v43, 0.0 }
 0x16d   :  { %v890_v31 = vsel %vm854_vm4, %v836_v43, %v872_v0  ;;  %v617_v0 = vadd.f32 %v4429_v20, %v4411_v2 }
 0x16e   :  { %v4447_v34 = vpop.f32.mrf.mxu2  ;;  %v691_v35 = vpop.f32.mrf.mxu3 }
 0x16f   :  { %v815_v61 = vadd.f32 %v691_v35, %v621_v52 }
 0x171   :  { %v703_v44 = vpop.f32.mrf.mxu0  ;;  %v717_v50 = vpop.f32.mrf.mxu1  ;;  %v845_v35 = vadd.f32 %v4453_v11, %v815_v61 }
 0x172   :  { %v807_v53 = vadd.f32 %v703_v44, %v613_v41  ;;  %v808_v60 = vadd.f32 %v717_v50, %v614_v42 }
 0x173   :  { %v881_v50 = vmul.f32 0.1, %v845_v35  ;;  %vm863_vm8 = vcmp.ge.f32.partialorder %v845_v35, 0.0 }
 0x174   :  { %v837_v51 = vadd.f32 %v4445_v33, %v807_v53  ;;  %v838_v37 = vadd.f32 %v4445_v33, %v808_v60  ;;  %v378_v53 = vadd.f32 %v4415_v5, %v4397_v45 }
 0x175   :  { %v899_v5 = vsel %vm863_vm8, %v845_v35, %v881_v50  ;;  %v626_v35 = vadd.f32 %v4433_v24, %v392_v22  ;;  %vm1334_vm8 = vcmask 654336  }
 0x176   :  { %vm855_vm5 = vcmp.ge.f32.partialorder %v837_v51, 0.0  ;;  %v873_v55 = vmul.f32 0.1, %v837_v51  ;;  %v731_v57 = vpop.f32.mrf.mxu2  ;;  %v745_v12 = vpop.f32.mrf.mxu3  ;;  %v874_v62 = vmul.f32 0.1, %v838_v37  ;;  %vm856_vm6 = vcmp.ge.f32.partialorder %v838_v37, 0.0 }
 0x177   :  { %v809_v17 = vadd.f32 %v731_v57, %v615_v8  ;;  %v810_v43 = vadd.f32 %v745_v12, %v616_v39  ;;  %v618_v8 = vadd.f32 %v4435_v25, %v4413_v3  ;;  %v625_v2 = vadd.f32 %v4431_v23, %v378_v53 }
 0x178   :  { %v891_v32 = vsel %vm855_vm5, %v837_v51, %v873_v55  ;;  %v892_v40 = vsel %vm856_vm6, %v838_v37, %v874_v62  ;;  %v406_v51 = vadd.f32 %v4419_v7, %v4401_v47  ;;  %v420_v3 = vadd.f32 %v4425_v13, %v4403_v48 }
 0x179   :  { %v908_v58 = vpack.c.bf16 %v891_v32, %v890_v31  ;;  %v839_v18 = vadd.f32 %v4445_v33, %v809_v17  ;;  %v705_v36 = vpop.f32.mrf.mxu0  ;;  %v719_v41 = vpop.f32.mrf.mxu1  ;;  %v840_v45 = vadd.f32 %v4445_v33, %v810_v43  ;;  %v619_v25 = vadd.f32 %v4437_v26, %v4423_v10 }
 0x17a   :  { %v816_v59 = vadd.f32 %v705_v36, %v622_v15  ;;  %v817_v42 = vadd.f32 %v719_v41, %v623_v28  ;;  %v434_v48 = vadd.f32 %v4427_v14, %v4407_v56  ;;  %v627_v27 = vadd.f32 %v4441_v29, %v406_v51 }
 0x17b   :  { %918 = vst [vmem:[#allocation2] sm:$0xff] %v908_v58  ;;  %vm857_vm7 = vcmp.ge.f32.partialorder %v839_v18, 0.0  ;;  %v875_v16 = vmul.f32 0.1, %v839_v18  ;;  %v876_v12 = vmul.f32 0.1, %v840_v45  ;;  %v628_v62 = vadd.f32 %v4443_v30, %v420_v3 }
 0x17c   :  { %v846_v44 = vadd.f32 %v4453_v11, %v816_v59  ;;  %v847_v52 = vadd.f32 %v4453_v11, %v817_v42  ;;  %vm858_vm12 = vcmp.ge.f32.partialorder %v840_v45, 0.0  ;;  %v629_v29 = vadd.f32 %v4447_v34, %v434_v48 }
 0x17d   :  { %v893_v4 = vsel %vm857_vm7, %v839_v18, %v875_v16  ;;  %v894_v18 = vsel %vm858_vm12, %v840_v45, %v876_v12  ;;  %vm1010_vm7 = vcmask 1031168  }
 0x17e   :  { %v909_v63 = vpack.c.bf16 %v893_v4, %v892_v40  ;;  %vm864_vm9 = vcmp.ge.f32.partialorder %v846_v44, 0.0  ;;  %v882_v19 = vmul.f32 0.1, %v846_v44  ;;  %v733_v60 = vpop.f32.mrf.mxu2  ;;  %v747_v61 = vpop.f32.mrf.mxu3  ;;  %v883_v46 = vmul.f32 0.1, %v847_v52 }
 0x17f   :  { %v818_v1 = vadd.f32 %v733_v60, %v624_v21  ;;  %vm865_vm10 = vcmp.ge.f32.partialorder %v847_v52, 0.0  ;;  %v819_v15 = vadd.f32 %v747_v61, %v625_v2 }
 0x180   :  { %919 = vst [vmem:[#allocation2 + $0x8] sm:$0xff] %v909_v63  ;;  %v900_v37 = vsel %vm864_vm9, %v846_v44, %v882_v19  ;;  %v901_v23 = vsel %vm865_vm10, %v847_v52, %v883_v46  ;;  %vm1528_vm9 = vcmask 637952  }
 0x181   :  { %v913_v55 = vpack.c.bf16 %v900_v37, %v899_v5  ;;  %v848_v6 = vadd.f32 %v4453_v11, %v818_v1  ;;  %v759_v47 = vpop.f32.mrf.mxu0  ;;  %v773_v7 = vpop.f32.mrf.mxu1  ;;  %v849_v36 = vadd.f32 %v4453_v11, %v819_v15 }
 0x182   :  { %v811_v20 = vadd.f32 %v759_v47, %v617_v0  ;;  %v812_v57 = vadd.f32 %v773_v7, %v618_v8  ;;  %v3699_v24 = vld [vmem:[#allocation2] sm:$0xf]  ;;  %v4052_v21 = vld [vmem:[#allocation2 + $0x4] sm:$0xf] }
 0x183   :  { %923 = vst [vmem:[#allocation2 + $0x2c] sm:$0xff] %v913_v55  ;;  %vm866_vm11 = vcmp.ge.f32.partialorder %v848_v6, 0.0  ;;  %v884_v49 = vmul.f32 0.1, %v848_v6  ;;  %v885_v52 = vmul.f32 0.1, %v849_v36 }
 0x184   :  { %v841_v17 = vadd.f32 %v4445_v33, %v811_v20  ;;  %v842_v31 = vadd.f32 %v4445_v33, %v812_v57  ;;  %vm867_vm2 = vcmp.ge.f32.partialorder %v849_v36, 0.0 }
 0x185   :  { %v902_v28 = vsel %vm866_vm11, %v848_v6, %v884_v49  ;;  %v903_v54 = vsel %vm867_vm2, %v849_v36, %v885_v52 }
 0x186   :  { %v914_v13 = vpack.c.bf16 %v902_v28, %v901_v23  ;;  %vm859_vm13 = vcmp.ge.f32.partialorder %v841_v17, 0.0  ;;  %v877_v10 = vmul.f32 0.1, %v841_v17  ;;  %v787_v26 = vpop.f32.mrf.mxu2  ;;  %v801_v32 = vpop.f32.mrf.mxu3  ;;  %v878_v56 = vmul.f32 0.1, %v842_v31 }
 0x187   :  { %v813_v38 = vadd.f32 %v787_v26, %v619_v25  ;;  %v814_v58 = vadd.f32 %v801_v32, %v620_v9  ;;  %vm860_vm14 = vcmp.ge.f32.partialorder %v842_v31, 0.0  ;;  %v4053_v5 = vld [vmem:[#allocation2 + $0xc] sm:$0xf]  ;;  %v3707_v3 = vld [vmem:[#allocation2 + $0x8] sm:$0xf] }
 0x188   :  { %924 = vst [vmem:[#allocation2 + $0x34] sm:$0xff] %v914_v13  ;;  %v895_v41 = vsel %vm859_vm13, %v841_v17, %v877_v10  ;;  %v896_v19 = vsel %vm860_vm14, %v842_v31, %v878_v56  ;;  %v3733_v56 = vld [vmem:[#allocation2 + $0x4c] sm:$0xf0] }
 0x189   :  { %v910_v39 = vpack.c.bf16 %v895_v41, %v894_v18  ;;  %v843_v14 = vadd.f32 %v4445_v33, %v813_v38  ;;  %v844_v59 = vadd.f32 %v4445_v33, %v814_v58  ;;  %v761_v42 = vpop.f32.mrf.mxu0  ;;  %v775_v16 = vpop.f32.mrf.mxu1 }
 0x18a   :  { %v820_v43 = vadd.f32 %v761_v42, %v626_v35  ;;  %v821_v30 = vadd.f32 %v775_v16, %v627_v27  ;;  %v4056_v44 = vld [vmem:[#allocation2 + $0x28] sm:$0xf0]  ;;  %v3701_v50 = vld [vmem:[#allocation2 + $0x2c] sm:$0xf0] }
 0x18b   :  { %920 = vst [vmem:[#allocation2 + $0x10] sm:$0xff] %v910_v39  ;;  %vm861_vm15 = vcmp.ge.f32.partialorder %v843_v14, 0.0  ;;  %v879_v40 = vmul.f32 0.1, %v843_v14  ;;  %vm862_vm0 = vcmp.ge.f32.partialorder %v844_v59, 0.0  ;;  %v4494_v4 = vor.u32 %v4056_v44, %v3699_v24  ;;  %v1695_v42 = vld [vmem:[%s5315_s4 + $0x8] sm:$0xff] }
 0x18c   :  { %v880_v53 = vmul.f32 0.1, %v844_v59  ;;  %v850_v33 = vadd.f32 %v4453_v11, %v820_v43  ;;  %v4497_v63 = vor.u32 %v4052_v21, %v3701_v50  ;;  %v851_v60 = vadd.f32 %v4453_v11, %v821_v30  ;;  %v4062_v39 = vld [vmem:[#allocation2 + $0x24] sm:$0xf]  ;;  %v4064_v30 = vld [vmem:[%s5316_s3 + $0x8] sm:$0xff] }
 0x18d   :  { %v897_v34 = vsel %vm861_vm15, %v843_v14, %v879_v40  ;;  %990 = vrot.lane.b32.xlu2 %v4494_v4, %s4126_s1  ;;  %v3736_v14 = vor.u32 %v4062_v39, %v3733_v56 }
 0x18e   :  { %v911_v61 = vpack.c.bf16 %v897_v34, %v896_v19  ;;  %v898_v22 = vsel %vm862_vm0, %v844_v59, %v880_v53  ;;  %vm868_vm3 = vcmp.ge.f32.partialorder %v850_v33, 0.0  ;;  %v886_v51 = vmul.f32 0.1, %v850_v33  ;;  %992 = vrot.lane.b32.xlu1 %v4497_v63, %s4126_s1  ;;  %v789_v0 = vpop.f32.mrf.mxu2  ;;  %v803_v1 = vpop.f32.mrf.mxu3  ;;  %v1694_v59 = vld [vmem:[%s5315_s4] sm:$0xff] }
 0x18f   :  { %v912_v8 = vpack.c.bf16 %v898_v22, %v898_v22  ;;  %v822_v45 = vadd.f32 %v789_v0, %v628_v62  ;;  %v3709_v37 = vld [vmem:[#allocation2 + $0x34] sm:$0xf0]  ;;  %v823_v46 = vadd.f32 %v803_v1, %v629_v29  ;;  %v4057_v47 = vld [vmem:[#allocation2 + $0x30] sm:$0xf0]  ;;  %v887_v2 = vmul.f32 0.1, %v851_v60 }
 0x190   :  { %921 = vst [vmem:[#allocation2 + $0x18] sm:$0xff] %v911_v61  ;;  %v904_v55 = vsel %vm868_vm3, %v850_v33, %v886_v51  ;;  %v4505_v6 = vor.u32 %v4053_v5, %v3709_v37  ;;  %vm869_vm4 = vcmp.ge.f32.partialorder %v851_v60, 0.0  ;;  %v4511_v49 = vor.u32 %v4057_v47, %v3707_v3 }
 0x191   :  { %922 = vst [vmem:[#allocation2 + $0x20] sm:$0xf] %v912_v8  ;;  %v915_v7 = vpack.c.bf16 %v904_v55, %v903_v54  ;;  %v852_v20 = vadd.f32 %v4453_v11, %v822_v45  ;;  %v853_v57 = vadd.f32 %v4453_v11, %v823_v46  ;;  %v905_v12 = vsel %vm869_vm4, %v851_v60, %v887_v2 }
 0x192   :  { %996 = vrot.lane.b32.xlu0 %v4505_v6, %s4126_s1  ;;  %v4054_v11 = vld [vmem:[#allocation2 + $0x14] sm:$0xf]  ;;  %v3715_v48 = vld [vmem:[#allocation2 + $0x10] sm:$0xf] }
 0x193   :  { %925 = vst [vmem:[#allocation2 + $0x3c] sm:$0xff] %v915_v7  ;;  %vm870_vm5 = vcmp.ge.f32.partialorder %v852_v20, 0.0  ;;  %v888_v25 = vmul.f32 0.1, %v852_v20  ;;  %vm871_vm6 = vcmp.ge.f32.partialorder %v853_v57, 0.0 }
 0x194   :  { %v889_v9 = vmul.f32 0.1, %v853_v57 }
 0x195   :  { %v906_v15 = vsel %vm870_vm5, %v852_v20, %v888_v25  ;;  %994 = vrot.lane.b32.xlu2 %v4511_v49, %s4126_s1 }
 0x196   :  { %v916_v17 = vpack.c.bf16 %v906_v15, %v905_v12  ;;  %v907_v23 = vsel %vm871_vm6, %v853_v57, %v889_v9 }
 0x197   :  { %v917_v28 = vpack.c.bf16 %v907_v23, %v907_v23  ;;  %v3723_v32 = vld [vmem:[#allocation2 + $0x18] sm:$0xf]  ;;  %v4055_v18 = vld [vmem:[#allocation2 + $0x1c] sm:$0xf] }
 0x198   :  { %926 = vst [vmem:[#allocation2 + $0x44] sm:$0xff] %v916_v17  ;;  %v3731_v62 = vld [vmem:[#allocation2 + $0x20] sm:$0xf]  ;;  %v4065_v17 = vld [vmem:[%s5316_s3 + $0x10] sm:$0xff] }
 0x199   :  { %927 = vst [vmem:[#allocation2 + $0x4c] sm:$0xf] %v917_v28  ;;  %v3752_v45 = vld [vmem:[#allocation2 + $0x20] sm:$0xf] }
 0x19a   :  { %v3717_v31 = vld [vmem:[#allocation2 + $0x3c] sm:$0xf0]  ;;  %v4058_v13 = vld [vmem:[#allocation2 + $0x38] sm:$0xf0] }
 0x19b   :  { %v4515_v10 = vor.u32 %v4054_v11, %v3717_v31  ;;  %v4517_v26 = vor.u32 %v4058_v13, %v3715_v48 }
 0x19d   :  { %1000 = vrot.lane.b32.xlu2 %v4515_v10, %s4126_s1  ;;  %998 = vrot.lane.b32.xlu1 %v4517_v26, %s4126_s1 }
 0x19f   :  { %v4059_v35 = vld [vmem:[#allocation2 + $0x40] sm:$0xf0]  ;;  %v3725_v58 = vld [vmem:[#allocation2 + $0x44] sm:$0xf0] }
 0x1a0   :  { %v4523_v27 = vor.u32 %v4059_v35, %v3723_v32  ;;  %v4063_v38 = vld [vmem:[#allocation2 + $0x48] sm:$0xf0]  ;;  %v4527_v41 = vor.u32 %v4055_v18, %v3725_v58 }
 0x1a1   :  { %v3732_v36 = vor.u32 %v4063_v38, %v3731_v62 }
 0x1a2   :  { %1002 = vrot.lane.b32.xlu0 %v4523_v27, %s4126_s1 }
 0x1a5   :  { %1006 = vrot.lane.b32.xlu2 %v3732_v36, %s4126_s1  ;;  %1004 = vrot.lane.b32.xlu1 %v4527_v41, %s4126_s1 }
 0x1aa   :  { %1008 = vrot.lane.b32.xlu0 %v3736_v14, %s4126_s1 }
 0x1ad   :  { %1316 = vrot.lane.b32.xlu2 %v4497_v63, %s4127_s2  ;;  %1314 = vrot.lane.b32.xlu1 %v4494_v4, %s4127_s2 }
 0x1b2   :  { %1318 = vrot.lane.b32.xlu0 %v4511_v49, %s4127_s2 }
 0x1b5   :  { %1322 = vrot.lane.b32.xlu2 %v4517_v26, %s4127_s2  ;;  %1320 = vrot.lane.b32.xlu1 %v4505_v6, %s4127_s2 }
 0x1ba   :  { %1324 = vrot.lane.b32.xlu0 %v4515_v10, %s4127_s2 }
 0x1bd   :  { %1328 = vrot.lane.b32.xlu2 %v4527_v41, %s4127_s2  ;;  %1326 = vrot.lane.b32.xlu1 %v4523_v27, %s4127_s2 }
 0x1c2   :  { %1330 = vrot.lane.b32.xlu0 %v3732_v36, %s4127_s2 }
 0x1c5   :  { %1508 = vrot.lane.b32.xlu2 %v4494_v4, %s4128_s26  ;;  %1332 = vrot.lane.b32.xlu1 %v3736_v14, %s4127_s2 }
 0x1ca   :  { %1510 = vrot.lane.b32.xlu0 %v4497_v63, %s4128_s26 }
 0x1cd   :  { %1514 = vrot.lane.b32.xlu2 %v4505_v6, %s4128_s26  ;;  %1512 = vrot.lane.b32.xlu1 %v4511_v49, %s4128_s26 }
 0x1d2   :  { %1516 = vrot.lane.b32.xlu0 %v4517_v26, %s4128_s26 }
 0x1d5   :  { %1520 = vrot.lane.b32.xlu2 %v4523_v27, %s4128_s26  ;;  %1518 = vrot.lane.b32.xlu1 %v4515_v10, %s4128_s26 }
 0x1da   :  { %1522 = vrot.lane.b32.xlu0 %v4527_v41, %s4128_s26 }
 0x1dd   :  { %1524 = vrot.lane.b32.xlu1 %v3732_v36, %s4128_s26  ;;  %1526 = vrot.lane.b32.xlu2 %v3736_v14, %s4128_s26  ;;  %v4066_v14 = vld [vmem:[%s5316_s3 + $0x18] sm:$0xff] }
 0x1e2   :  { %1698 = vperm.xlu0 %4119, %v1694_v59  }
 0x1e5   :  { %1703 = vperm.xlu1 %4120, %v1695_v42  }
 0x1e7   :  { %v991_v16 = vpop.permute.xlu2 %990 }
 0x1ef   :  { %v995_v24 = vpop.permute.xlu2 %994 }
 0x1f7   :  { %v1001_v40 = vpop.permute.xlu2 %1000 }
 0x1ff   :  { %v1007_v60 = vpop.permute.xlu2 %1006 }
 0x200   :  { %v993_v21 = vpop.permute.xlu1 %992 }
 0x201   :  { %v1011_v29 = vsel %vm1010_vm7, %v991_v16, %v993_v21  ;;  %v1012_v43 = vsel %vm1010_vm7, %v993_v21, %v995_v24 }
 0x202   :  { %1039 = vmatpush.bf16.msrb.mxu0 %v1011_v29  ;;  %1053 = vmatpush.bf16.msrb.mxu1 %v1012_v43 }
 0x204   :  { %v997_v44 = vpop.permute.xlu0 %996 }
 0x205   :  { %3737 = vmatmul.msk.bf16.vlgmr.msrb.gmra.mxu0 %vm158_vm1, %v4064_v30  ;;  %v1013_v50 = vsel %vm1010_vm7, %v995_v24, %v997_v44  ;;  %3738 = vmatmul.msk.bf16.vlgmr.msrb.gmra.mxu1 %vm158_vm1, %v4064_v30 }
 0x206   :  { %1067 = vmatpush.bf16.msrb.mxu2 %v1013_v50 }
 0x207   :  { %v1317_v37 = vpop.permute.xlu2 %1316 }
 0x209   :  { %3739 = vmatmul.msk.bf16.vlgmr.msrb.gmra.mxu2 %vm158_vm1, %v4064_v30 }
 0x20f   :  { %v999_v52 = vpop.permute.xlu1 %998  ;;  %v1323_v7 = vpop.permute.xlu2 %1322 }
 0x210   :  { %v1014_v53 = vsel %vm1010_vm7, %v997_v44, %v999_v52  ;;  %v1015_v33 = vsel %vm1010_vm7, %v999_v52, %v1001_v40 }
 0x211   :  { %1081 = vmatpush.bf16.msrb.mxu3 %v1014_v53  ;;  %1095 = vmatpush.bf16.msra.mxu0 %v1015_v33 }
 0x214   :  { %3740 = vmatmul.msk.bf16.vlgmr.msrb.gmra.mxu3 %vm158_vm1, %v4064_v30  ;;  %v1003_v19 = vpop.permute.xlu0 %1002 }
 0x215   :  { %3741 = vmatmul.msk.bf16.vlgmr.msra.gmra.mxu0 %vm158_vm1, %v4064_v30  ;;  %v1016_v34 = vsel %vm1010_vm7, %v1001_v40, %v1003_v19 }
 0x216   :  { %1109 = vmatpush.bf16.msra.mxu1 %v1016_v34 }
 0x217   :  { %v1005_v61 = vpop.permute.xlu1 %1004  ;;  %v1329_v25 = vpop.permute.xlu2 %1328 }
 0x218   :  { %v1017_v22 = vsel %vm1010_vm7, %v1003_v19, %v1005_v61  ;;  %v1018_v51 = vsel %vm1010_vm7, %v1005_v61, %v1007_v60 }
 0x219   :  { %1123 = vmatpush.bf16.msra.mxu2 %v1017_v22  ;;  %1137 = vmatpush.bf16.msra.mxu3 %v1018_v51 }
 0x21a   :  { %1187 = vmatpush.bf16.msrb.mxu1 %v4494_v4  ;;  %v4061_v4 = vld [vmem:[%s5316_s3] sm:$0xff]  ;;  %s4129_s3 = smov 125  }
 0x21b   :  { %3742 = vmatmul.msk.bf16.vlgmr.msra.gmra.mxu1 %vm158_vm1, %v4064_v30 }
 0x21c   :  { %3743 = vmatmul.msk.bf16.vlgmr.msra.gmra.mxu2 %vm158_vm1, %v4064_v30  ;;  %v1009_v0 = vpop.permute.xlu0 %1008 }
 0x21d   :  { %1201 = vmatpush.bf16.msrb.mxu2 %v4497_v63  ;;  %1215 = vmatpush.bf16.msrb.mxu3 %v4511_v49  ;;  %v1019_v1 = vsel %vm1010_vm7, %v1007_v60, %v1009_v0  ;;  %v4060_v63 = vld [vmem:[#allocation2 + $0x48] sm:$0xf0] }
 0x21e   :  { %1243 = vmatpush.bf16.msra.mxu1 %v4517_v26  ;;  %1151 = vmatpush.bf16.msrb.mxu0 %v1019_v1  ;;  %v3753_v5 = vor.u32 %v4060_v63, %v3752_v45 }
 0x21f   :  { %v1315_v8 = vpop.permute.xlu1 %1314  ;;  %v1509_v11 = vpop.permute.xlu2 %1508 }
 0x220   :  { %v1335_v54 = vsel %vm1334_vm8, %v1315_v8, %v1317_v37 }
 0x221   :  { %1257 = vmatpush.bf16.msra.mxu2 %v4515_v10 }
 0x222   :  { %1229 = vmatpush.bf16.msra.mxu0 %v4505_v6 }
 0x224   :  { %3744 = vmatmul.msk.bf16.vlgmr.msra.gmra.mxu3 %vm158_vm1, %v4064_v30  ;;  %v1319_v55 = vpop.permute.xlu0 %1318 }
 0x225   :  { %3745 = vmatmul.msk.bf16.vlgmr.msrb.gmra.mxu0 %vm158_vm1, %v4064_v30  ;;  %1271 = vmatpush.bf16.msra.mxu3 %v4523_v27  ;;  %v1336_v6 = vsel %vm1334_vm8, %v1317_v37, %v1319_v55 }
 0x226   :  { %1285 = vmatpush.bf16.msrb.mxu0 %v4527_v41 }
 0x227   :  { %v1321_v46 = vpop.permute.xlu1 %1320  ;;  %v1515_v26 = vpop.permute.xlu2 %1514 }
 0x228   :  { %v1337_v47 = vsel %vm1334_vm8, %v1319_v55, %v1321_v46  ;;  %v1338_v20 = vsel %vm1334_vm8, %v1321_v46, %v1323_v7 }
 0x22b   :  { %3754 = vmatmul.msk.bf16.vlgmr.msrb.gmra.mxu1 %vm158_vm1, %v4061_v4 }
 0x22c   :  { %1299 = vmatpush.bf16.msrb.mxu1 %v3753_v5  ;;  %3755 = vmatmul.msk.bf16.vlgmr.msrb.gmra.mxu2 %vm158_vm1, %v4061_v4  ;;  %v1325_v2 = vpop.permute.xlu0 %1324 }
 0x22d   :  { %1363 = vmatpush.bf16.msrb.mxu2 %v1335_v54  ;;  %v1339_v57 = vsel %vm1334_vm8, %v1323_v7, %v1325_v2 }
 0x22f   :  { %v1327_v3 = vpop.permute.xlu1 %1326  ;;  %v1521_v58 = vpop.permute.xlu2 %1520 }
 0x230   :  { %v1340_v49 = vsel %vm1334_vm8, %v1325_v2, %v1327_v3  ;;  %v1341_v9 = vsel %vm1334_vm8, %v1327_v3, %v1329_v25 }
 0x234   :  { %3756 = vmatmul.msk.bf16.vlgmr.msrb.gmra.mxu3 %vm158_vm1, %v4061_v4  ;;  %v1331_v12 = vpop.permute.xlu0 %1330 }
 0x235   :  { %3757 = vmatmul.msk.bf16.vlgmr.msra.gmra.mxu0 %vm158_vm1, %v4061_v4  ;;  %1377 = vmatpush.bf16.msrb.mxu3 %v1336_v6  ;;  %v1342_v23 = vsel %vm1334_vm8, %v1329_v25, %v1331_v12 }
 0x236   :  { %1391 = vmatpush.bf16.msra.mxu0 %v1337_v47 }
 0x237   :  { %v1333_v15 = vpop.permute.xlu1 %1332  ;;  %v1527_v59 = vpop.permute.xlu2 %1526 }
 0x238   :  { %v1343_v28 = vsel %vm1334_vm8, %v1331_v12, %v1333_v15 }
 0x23b   :  { %3758 = vmatmul.msk.bf16.vlgmr.msra.gmra.mxu1 %vm158_vm1, %v4061_v4 }
 0x23c   :  { %1405 = vmatpush.bf16.msra.mxu1 %v1338_v20  ;;  %3759 = vmatmul.msk.bf16.vlgmr.msra.gmra.mxu2 %vm158_vm1, %v4061_v4  ;;  %v1511_v31 = vpop.permute.xlu0 %1510 }
 0x23d   :  { %1419 = vmatpush.bf16.msra.mxu2 %v1339_v57  ;;  %v1529_v13 = vsel %vm1528_vm9, %v1509_v11, %v1511_v31 }
 0x23f   :  { %v1513_v48 = vpop.permute.xlu1 %1512 }
 0x240   :  { %v1530_v10 = vsel %vm1528_vm9, %v1511_v31, %v1513_v48  ;;  %v1531_v35 = vsel %vm1528_vm9, %v1513_v48, %v1515_v26 }
 0x244   :  { %3760 = vmatmul.msk.bf16.vlgmr.msra.gmra.mxu3 %vm158_vm1, %v4061_v4  ;;  %v1517_v32 = vpop.permute.xlu0 %1516 }
 0x245   :  { %3761 = vmatmul.msk.bf16.vlgmr.msrb.gmra.mxu0 %vm158_vm1, %v4061_v4  ;;  %1433 = vmatpush.bf16.msra.mxu3 %v1340_v49  ;;  %v1532_v27 = vsel %vm1528_vm9, %v1515_v26, %v1517_v32 }
 0x246   :  { %1447 = vmatpush.bf16.msrb.mxu0 %v1341_v9 }
 0x247   :  { %v1519_v38 = vpop.permute.xlu1 %1518 }
 0x248   :  { %v1533_v62 = vsel %vm1528_vm9, %v1517_v32, %v1519_v38  ;;  %v1534_v18 = vsel %vm1528_vm9, %v1519_v38, %v1521_v58 }
 0x24b   :  { %3762 = vmatmul.msk.bf16.vlgmr.msrb.gmra.mxu1 %vm158_vm1, %v4061_v4 }
 0x24c   :  { %1461 = vmatpush.bf16.msrb.mxu1 %v1342_v23  ;;  %3769 = vmatmul.msk.bf16.vlgmr.msrb.gmra.mxu2 %vm158_vm1, %v4065_v17  ;;  %v1523_v36 = vpop.permute.xlu0 %1522 }
 0x24d   :  { %1475 = vmatpush.bf16.msrb.mxu2 %v1343_v28  ;;  %v1535_v39 = vsel %vm1528_vm9, %v1521_v58, %v1523_v36 }
 0x24f   :  { %v1525_v41 = vpop.permute.xlu1 %1524 }
 0x250   :  { %v1536_v56 = vsel %vm1528_vm9, %v1523_v36, %v1525_v41  ;;  %v1537_v42 = vsel %vm1528_vm9, %v1525_v41, %v1527_v59 }
 0x254   :  { %3770 = vmatmul.msk.bf16.vlgmr.msrb.gmra.mxu3 %vm158_vm1, %v4065_v17 }
 0x255   :  { %3771 = vmatmul.msk.bf16.vlgmr.msra.gmra.mxu0 %vm158_vm1, %v4065_v17  ;;  %1557 = vmatpush.bf16.msrb.mxu3 %v1529_v13 }
 0x256   :  { %1571 = vmatpush.bf16.msra.mxu0 %v1530_v10 }
 0x25b   :  { %3772 = vmatmul.msk.bf16.vlgmr.msra.gmra.mxu1 %vm158_vm1, %v4065_v17 }
 0x25c   :  { %1585 = vmatpush.bf16.msra.mxu1 %v1531_v35  ;;  %3773 = vmatmul.msk.bf16.vlgmr.msra.gmra.mxu2 %vm158_vm1, %v4065_v17 }
 0x25d   :  { %1599 = vmatpush.bf16.msra.mxu2 %v1532_v27 }
 0x264   :  { %3774 = vmatmul.msk.bf16.vlgmr.msra.gmra.mxu3 %vm158_vm1, %v4065_v17 }
 0x265   :  { %3775 = vmatmul.msk.bf16.vlgmr.msrb.gmra.mxu0 %vm158_vm1, %v4065_v17  ;;  %1613 = vmatpush.bf16.msra.mxu3 %v1533_v62 }
 0x266   :  { %1627 = vmatpush.bf16.msrb.mxu0 %v1534_v18 }
 0x26b   :  { %3776 = vmatmul.msk.bf16.vlgmr.msrb.gmra.mxu1 %vm158_vm1, %v4065_v17 }
 0x26c   :  { %1641 = vmatpush.bf16.msrb.mxu1 %v1535_v39  ;;  %3777 = vmatmul.msk.bf16.vlgmr.msrb.gmra.mxu2 %vm158_vm1, %v4065_v17 }
 0x26d   :  { %1655 = vmatpush.bf16.msrb.mxu2 %v1536_v56 }
 0x274   :  { %3784 = vmatmul.msk.bf16.vlgmr.msrb.gmra.mxu3 %vm158_vm1, %v4066_v14 }
 0x275   :  { %3785 = vmatmul.msk.bf16.vlgmr.msra.gmra.mxu0 %vm158_vm1, %v4066_v14  ;;  %1669 = vmatpush.bf16.msrb.mxu3 %v1537_v42 }
 0x27b   :  { %3786 = vmatmul.msk.bf16.vlgmr.msra.gmra.mxu1 %vm158_vm1, %v4066_v14 }
 0x27c   :  { %3787 = vmatmul.msk.bf16.vlgmr.msra.gmra.mxu2 %vm158_vm1, %v4066_v14 }
 0x282   :  { %v1041_v16 = vpop.f32.mrf.mxu0  ;;  %v1055_v24 = vpop.f32.mrf.mxu1 }
 0x284   :  { %3788 = vmatmul.msk.bf16.vlgmr.msra.gmra.mxu3 %vm158_vm1, %v4066_v14 }
 0x285   :  { %3789 = vmatmul.msk.bf16.vlgmr.msrb.gmra.mxu0 %vm158_vm1, %v4066_v14 }
 0x28a   :  { %v4635_v21 = vpop.f32.mrf.mxu0  ;;  %v4639_v29 = vpop.f32.mrf.mxu1 }
 0x28b   :  { %3790 = vmatmul.msk.bf16.vlgmr.msrb.gmra.mxu1 %vm158_vm1, %v4066_v14 }
 0x28c   :  { %3791 = vmatmul.msk.bf16.vlgmr.msrb.gmra.mxu2 %vm158_vm1, %v4066_v14  ;;  %v1069_v43 = vpop.f32.mrf.mxu2 }
 0x292   :  { %v1097_v30 = vpop.f32.mrf.mxu0 }
 0x294   :  { %3792 = vmatmul.msk.bf16.vlgmr.msrb.gmra.mxu3 %vm158_vm1, %v4066_v14  ;;  %v4642_v40 = vpop.f32.mrf.mxu2 }
 0x297   :  { %v1083_v44 = vpop.f32.mrf.mxu3 }
 0x298   :  { %v1111_v50 = vpop.f32.mrf.mxu1 }
 0x29a   :  { %v4644_v52 = vpop.f32.mrf.mxu0 }
 0x29f   :  { %v4646_v53 = vpop.f32.mrf.mxu3  ;;  %v1125_v19 = vpop.f32.mrf.mxu2 }
 0x2a0   :  { %v4648_v33 = vpop.f32.mrf.mxu1 }
 0x2a2   :  { %v1153_v34 = vpop.f32.mrf.mxu0 }
 0x2a7   :  { %v1139_v60 = vpop.f32.mrf.mxu3  ;;  %v4650_v22 = vpop.f32.mrf.mxu2 }
 0x2a8   :  { %v1189_v61 = vpop.f32.mrf.mxu1 }
 0x2a9   :  { %v1190_v51 = vadd.f32 %v1189_v61, %v1041_v16 }
 0x2aa   :  { %v4652_v0 = vpop.f32.mrf.mxu0 }
 0x2af   :  { %v4654_v1 = vpop.f32.mrf.mxu3  ;;  %v1203_v63 = vpop.f32.mrf.mxu2 }
 0x2b0   :  { %v1191_v4 = vpop.f32.mrf.mxu1  ;;  %v1204_v8 = vadd.f32 %v1203_v63, %v1055_v24  ;;  %v4696_v24 = vpop.permute.xlu0 %1698 }
 0x2b2   :  { %v1231_v45 = vpop.f32.mrf.mxu0 }
 0x2b3   :  { %v4656_v5 = vadd.f32 %v1231_v45, %v1083_v44 }
 0x2b7   :  { %v1217_v37 = vpop.f32.mrf.mxu3  ;;  %v1205_v55 = vpop.f32.mrf.mxu2 }
 0x2b8   :  { %v1245_v54 = vpop.f32.mrf.mxu1  ;;  %v1218_v46 = vadd.f32 %v1217_v37, %v1069_v43  ;;  %v1206_v44 = vadd.f32 %v1205_v55, %v4639_v29 }
 0x2b9   :  { %v4658_v6 = vadd.f32 %v1245_v54, %v1097_v30 }
 0x2ba   :  { %v4660_v47 = vpop.f32.mrf.mxu0 }
 0x2bf   :  { %v1219_v7 = vpop.f32.mrf.mxu3  ;;  %v1259_v20 = vpop.f32.mrf.mxu2 }
 0x2c0   :  { %v4662_v2 = vpop.f32.mrf.mxu1  ;;  %v4664_v57 = vadd.f32 %v1259_v20, %v1111_v50  ;;  %v1220_v29 = vadd.f32 %v1219_v7, %v4642_v40 }
 0x2c2   :  { %v1287_v3 = vpop.f32.mrf.mxu0 }
 0x2c3   :  { %v4666_v25 = vadd.f32 %v1287_v3, %v1139_v60 }
 0x2c7   :  { %v1273_v49 = vpop.f32.mrf.mxu3  ;;  %v4668_v12 = vpop.f32.mrf.mxu2 }
 0x2c8   :  { %v1301_v9 = vpop.f32.mrf.mxu1  ;;  %v4670_v15 = vadd.f32 %v1273_v49, %v1125_v19  ;;  %v4704_v49 = vpop.permute.xlu1 %1703 }
 0x2c9   :  { %v4672_v17 = vadd.f32 %v1301_v9, %v1153_v34 }
 0x2ca   :  { %v4674_v23 = vpop.f32.mrf.mxu0 }
 0x2cf   :  { %v4676_v28 = vpop.f32.mrf.mxu3  ;;  %v1365_v31 = vpop.f32.mrf.mxu2 }
 0x2d0   :  { %v4678_v11 = vpop.f32.mrf.mxu1  ;;  %v1482_v43 = vadd.f32 %v1365_v31, %v1190_v51  ;;  %v1192_v51 = vadd.f32 %v1191_v4, %v4635_v21 }
 0x2d2   :  { %v1393_v48 = vpop.f32.mrf.mxu0 }
 0x2d3   :  { %v1484_v61 = vadd.f32 %v1393_v48, %v1218_v46 }
 0x2d7   :  { %v1379_v13 = vpop.f32.mrf.mxu3  ;;  %v1367_v26 = vpop.f32.mrf.mxu2 }
 0x2d8   :  { %v1407_v10 = vpop.f32.mrf.mxu1  ;;  %v1483_v59 = vadd.f32 %v1379_v13, %v1204_v8  ;;  %v1491_v55 = vadd.f32 %v1367_v26, %v1192_v51 }
 0x2d9   :  { %v1485_v48 = vadd.f32 %v1407_v10, %v4656_v5 }
 0x2da   :  { %v1395_v32 = vpop.f32.mrf.mxu0 }
 0x2df   :  { %v1381_v35 = vpop.f32.mrf.mxu3  ;;  %v1421_v38 = vpop.f32.mrf.mxu2 }
 0x2e0   :  { %v4680_v27 = vpop.f32.mrf.mxu1  ;;  %v1492_v63 = vadd.f32 %v1381_v35, %v1206_v44 }
 0x2e2   :  { %v4682_v58 = vpop.f32.mrf.mxu0 }
 0x2e7   :  { %v1435_v62 = vpop.f32.mrf.mxu3  ;;  %v4686_v36 = vpop.f32.mrf.mxu2 }
 0x2e8   :  { %v4684_v18 = vpop.f32.mrf.mxu1 }
 0x2ea   :  { %v4688_v41 = vpop.f32.mrf.mxu0 }
 0x2ef   :  { %v4690_v39 = vpop.f32.mrf.mxu3  ;;  %v4694_v14 = vpop.f32.mrf.mxu2 }
 0x2f0   :  { %v4692_v56 = vpop.f32.mrf.mxu1 }
 0x2f2   :  { %v1573_v42 = vpop.f32.mrf.mxu0 }
 0x2f3   :  { %v1677_v16 = vadd.f32 %v1573_v42, %v1483_v59 }
 0x2f5   :  { %v1707_v30 = vadd.f32 %v4696_v24, %v1677_v16  ;;  %v1493_v16 = vadd.f32 %v1395_v32, %v1220_v29 }
 0x2f7   :  { %v1559_v50 = vpop.f32.mrf.mxu3  ;;  %v4700_v34 = vpop.f32.mrf.mxu2  ;;  %v1743_v45 = vmul.f32 0.1, %v1707_v30  ;;  %vm1725_vm10 = vcmp.ge.f32.partialorder %v1707_v30, 0.0 }
 0x2f8   :  { %v1587_v19 = vpop.f32.mrf.mxu1  ;;  %v1676_v60 = vadd.f32 %v1559_v50, %v1482_v43  ;;  %v1487_v43 = vadd.f32 %v1435_v62, %v4664_v57  ;;  %v1262_v57 = vadd.f32 %v4668_v12, %v4648_v33  ;;  %v1486_v62 = vadd.f32 %v1421_v38, %v4658_v6 }
 0x2f9   :  { %v1678_v54 = vadd.f32 %v1587_v19, %v1484_v61  ;;  %v1761_v9 = vsel %vm1725_vm10, %v1707_v30, %v1743_v45  ;;  %v1234_v19 = vadd.f32 %v4660_v47, %v4646_v53  ;;  %v1488_v6 = vadd.f32 %v4682_v58, %v4670_v15 }
 0x2fa   :  { %v1706_v37 = vadd.f32 %v4696_v24, %v1676_v60  ;;  %v1575_v8 = vpop.f32.mrf.mxu0  ;;  %v1496_v12 = vadd.f32 %v4690_v39, %v1262_v57  ;;  %v1276_v58 = vadd.f32 %v4676_v28, %v4650_v22  ;;  %v1489_v39 = vadd.f32 %v4684_v18, %v4666_v25 }
 0x2fb   :  { %v1686_v20 = vadd.f32 %v1575_v8, %v1492_v63  ;;  %v1708_v35 = vadd.f32 %v4696_v24, %v1678_v54  ;;  %v1494_v8 = vadd.f32 %v4680_v27, %v1234_v19 }
 0x2fc   :  { %vm1724_vm11 = vcmp.ge.f32.partialorder %v1706_v37, 0.0  ;;  %v1742_v3 = vmul.f32 0.1, %v1706_v37 }
 0x2fd   :  { %v1716_v46 = vadd.f32 %v4704_v49, %v1686_v20  ;;  %v1744_v50 = vmul.f32 0.1, %v1708_v35  ;;  %vm1726_vm13 = vcmp.ge.f32.partialorder %v1708_v35, 0.0 }
 0x2fe   :  { %v1760_v31 = vsel %vm1724_vm11, %v1706_v37, %v1742_v3 }
 0x2ff   :  { %v1778_v13 = vpack.c.bf16 %v1761_v9, %v1760_v31  ;;  %v1561_v59 = vpop.f32.mrf.mxu3  ;;  %v1601_v4 = vpop.f32.mrf.mxu2  ;;  %v1752_v40 = vmul.f32 0.1, %v1716_v46  ;;  %vm1734_vm12 = vcmp.ge.f32.partialorder %v1716_v46, 0.0  ;;  %v1762_v54 = vsel %vm1726_vm13, %v1708_v35, %v1744_v50 }
 0x300   :  { %v1589_v42 = vpop.f32.mrf.mxu1  ;;  %v1685_v21 = vadd.f32 %v1561_v59, %v1491_v55  ;;  %v1679_v44 = vadd.f32 %v1601_v4, %v1485_v48  ;;  %v1248_v35 = vadd.f32 %v4662_v2, %v4644_v52  ;;  %vm1880_vm13 = vcmask 1022976  }
 0x301   :  { %1788 = vst [vmem:[#allocation3] sm:$0xff] %v1778_v13  ;;  %v1687_v26 = vadd.f32 %v1589_v42, %v1493_v16  ;;  %v1770_v61 = vsel %vm1734_vm12, %v1716_v46, %v1752_v40 }
 0x302   :  { %v1715_v7 = vadd.f32 %v4704_v49, %v1685_v21  ;;  %v1629_v30 = vpop.f32.mrf.mxu0  ;;  %v1709_v5 = vadd.f32 %v4696_v24, %v1679_v44  ;;  %v1495_v42 = vadd.f32 %v4686_v36, %v1248_v35  ;;  %v1497_v36 = vadd.f32 %v4688_v41, %v1276_v58 }
 0x303   :  { %v1681_v10 = vadd.f32 %v1629_v30, %v1487_v43  ;;  %v1717_v45 = vadd.f32 %v4704_v49, %v1687_v26  ;;  %v1290_v41 = vadd.f32 %v4674_v23, %v4654_v1 }
 0x304   :  { %vm1733_vm14 = vcmp.ge.f32.partialorder %v1715_v7, 0.0  ;;  %v1751_v32 = vmul.f32 0.1, %v1715_v7  ;;  %vm1727_vm15 = vcmp.ge.f32.partialorder %v1709_v5, 0.0  ;;  %v1745_v60 = vmul.f32 0.1, %v1709_v5 }
 0x305   :  { %v1711_v37 = vadd.f32 %v4696_v24, %v1681_v10  ;;  %v1753_v55 = vmul.f32 0.1, %v1717_v45  ;;  %vm1735_vm2 = vcmp.ge.f32.partialorder %v1717_v45, 0.0 }
 0x306   :  { %v1769_v63 = vsel %vm1733_vm14, %v1715_v7, %v1751_v32  ;;  %v1763_v47 = vsel %vm1727_vm15, %v1709_v5, %v1745_v60  ;;  %vm2204_vm14 = vcmask 457728   ;;  %vm2398_vm15 = vcmask 433152  }
 0x307   :  { %v1783_v53 = vpack.c.bf16 %v1770_v61, %v1769_v63  ;;  %v1615_v20 = vpop.f32.mrf.mxu3  ;;  %v1779_v3 = vpack.c.bf16 %v1763_v47, %v1762_v54  ;;  %v1603_v29 = vpop.f32.mrf.mxu2  ;;  %v1747_v9 = vmul.f32 0.1, %v1711_v37  ;;  %vm1729_vm0 = vcmp.ge.f32.partialorder %v1711_v37, 0.0 }
 0x308   :  { %v1643_v51 = vpop.f32.mrf.mxu1  ;;  %v1680_v33 = vadd.f32 %v1615_v20, %v1486_v62  ;;  %v1688_v38 = vadd.f32 %v1603_v29, %v1494_v8  ;;  %v1771_v43 = vsel %vm1735_vm2, %v1717_v45, %v1753_v55  ;;  %v3801_v7 = vld [vmem:[#allocation3] sm:$0xf]  ;;  %v4067_v18 = vld [vmem:[#allocation3 + $0x4] sm:$0xf]  ;;  %v1490_v8 = vadd.f32 %v4694_v14, %v4672_v17 }
 0x309   :  { %1793 = vst [vmem:[#allocation3 + $0x2c] sm:$0xff] %v1783_v53  ;;  %v1682_v48 = vadd.f32 %v1643_v51, %v1488_v6  ;;  %v1765_v16 = vsel %vm1729_vm0, %v1711_v37, %v1747_v9  ;;  %v1498_v37 = vadd.f32 %v4692_v56, %v1290_v41  ;;  %v4079_v41 = vld [vmem:[%s5318_s5 + $0x8] sm:$0xff] }
 0x30a   :  { %1789 = vst [vmem:[#allocation3 + $0x8] sm:$0xff] %v1779_v3  ;;  %v1710_v27 = vadd.f32 %v4696_v24, %v1680_v33  ;;  %v1631_v31 = vpop.f32.mrf.mxu0  ;;  %v1718_v46 = vadd.f32 %v4704_v49, %v1688_v38 }
 0x30b   :  { %v1690_v13 = vadd.f32 %v1631_v31, %v1496_v12  ;;  %v1712_v2 = vadd.f32 %v4696_v24, %v1682_v48 }
 0x30c   :  { %vm1728_vm3 = vcmp.ge.f32.partialorder %v1710_v27, 0.0  ;;  %v1746_v15 = vmul.f32 0.1, %v1710_v27  ;;  %vm1736_vm4 = vcmp.ge.f32.partialorder %v1718_v46, 0.0  ;;  %v1754_v59 = vmul.f32 0.1, %v1718_v46 }
 0x30d   :  { %v1720_v4 = vadd.f32 %v4704_v49, %v1690_v13  ;;  %v1748_v62 = vmul.f32 0.1, %v1712_v2  ;;  %vm1730_vm6 = vcmp.ge.f32.partialorder %v1712_v2, 0.0 }
 0x30e   :  { %v1764_v21 = vsel %vm1728_vm3, %v1710_v27, %v1746_v15  ;;  %v1772_v44 = vsel %vm1736_vm4, %v1718_v46, %v1754_v59  ;;  %v1304_v46 = vadd.f32 %v4678_v11, %v4652_v0 }
 0x30f   :  { %v1780_v52 = vpack.c.bf16 %v1765_v16, %v1764_v21  ;;  %v1617_v40 = vpop.f32.mrf.mxu3  ;;  %v1784_v26 = vpack.c.bf16 %v1772_v44, %v1771_v43  ;;  %v1657_v30 = vpop.f32.mrf.mxu2  ;;  %v1756_v32 = vmul.f32 0.1, %v1720_v4  ;;  %vm1738_vm5 = vcmp.ge.f32.partialorder %v1720_v4, 0.0 }
 0x310   :  { %v1689_v22 = vadd.f32 %v1617_v40, %v1495_v42  ;;  %v1645_v28 = vpop.f32.mrf.mxu1  ;;  %v4071_v25 = vld [vmem:[#allocation3 + $0x28] sm:$0xf0]  ;;  %v3803_v50 = vld [vmem:[#allocation3 + $0x2c] sm:$0xf0]  ;;  %v1683_v5 = vadd.f32 %v1657_v30, %v1489_v39  ;;  %v1766_v47 = vsel %vm1730_vm6, %v1712_v2, %v1748_v62  ;;  %v1499_v13 = vadd.f32 %v4700_v34, %v1304_v46 }
 0x311   :  { %1790 = vst [vmem:[#allocation3 + $0x10] sm:$0xff] %v1780_v52  ;;  %v4736_v10 = vor.u32 %v4071_v25, %v3801_v7  ;;  %v4738_v19 = vor.u32 %v4067_v18, %v3803_v50  ;;  %v1691_v60 = vadd.f32 %v1645_v28, %v1497_v36  ;;  %v1774_v54 = vsel %vm1738_vm5, %v1720_v4, %v1756_v32  ;;  %v3809_v6 = vld [vmem:[#allocation3 + $0x8] sm:$0xf]  ;;  %v4068_v12 = vld [vmem:[#allocation3 + $0xc] sm:$0xf] }
 0x312   :  { %1794 = vst [vmem:[#allocation3 + $0x34] sm:$0xff] %v1784_v26  ;;  %v1719_v57 = vadd.f32 %v4704_v49, %v1689_v22  ;;  %v1713_v61 = vadd.f32 %v4696_v24, %v1683_v5  ;;  %v3835_v18 = vld [vmem:[#allocation3 + $0x4c] sm:$0xf0] }
 0x313   :  { %1860 = vrot.lane.b32.xlu2 %v4736_v10, %s4129_s3  ;;  %1862 = vrot.lane.b32.xlu0 %v4738_v19, %s4129_s3  ;;  %v1721_v51 = vadd.f32 %v4704_v49, %v1691_v60 }
 0x314   :  { %vm1737_vm7 = vcmp.ge.f32.partialorder %v1719_v57, 0.0  ;;  %v1755_v63 = vmul.f32 0.1, %v1719_v57  ;;  %vm1731_vm8 = vcmp.ge.f32.partialorder %v1713_v61, 0.0  ;;  %v1749_v45 = vmul.f32 0.1, %v1713_v61 }
 0x315   :  { %v1757_v27 = vmul.f32 0.1, %v1721_v51  ;;  %vm1739_vm9 = vcmp.ge.f32.partialorder %v1721_v51, 0.0 }
 0x316   :  { %v1773_v53 = vsel %vm1737_vm7, %v1719_v57, %v1755_v63  ;;  %v1767_v3 = vsel %vm1731_vm8, %v1713_v61, %v1749_v45  ;;  %v2565_v57 = vld [vmem:[%s5317_s6 + $0x8] sm:$0xff] }
 0x317   :  { %v1785_v20 = vpack.c.bf16 %v1774_v54, %v1773_v53  ;;  %v1671_v29 = vpop.f32.mrf.mxu3  ;;  %v1781_v33 = vpack.c.bf16 %v1767_v3, %v1766_v47  ;;  %v1659_v1 = vpop.f32.mrf.mxu2  ;;  %v1775_v15 = vsel %vm1739_vm9, %v1721_v51, %v1757_v27 }
 0x318   :  { %v1684_v23 = vadd.f32 %v1671_v29, %v1490_v8  ;;  %v1692_v38 = vadd.f32 %v1659_v1, %v1498_v37  ;;  %v4069_v42 = vld [vmem:[#allocation3 + $0x14] sm:$0xf]  ;;  %v3817_v21 = vld [vmem:[#allocation3 + $0x10] sm:$0xf] }
 0x319   :  { %1795 = vst [vmem:[#allocation3 + $0x3c] sm:$0xff] %v1785_v20  ;;  %v4072_v55 = vld [vmem:[#allocation3 + $0x30] sm:$0xf0]  ;;  %v3811_v56 = vld [vmem:[#allocation3 + $0x34] sm:$0xf0] }
 0x31a   :  { %1791 = vst [vmem:[#allocation3 + $0x18] sm:$0xff] %v1781_v33  ;;  %v1714_v17 = vadd.f32 %v4696_v24, %v1684_v23  ;;  %v4753_v14 = vor.u32 %v4072_v55, %v3809_v6  ;;  %v4755_v9 = vor.u32 %v4068_v12, %v3811_v56  ;;  %v1722_v31 = vadd.f32 %v4704_v49, %v1692_v38  ;;  %v4076_v12 = vld [vmem:[%s5318_s5] sm:$0xff] }
 0x31c   :  { %vm1732_vm10 = vcmp.ge.f32.partialorder %v1714_v17, 0.0  ;;  %v1750_v48 = vmul.f32 0.1, %v1714_v17  ;;  %1864 = vrot.lane.b32.xlu1 %v4753_v14, %s4129_s3  ;;  %1866 = vrot.lane.b32.xlu2 %v4755_v9, %s4129_s3  ;;  %vm1740_vm11 = vcmp.ge.f32.partialorder %v1722_v31, 0.0  ;;  %v1758_v24 = vmul.f32 0.1, %v1722_v31 }
 0x31e   :  { %v1768_v35 = vsel %vm1732_vm10, %v1714_v17, %v1750_v48  ;;  %v1776_v58 = vsel %vm1740_vm11, %v1722_v31, %v1758_v24 }
 0x31f   :  { %v1782_v39 = vpack.c.bf16 %v1768_v35, %v1768_v35  ;;  %v1673_v59 = vpop.f32.mrf.mxu3  ;;  %v1786_v0 = vpack.c.bf16 %v1776_v58, %v1775_v15 }
 0x320   :  { %v1693_v11 = vadd.f32 %v1673_v59, %v1499_v13  ;;  %v3819_v16 = vld [vmem:[#allocation3 + $0x3c] sm:$0xf0]  ;;  %v4073_v4 = vld [vmem:[#allocation3 + $0x38] sm:$0xf0] }
 0x321   :  { %1792 = vst [vmem:[#allocation3 + $0x20] sm:$0xf] %v1782_v39  ;;  %v4765_v43 = vor.u32 %v4069_v42, %v3819_v16  ;;  %v4767_v44 = vor.u32 %v4073_v4, %v3817_v21  ;;  %v3825_v7 = vld [vmem:[#allocation3 + $0x18] sm:$0xf]  ;;  %v4070_v26 = vld [vmem:[#allocation3 + $0x1c] sm:$0xf] }
 0x322   :  { %1796 = vst [vmem:[#allocation3 + $0x44] sm:$0xff] %v1786_v0  ;;  %v1723_v52 = vadd.f32 %v4704_v49, %v1693_v11  ;;  %v4077_v49 = vld [vmem:[#allocation3 + $0x24] sm:$0xf]  ;;  %v4080_v11 = vld [vmem:[%s5318_s5 + $0x10] sm:$0xff] }
 0x323   :  { %1868 = vrot.lane.b32.xlu0 %v4767_v44, %s4129_s3  ;;  %v3838_v5 = vor.u32 %v4077_v49, %v3835_v18 }
 0x324   :  { %vm1741_vm12 = vcmp.ge.f32.partialorder %v1723_v52, 0.0  ;;  %v1759_v34 = vmul.f32 0.1, %v1723_v52  ;;  %1870 = vrot.lane.b32.xlu1 %v4765_v43, %s4129_s3 }
 0x326   :  { %v1777_v2 = vsel %vm1741_vm12, %v1723_v52, %v1759_v34 }
 0x327   :  { %v1787_v40 = vpack.c.bf16 %v1777_v2, %v1777_v2 }
 0x328   :  { %v3833_v50 = vld [vmem:[#allocation3 + $0x20] sm:$0xf] }
 0x329   :  { %1797 = vst [vmem:[#allocation3 + $0x4c] sm:$0xf] %v1787_v40  ;;  %v4074_v22 = vld [vmem:[#allocation3 + $0x40] sm:$0xf0]  ;;  %v3827_v28 = vld [vmem:[#allocation3 + $0x44] sm:$0xf0] }
 0x32a   :  { %v4774_v30 = vor.u32 %v4074_v22, %v3825_v7  ;;  %v4776_v25 = vor.u32 %v4070_v26, %v3827_v28  ;;  %v3854_v56 = vld [vmem:[#allocation3 + $0x20] sm:$0xf] }
 0x32c   :  { %1872 = vrot.lane.b32.xlu2 %v4774_v30, %s4129_s3  ;;  %1874 = vrot.lane.b32.xlu0 %v4776_v25, %s4129_s3 }
 0x330   :  { %v4078_v36 = vld [vmem:[#allocation3 + $0x48] sm:$0xf0] }
 0x331   :  { %v3834_v32 = vor.u32 %v4078_v36, %v3833_v50  ;;  %v4075_v38 = vld [vmem:[#allocation3 + $0x48] sm:$0xf0] }
 0x332   :  { %v3855_v17 = vor.u32 %v4075_v38, %v3854_v56 }
 0x333   :  { %1876 = vrot.lane.b32.xlu1 %v3834_v32, %s4129_s3 }
 0x334   :  { %1878 = vrot.lane.b32.xlu2 %v3838_v5, %s4129_s3  ;;  %2184 = vrot.lane.b32.xlu0 %v4736_v10, %s4130_s16 }
 0x33b   :  { %2186 = vrot.lane.b32.xlu1 %v4738_v19, %s4130_s16 }
 0x33c   :  { %2188 = vrot.lane.b32.xlu2 %v4753_v14, %s4130_s16  ;;  %2190 = vrot.lane.b32.xlu0 %v4755_v9, %s4130_s16 }
 0x343   :  { %2192 = vrot.lane.b32.xlu1 %v4767_v44, %s4130_s16 }
 0x344   :  { %2194 = vrot.lane.b32.xlu2 %v4765_v43, %s4130_s16  ;;  %2196 = vrot.lane.b32.xlu0 %v4774_v30, %s4130_s16 }
 0x34b   :  { %2198 = vrot.lane.b32.xlu1 %v4776_v25, %s4130_s16 }
 0x34c   :  { %2200 = vrot.lane.b32.xlu2 %v3834_v32, %s4130_s16  ;;  %2202 = vrot.lane.b32.xlu0 %v3838_v5, %s4130_s16 }
 0x353   :  { %2378 = vrot.lane.b32.xlu1 %v4736_v10, %s4131_s18 }
 0x354   :  { %2380 = vrot.lane.b32.xlu2 %v4738_v19, %s4131_s18  ;;  %2382 = vrot.lane.b32.xlu0 %v4753_v14, %s4131_s18 }
 0x35b   :  { %2384 = vrot.lane.b32.xlu1 %v4755_v9, %s4131_s18 }
 0x35c   :  { %2386 = vrot.lane.b32.xlu2 %v4767_v44, %s4131_s18  ;;  %2388 = vrot.lane.b32.xlu0 %v4765_v43, %s4131_s18 }
 0x363   :  { %2390 = vrot.lane.b32.xlu1 %v4774_v30, %s4131_s18 }
 0x364   :  { %2392 = vrot.lane.b32.xlu2 %v4776_v25, %s4131_s18  ;;  %2394 = vrot.lane.b32.xlu0 %v3834_v32, %s4131_s18 }
 0x36b   :  { %2396 = vrot.lane.b32.xlu1 %v3838_v5, %s4131_s18  ;;  %v4081_v5 = vld [vmem:[%s5318_s5 + $0x18] sm:$0xff]  ;;  %s4132_s5 = smov 120  }
 0x36c   :  { %2573 = vperm.xlu0 %4119, %v2565_v57  }
 0x36d   :  { %v1861_v62 = vpop.permute.xlu2 %1860 }
 0x376   :  { %v1867_v63 = vpop.permute.xlu2 %1866 }
 0x385   :  { %v1863_v60 = vpop.permute.xlu0 %1862 }
 0x386   :  { %v1881_v61 = vsel %vm1880_vm13, %v1861_v62, %v1863_v60  ;;  %v1873_v53 = vpop.permute.xlu2 %1872  ;;  %v2564_v62 = vld [vmem:[%s5317_s6] sm:$0xff]  ;;  %s4133_s6 = smov 64  }
 0x387   :  { %1909 = vmatpush.bf16.msra.mxu0 %v1881_v61  ;;  %2568 = vperm.xlu2 %4121, %v2564_v62  }
 0x38a   :  { %3839 = vmatmul.msk.bf16.vlgmr.msra.gmra.mxu0 %vm158_vm1, %v4079_v41 }
 0x38e   :  { %v1865_v45 = vpop.permute.xlu1 %1864  ;;  %v1879_v1 = vpop.permute.xlu2 %1878 }
 0x38f   :  { %v1882_v37 = vsel %vm1880_vm13, %v1863_v60, %v1865_v45  ;;  %v1883_v8 = vsel %vm1880_vm13, %v1865_v45, %v1867_v63 }
 0x390   :  { %1923 = vmatpush.bf16.msra.mxu1 %v1882_v37  ;;  %1937 = vmatpush.bf16.msra.mxu2 %v1883_v8 }
 0x393   :  { %3840 = vmatmul.msk.bf16.vlgmr.msra.gmra.mxu1 %vm158_vm1, %v4079_v41  ;;  %3841 = vmatmul.msk.bf16.vlgmr.msra.gmra.mxu2 %vm158_vm1, %v4079_v41 }
 0x395   :  { %v1869_v54 = vpop.permute.xlu0 %1868 }
 0x396   :  { %v1871_v47 = vpop.permute.xlu1 %1870  ;;  %v1884_v20 = vsel %vm1880_vm13, %v1867_v63, %v1869_v54 }
 0x397   :  { %v1886_v51 = vsel %vm1880_vm13, %v1871_v47, %v1873_v53  ;;  %v1885_v3 = vsel %vm1880_vm13, %v1869_v54, %v1871_v47  ;;  %1951 = vmatpush.bf16.msra.mxu3 %v1884_v20 }
 0x398   :  { %1965 = vmatpush.bf16.msrb.mxu0 %v1885_v3  ;;  %1979 = vmatpush.bf16.msrb.mxu1 %v1886_v51 }
 0x39a   :  { %3842 = vmatmul.msk.bf16.vlgmr.msra.gmra.mxu3 %vm158_vm1, %v4079_v41 }
 0x39b   :  { %3843 = vmatmul.msk.bf16.vlgmr.msrb.gmra.mxu0 %vm158_vm1, %v4079_v41 }
 0x39c   :  { %2057 = vmatpush.bf16.msra.mxu1 %v4736_v10 }
 0x39e   :  { %v1875_v29 = vpop.permute.xlu0 %1874 }
 0x39f   :  { %v1887_v33 = vsel %vm1880_vm13, %v1873_v53, %v1875_v29 }
 0x3a0   :  { %1993 = vmatpush.bf16.msrb.mxu2 %v1887_v33 }
 0x3a3   :  { %3844 = vmatmul.msk.bf16.vlgmr.msrb.gmra.mxu1 %vm158_vm1, %v4079_v41  ;;  %3845 = vmatmul.msk.bf16.vlgmr.msrb.gmra.mxu2 %vm158_vm1, %v4079_v41 }
 0x3a4   :  { %2071 = vmatpush.bf16.msra.mxu2 %v4738_v19  ;;  %2113 = vmatpush.bf16.msrb.mxu1 %v4767_v44 }
 0x3a5   :  { %v1877_v10 = vpop.permute.xlu1 %1876 }
 0x3a6   :  { %v1888_v23 = vsel %vm1880_vm13, %v1875_v29, %v1877_v10  ;;  %v1889_v6 = vsel %vm1880_vm13, %v1877_v10, %v1879_v1  ;;  %v2185_v19 = vpop.permute.xlu0 %2184 }
 0x3a7   :  { %2007 = vmatpush.bf16.msrb.mxu3 %v1888_v23  ;;  %2021 = vmatpush.bf16.msra.mxu0 %v1889_v6 }
 0x3a8   :  { %2127 = vmatpush.bf16.msrb.mxu2 %v4765_v43 }
 0x3aa   :  { %3846 = vmatmul.msk.bf16.vlgmr.msrb.gmra.mxu3 %vm158_vm1, %v4079_v41 }
 0x3ab   :  { %2085 = vmatpush.bf16.msra.mxu3 %v4753_v14  ;;  %2099 = vmatpush.bf16.msrb.mxu0 %v4755_v9  ;;  %v2189_v9 = vpop.permute.xlu2 %2188 }
 0x3ac   :  { %3847 = vmatmul.msk.bf16.vlgmr.msra.gmra.mxu0 %vm158_vm1, %v4079_v41 }
 0x3ad   :  { %v2187_v55 = vpop.permute.xlu1 %2186 }
 0x3ae   :  { %v2205_v14 = vsel %vm2204_vm14, %v2185_v19, %v2187_v55  ;;  %v2191_v27 = vpop.permute.xlu0 %2190  ;;  %v2206_v31 = vsel %vm2204_vm14, %v2187_v55, %v2189_v9 }
 0x3af   :  { %2141 = vmatpush.bf16.msrb.mxu3 %v4774_v30  ;;  %2155 = vmatpush.bf16.msra.mxu0 %v4776_v25  ;;  %v2207_v46 = vsel %vm2204_vm14, %v2189_v9, %v2191_v27 }
 0x3b3   :  { %3856 = vmatmul.msk.bf16.vlgmr.msra.gmra.mxu1 %vm158_vm1, %v4076_v12  ;;  %3857 = vmatmul.msk.bf16.vlgmr.msra.gmra.mxu2 %vm158_vm1, %v4076_v12  ;;  %v2195_v24 = vpop.permute.xlu2 %2194 }
 0x3b4   :  { %2169 = vmatpush.bf16.msra.mxu1 %v3855_v17  ;;  %2233 = vmatpush.bf16.msra.mxu2 %v2205_v14 }
 0x3b5   :  { %v2193_v48 = vpop.permute.xlu1 %2192 }
 0x3b6   :  { %v2208_v13 = vsel %vm2204_vm14, %v2191_v27, %v2193_v48  ;;  %v2209_v35 = vsel %vm2204_vm14, %v2193_v48, %v2195_v24  ;;  %v2197_v15 = vpop.permute.xlu0 %2196 }
 0x3b7   :  { %v2210_v39 = vsel %vm2204_vm14, %v2195_v24, %v2197_v15 }
 0x3ba   :  { %3858 = vmatmul.msk.bf16.vlgmr.msra.gmra.mxu3 %vm158_vm1, %v4076_v12 }
 0x3bb   :  { %2247 = vmatpush.bf16.msra.mxu3 %v2206_v31  ;;  %v2201_v42 = vpop.permute.xlu2 %2200 }
 0x3bc   :  { %3859 = vmatmul.msk.bf16.vlgmr.msrb.gmra.mxu0 %vm158_vm1, %v4076_v12 }
 0x3bd   :  { %2261 = vmatpush.bf16.msrb.mxu0 %v2207_v46  ;;  %v2199_v58 = vpop.permute.xlu1 %2198 }
 0x3be   :  { %v2211_v59 = vsel %vm2204_vm14, %v2197_v15, %v2199_v58  ;;  %v2203_v0 = vpop.permute.xlu0 %2202  ;;  %v2212_v16 = vsel %vm2204_vm14, %v2199_v58, %v2201_v42 }
 0x3bf   :  { %v2213_v21 = vsel %vm2204_vm14, %v2201_v42, %v2203_v0 }
 0x3c3   :  { %3860 = vmatmul.msk.bf16.vlgmr.msrb.gmra.mxu1 %vm158_vm1, %v4076_v12  ;;  %3861 = vmatmul.msk.bf16.vlgmr.msrb.gmra.mxu2 %vm158_vm1, %v4076_v12  ;;  %v2381_v43 = vpop.permute.xlu2 %2380 }
 0x3c4   :  { %2275 = vmatpush.bf16.msrb.mxu1 %v2208_v13  ;;  %2289 = vmatpush.bf16.msrb.mxu2 %v2209_v35 }
 0x3c5   :  { %v2379_v4 = vpop.permute.xlu1 %2378 }
 0x3c6   :  { %v2383_v44 = vpop.permute.xlu0 %2382  ;;  %v2399_v52 = vsel %vm2398_vm15, %v2379_v4, %v2381_v43 }
 0x3c7   :  { %v2400_v34 = vsel %vm2398_vm15, %v2381_v43, %v2383_v44 }
 0x3ca   :  { %3862 = vmatmul.msk.bf16.vlgmr.msrb.gmra.mxu3 %vm158_vm1, %v4076_v12 }
 0x3cb   :  { %2303 = vmatpush.bf16.msrb.mxu3 %v2210_v39  ;;  %v2387_v40 = vpop.permute.xlu2 %2386 }
 0x3cc   :  { %3863 = vmatmul.msk.bf16.vlgmr.msra.gmra.mxu0 %vm158_vm1, %v4076_v12 }
 0x3cd   :  { %2317 = vmatpush.bf16.msra.mxu0 %v2211_v59  ;;  %v2385_v2 = vpop.permute.xlu1 %2384 }
 0x3ce   :  { %v2401_v7 = vsel %vm2398_vm15, %v2383_v44, %v2385_v2  ;;  %v2402_v26 = vsel %vm2398_vm15, %v2385_v2, %v2387_v40  ;;  %v2389_v22 = vpop.permute.xlu0 %2388 }
 0x3cf   :  { %v2403_v30 = vsel %vm2398_vm15, %v2387_v40, %v2389_v22 }
 0x3d3   :  { %3864 = vmatmul.msk.bf16.vlgmr.msra.gmra.mxu1 %vm158_vm1, %v4076_v12  ;;  %3871 = vmatmul.msk.bf16.vlgmr.msra.gmra.mxu2 %vm158_vm1, %v4080_v11  ;;  %v2393_v18 = vpop.permute.xlu2 %2392 }
 0x3d4   :  { %2331 = vmatpush.bf16.msra.mxu1 %v2212_v16  ;;  %2345 = vmatpush.bf16.msra.mxu2 %v2213_v21 }
 0x3d5   :  { %v2391_v28 = vpop.permute.xlu1 %2390 }
 0x3d6   :  { %v2404_v25 = vsel %vm2398_vm15, %v2389_v22, %v2391_v28  ;;  %v2395_v49 = vpop.permute.xlu0 %2394  ;;  %v2405_v50 = vsel %vm2398_vm15, %v2391_v28, %v2393_v18 }
 0x3d7   :  { %v2406_v36 = vsel %vm2398_vm15, %v2393_v18, %v2395_v49 }
 0x3da   :  { %3872 = vmatmul.msk.bf16.vlgmr.msra.gmra.mxu3 %vm158_vm1, %v4080_v11 }
 0x3db   :  { %2427 = vmatpush.bf16.msra.mxu3 %v2399_v52 }
 0x3dc   :  { %3873 = vmatmul.msk.bf16.vlgmr.msrb.gmra.mxu0 %vm158_vm1, %v4080_v11 }
 0x3dd   :  { %2441 = vmatpush.bf16.msrb.mxu0 %v2400_v34  ;;  %v2397_v32 = vpop.permute.xlu1 %2396 }
 0x3de   :  { %v2407_v57 = vsel %vm2398_vm15, %v2395_v49, %v2397_v32 }
 0x3e3   :  { %3874 = vmatmul.msk.bf16.vlgmr.msrb.gmra.mxu1 %vm158_vm1, %v4080_v11  ;;  %3875 = vmatmul.msk.bf16.vlgmr.msrb.gmra.mxu2 %vm158_vm1, %v4080_v11 }
 0x3e4   :  { %2455 = vmatpush.bf16.msrb.mxu1 %v2401_v7  ;;  %2469 = vmatpush.bf16.msrb.mxu2 %v2402_v26 }
 0x3ea   :  { %3876 = vmatmul.msk.bf16.vlgmr.msrb.gmra.mxu3 %vm158_vm1, %v4080_v11 }
 0x3eb   :  { %2483 = vmatpush.bf16.msrb.mxu3 %v2403_v30 }
 0x3ec   :  { %3877 = vmatmul.msk.bf16.vlgmr.msra.gmra.mxu0 %vm158_vm1, %v4080_v11 }
 0x3ed   :  { %2497 = vmatpush.bf16.msra.mxu0 %v2404_v25 }
 0x3f3   :  { %3878 = vmatmul.msk.bf16.vlgmr.msra.gmra.mxu1 %vm158_vm1, %v4080_v11  ;;  %3879 = vmatmul.msk.bf16.vlgmr.msra.gmra.mxu2 %vm158_vm1, %v4080_v11 }
 0x3f4   :  { %2511 = vmatpush.bf16.msra.mxu1 %v2405_v50  ;;  %2525 = vmatpush.bf16.msra.mxu2 %v2406_v36 }
 0x3fa   :  { %3886 = vmatmul.msk.bf16.vlgmr.msra.gmra.mxu3 %vm158_vm1, %v4081_v5 }
 0x3fb   :  { %2539 = vmatpush.bf16.msra.mxu3 %v2407_v57 }
 0x3fc   :  { %3887 = vmatmul.msk.bf16.vlgmr.msrb.gmra.mxu0 %vm158_vm1, %v4081_v5 }
 0x403   :  { %3888 = vmatmul.msk.bf16.vlgmr.msrb.gmra.mxu1 %vm158_vm1, %v4081_v5  ;;  %3889 = vmatmul.msk.bf16.vlgmr.msrb.gmra.mxu2 %vm158_vm1, %v4081_v5 }
 0x407   :  { %v1911_v60 = vpop.f32.mrf.mxu0 }
 0x40a   :  { %3890 = vmatmul.msk.bf16.vlgmr.msrb.gmra.mxu3 %vm158_vm1, %v4081_v5 }
 0x40c   :  { %3891 = vmatmul.msk.bf16.vlgmr.msra.gmra.mxu0 %vm158_vm1, %v4081_v5 }
 0x40f   :  { %v4896_v61 = vpop.f32.mrf.mxu0 }
 0x410   :  { %v1925_v41 = vpop.f32.mrf.mxu1 }
 0x413   :  { %3892 = vmatmul.msk.bf16.vlgmr.msra.gmra.mxu1 %vm158_vm1, %v4081_v5  ;;  %3893 = vmatmul.msk.bf16.vlgmr.msra.gmra.mxu2 %vm158_vm1, %v4081_v5 }
 0x416   :  { %v1939_v63 = vpop.f32.mrf.mxu2 }
 0x418   :  { %v4900_v45 = vpop.f32.mrf.mxu1  ;;  %v1967_v37 = vpop.f32.mrf.mxu0 }
 0x41a   :  { %3894 = vmatmul.msk.bf16.vlgmr.msra.gmra.mxu3 %vm158_vm1, %v4081_v5 }
 0x41d   :  { %v1953_v8 = vpop.f32.mrf.mxu3 }
 0x41e   :  { %v4903_v54 = vpop.f32.mrf.mxu2 }
 0x420   :  { %v4905_v53 = vpop.f32.mrf.mxu0  ;;  %v1981_v47 = vpop.f32.mrf.mxu1 }
 0x425   :  { %v4907_v20 = vpop.f32.mrf.mxu3 }
 0x426   :  { %v1995_v51 = vpop.f32.mrf.mxu2 }
 0x428   :  { %v4909_v3 = vpop.f32.mrf.mxu1 }
 0x429   :  { %v2023_v29 = vpop.f32.mrf.mxu0 }
 0x42d   :  { %v2009_v33 = vpop.f32.mrf.mxu3 }
 0x42e   :  { %v4911_v1 = vpop.f32.mrf.mxu2 }
 0x430   :  { %v2059_v23 = vpop.f32.mrf.mxu1 }
 0x431   :  { %v4913_v10 = vpop.f32.mrf.mxu0  ;;  %v2060_v6 = vadd.f32 %v2059_v23, %v1911_v60 }
 0x435   :  { %v4915_v19 = vpop.f32.mrf.mxu3 }
 0x436   :  { %v2073_v12 = vpop.f32.mrf.mxu2 }
 0x437   :  { %v2074_v38 = vadd.f32 %v2073_v12, %v1925_v41  ;;  %v4957_v41 = vpop.permute.xlu2 %2568 }
 0x438   :  { %v2061_v55 = vpop.f32.mrf.mxu1 }
 0x439   :  { %v2101_v56 = vpop.f32.mrf.mxu0 }
 0x43a   :  { %v4917_v17 = vadd.f32 %v2101_v56, %v1953_v8 }
 0x43d   :  { %v2087_v14 = vpop.f32.mrf.mxu3 }
 0x43e   :  { %v2075_v9 = vpop.f32.mrf.mxu2  ;;  %v2088_v27 = vadd.f32 %v2087_v14, %v1939_v63 }
 0x43f   :  { %v2076_v8 = vadd.f32 %v2075_v9, %v4900_v45 }
 0x440   :  { %v2115_v46 = vpop.f32.mrf.mxu1 }
 0x441   :  { %v4919_v31 = vpop.f32.mrf.mxu0  ;;  %v4921_v48 = vadd.f32 %v2115_v46, %v1967_v37 }
 0x445   :  { %v2089_v24 = vpop.f32.mrf.mxu3 }
 0x446   :  { %v2129_v13 = vpop.f32.mrf.mxu2 }
 0x447   :  { %v4923_v35 = vadd.f32 %v2129_v13, %v1981_v47 }
 0x448   :  { %v4925_v15 = vpop.f32.mrf.mxu1 }
 0x449   :  { %v2157_v58 = vpop.f32.mrf.mxu0 }
 0x44a   :  { %v4927_v39 = vadd.f32 %v2157_v58, %v2009_v33 }
 0x44d   :  { %v2143_v59 = vpop.f32.mrf.mxu3 }
 0x44e   :  { %v4929_v42 = vpop.f32.mrf.mxu2  ;;  %v4931_v0 = vadd.f32 %v2143_v59, %v1995_v51  ;;  %v4965_v59 = vpop.permute.xlu0 %2573 }
 0x450   :  { %v2171_v16 = vpop.f32.mrf.mxu1 }
 0x451   :  { %v4933_v11 = vpop.f32.mrf.mxu0  ;;  %v4935_v21 = vadd.f32 %v2171_v16, %v2023_v29 }
 0x455   :  { %v4937_v4 = vpop.f32.mrf.mxu3 }
 0x456   :  { %v2235_v43 = vpop.f32.mrf.mxu2 }
 0x457   :  { %v2352_v63 = vadd.f32 %v2235_v43, %v2060_v6  ;;  %v2062_v6 = vadd.f32 %v2061_v55, %v4896_v61  ;;  %v2090_v43 = vadd.f32 %v2089_v24, %v4903_v54 }
 0x458   :  { %v4939_v44 = vpop.f32.mrf.mxu1 }
 0x459   :  { %v2263_v52 = vpop.f32.mrf.mxu0 }
 0x45a   :  { %v2354_v33 = vadd.f32 %v2263_v52, %v2088_v27 }
 0x45d   :  { %v2249_v34 = vpop.f32.mrf.mxu3 }
 0x45e   :  { %v2237_v2 = vpop.f32.mrf.mxu2  ;;  %v2353_v32 = vadd.f32 %v2249_v34, %v2074_v38 }
 0x45f   :  { %v2361_v45 = vadd.f32 %v2237_v2, %v2062_v6 }
 0x460   :  { %v2277_v7 = vpop.f32.mrf.mxu1 }
 0x461   :  { %v2265_v40 = vpop.f32.mrf.mxu0  ;;  %v2355_v52 = vadd.f32 %v2277_v7, %v4917_v17 }
 0x462   :  { %v2363_v61 = vadd.f32 %v2265_v40, %v2090_v43 }
 0x465   :  { %v2251_v26 = vpop.f32.mrf.mxu3 }
 0x466   :  { %v2291_v22 = vpop.f32.mrf.mxu2  ;;  %v2362_v23 = vadd.f32 %v2251_v26, %v2076_v8 }
 0x468   :  { %v4941_v28 = vpop.f32.mrf.mxu1 }
 0x469   :  { %v4943_v30 = vpop.f32.mrf.mxu0 }
 0x46d   :  { %v2305_v25 = vpop.f32.mrf.mxu3 }
 0x46e   :  { %v4945_v49 = vpop.f32.mrf.mxu2  ;;  %v2357_v55 = vadd.f32 %v2305_v25, %v4923_v35  ;;  %v2132_v35 = vadd.f32 %v4929_v42, %v4909_v3  ;;  %v2356_v25 = vadd.f32 %v2291_v22, %v4921_v48  ;;  %v2358_v48 = vadd.f32 %v4943_v30, %v4931_v0 }
 0x46f   :  { %v2146_v30 = vadd.f32 %v4937_v4, %v4911_v1 }
 0x470   :  { %v4949_v50 = vpop.f32.mrf.mxu1 }
 0x471   :  { %v4947_v18 = vpop.f32.mrf.mxu0 }
 0x472   :  { %v2367_v4 = vadd.f32 %v4947_v18, %v2146_v30 }
 0x475   :  { %v4951_v36 = vpop.f32.mrf.mxu3 }
 0x476   :  { %v4953_v5 = vpop.f32.mrf.mxu2  ;;  %v2366_v42 = vadd.f32 %v4951_v36, %v2132_v35  ;;  %v2359_v36 = vadd.f32 %v4949_v50, %v4927_v39 }
 0x477   :  { %v2360_v35 = vadd.f32 %v4953_v5, %v4935_v21 }
 0x478   :  { %v4955_v57 = vpop.f32.mrf.mxu1 }
 0x479   :  { %v2443_v62 = vpop.f32.mrf.mxu0 }
 0x47a   :  { %v2547_v60 = vadd.f32 %v2443_v62, %v2353_v32 }
 0x47c   :  { %v2577_v37 = vadd.f32 %v4957_v41, %v2547_v60 }
 0x47d   :  { %v2429_v47 = vpop.f32.mrf.mxu3 }
 0x47e   :  { %v4961_v51 = vpop.f32.mrf.mxu2  ;;  %v2546_v29 = vadd.f32 %v2429_v47, %v2352_v63  ;;  %v2613_v38 = vmul.f32 0.1, %v2577_v37  ;;  %vm2595_vm0 = vcmp.ge.f32.partialorder %v2577_v37, 0.0 }
 0x480   :  { %v2576_v12 = vadd.f32 %v4957_v41, %v2546_v29  ;;  %v2457_v14 = vpop.f32.mrf.mxu1  ;;  %v2631_v16 = vsel %vm2595_vm0, %v2577_v37, %v2613_v38  ;;  %v2104_v29 = vadd.f32 %v4919_v31, %v4907_v20 }
 0x481   :  { %v2445_v56 = vpop.f32.mrf.mxu0  ;;  %v2548_v13 = vadd.f32 %v2457_v14, %v2354_v33 }
 0x482   :  { %v2556_v46 = vadd.f32 %v2445_v56, %v2362_v23  ;;  %vm2594_vm2 = vcmp.ge.f32.partialorder %v2576_v12, 0.0  ;;  %v2612_v58 = vmul.f32 0.1, %v2576_v12  ;;  %v2364_v14 = vadd.f32 %v4941_v28, %v2104_v29 }
 0x483   :  { %v2578_v26 = vadd.f32 %v4957_v41, %v2548_v13  ;;  %v2160_v29 = vadd.f32 %v4933_v11, %v4915_v19 }
 0x484   :  { %v2630_v9 = vsel %vm2594_vm2, %v2576_v12, %v2612_v58  ;;  %v2586_v27 = vadd.f32 %v4965_v59, %v2556_v46 }
 0x485   :  { %v2648_v34 = vpack.c.bf16 %v2631_v16, %v2630_v9  ;;  %v2431_v32 = vpop.f32.mrf.mxu3  ;;  %v2614_v54 = vmul.f32 0.1, %v2578_v26  ;;  %vm2596_vm4 = vcmp.ge.f32.partialorder %v2578_v26, 0.0 }
 0x486   :  { %v2555_v62 = vadd.f32 %v2431_v32, %v2361_v45  ;;  %v2471_v60 = vpop.f32.mrf.mxu2  ;;  %vm2604_vm3 = vcmp.ge.f32.partialorder %v2586_v27, 0.0  ;;  %v2622_v2 = vmul.f32 0.1, %v2586_v27  ;;  %v2118_v45 = vadd.f32 %v4925_v15, %v4905_v53 }
 0x487   :  { %2658 = vst [vmem:[#allocation2] sm:$0xff] %v2648_v34  ;;  %v2549_v63 = vadd.f32 %v2471_v60, %v2355_v52  ;;  %v2632_v20 = vsel %vm2596_vm4, %v2578_v26, %v2614_v54 }
 0x488   :  { %v2585_v37 = vadd.f32 %v4965_v59, %v2555_v62  ;;  %v2459_v8 = vpop.f32.mrf.mxu1  ;;  %v2640_v23 = vsel %vm2604_vm3, %v2586_v27, %v2622_v2  ;;  %v2365_v53 = vadd.f32 %v4945_v49, %v2118_v45 }
 0x489   :  { %v2499_v47 = vpop.f32.mrf.mxu0  ;;  %v2579_v17 = vadd.f32 %v4957_v41, %v2549_v63  ;;  %v2557_v24 = vadd.f32 %v2459_v8, %v2363_v61 }
 0x48a   :  { %v2551_v7 = vadd.f32 %v2499_v47, %v2357_v55  ;;  %vm2603_vm5 = vcmp.ge.f32.partialorder %v2585_v37, 0.0  ;;  %v2621_v40 = vmul.f32 0.1, %v2585_v37 }
 0x48b   :  { %vm2597_vm6 = vcmp.ge.f32.partialorder %v2579_v17, 0.0  ;;  %v2615_v33 = vmul.f32 0.1, %v2579_v17  ;;  %v2587_v38 = vadd.f32 %v4965_v59, %v2557_v24 }
 0x48c   :  { %v2639_v12 = vsel %vm2603_vm5, %v2585_v37, %v2621_v40  ;;  %v2581_v56 = vadd.f32 %v4957_v41, %v2551_v7  ;;  %vm2750_vm5 = vcmask 982016  }
 0x48d   :  { %v2653_v31 = vpack.c.bf16 %v2640_v23, %v2639_v12  ;;  %v2633_v46 = vsel %vm2597_vm6, %v2579_v17, %v2615_v33  ;;  %v2485_v13 = vpop.f32.mrf.mxu3  ;;  %v2623_v9 = vmul.f32 0.1, %v2587_v38  ;;  %vm2605_vm8 = vcmp.ge.f32.partialorder %v2587_v38, 0.0 }
 0x48e   :  { %v2649_v6 = vpack.c.bf16 %v2633_v46, %v2632_v20  ;;  %v2473_v58 = vpop.f32.mrf.mxu2  ;;  %v2550_v3 = vadd.f32 %v2485_v13, %v2356_v25  ;;  %v2617_v28 = vmul.f32 0.1, %v2581_v56  ;;  %vm2599_vm7 = vcmp.ge.f32.partialorder %v2581_v56, 0.0 }
 0x48f   :  { %2663 = vst [vmem:[#allocation2 + $0x2c] sm:$0xff] %v2653_v31  ;;  %v2558_v22 = vadd.f32 %v2473_v58, %v2364_v14  ;;  %v2641_v61 = vsel %vm2605_vm8, %v2587_v38, %v2623_v9  ;;  %v2368_v25 = vadd.f32 %v4955_v57, %v2160_v29  ;;  %vm3124_vm6 = vcmask 523264  }
 0x490   :  { %2659 = vst [vmem:[#allocation2 + $0x8] sm:$0xff] %v2649_v6  ;;  %v2580_v16 = vadd.f32 %v4957_v41, %v2550_v3  ;;  %v2513_v43 = vpop.f32.mrf.mxu1  ;;  %v2635_v32 = vsel %vm2599_vm7, %v2581_v56, %v2617_v28 }
 0x491   :  { %v2501_v27 = vpop.f32.mrf.mxu0  ;;  %v2588_v52 = vadd.f32 %v4965_v59, %v2558_v22  ;;  %v2552_v26 = vadd.f32 %v2513_v43, %v2358_v48  ;;  %v2174_v22 = vadd.f32 %v4939_v44, %v4913_v10 }
 0x492   :  { %v2560_v34 = vadd.f32 %v2501_v27, %v2366_v42  ;;  %vm2598_vm9 = vcmp.ge.f32.partialorder %v2580_v16, 0.0  ;;  %v2616_v0 = vmul.f32 0.1, %v2580_v16 }
 0x493   :  { %vm2606_vm10 = vcmp.ge.f32.partialorder %v2588_v52, 0.0  ;;  %v2624_v15 = vmul.f32 0.1, %v2588_v52  ;;  %v2582_v2 = vadd.f32 %v4957_v41, %v2552_v26  ;;  %v2369_v9 = vadd.f32 %v4961_v51, %v2174_v22 }
 0x494   :  { %v2634_v62 = vsel %vm2598_vm9, %v2580_v16, %v2616_v0  ;;  %v2590_v60 = vadd.f32 %v4965_v59, %v2560_v34 }
 0x495   :  { %v2642_v55 = vsel %vm2606_vm10, %v2588_v52, %v2624_v15  ;;  %v2650_v63 = vpack.c.bf16 %v2635_v32, %v2634_v62  ;;  %v2487_v37 = vpop.f32.mrf.mxu3  ;;  %v2618_v17 = vmul.f32 0.1, %v2582_v2  ;;  %vm2600_vm12 = vcmp.ge.f32.partialorder %v2582_v2, 0.0  ;;  %v3903_v15 = vld [vmem:[#allocation2] sm:$0xf] }
 0x496   :  { %v2654_v8 = vpack.c.bf16 %v2642_v55, %v2641_v61  ;;  %v2559_v47 = vadd.f32 %v2487_v37, %v2365_v53  ;;  %v2527_v1 = vpop.f32.mrf.mxu2  ;;  %v2626_v54 = vmul.f32 0.1, %v2590_v60  ;;  %vm2608_vm11 = vcmp.ge.f32.partialorder %v2590_v60, 0.0  ;;  %v4086_v10 = vld [vmem:[#allocation2 + $0x28] sm:$0xf0] }
 0x497   :  { %2660 = vst [vmem:[#allocation2 + $0x10] sm:$0xff] %v2650_v63  ;;  %v2553_v49 = vadd.f32 %v2527_v1, %v2359_v36  ;;  %v2636_v12 = vsel %vm2600_vm12, %v2582_v2, %v2618_v17  ;;  %v3911_v46 = vld [vmem:[#allocation2 + $0x8] sm:$0xf]  ;;  %v4083_v13 = vld [vmem:[#allocation2 + $0xc] sm:$0xf]  ;;  %v5022_v51 = vor.u32 %v4086_v10, %v3903_v15 }
 0x498   :  { %2664 = vst [vmem:[#allocation2 + $0x34] sm:$0xff] %v2654_v8  ;;  %v2589_v39 = vadd.f32 %v4965_v59, %v2559_v47  ;;  %v2515_v50 = vpop.f32.mrf.mxu1  ;;  %v2644_v33 = vsel %vm2608_vm11, %v2590_v60, %v2626_v54  ;;  %v3905_v44 = vld [vmem:[#allocation2 + $0x2c] sm:$0xf0]  ;;  %v4082_v36 = vld [vmem:[#allocation2 + $0x4] sm:$0xf] }
 0x499   :  { %v2583_v24 = vadd.f32 %v4957_v41, %v2553_v49  ;;  %v2561_v7 = vadd.f32 %v2515_v50, %v2367_v4  ;;  %v5024_v62 = vor.u32 %v4082_v36, %v3905_v44  ;;  %v4092_v1 = vld [vmem:[#allocation2 + $0x24] sm:$0xf]  ;;  %v3937_v4 = vld [vmem:[#allocation2 + $0x4c] sm:$0xf0] }
 0x49a   :  { %vm2607_vm13 = vcmp.ge.f32.partialorder %v2589_v39, 0.0  ;;  %v2625_v40 = vmul.f32 0.1, %v2589_v39  ;;  %v3940_v54 = vor.u32 %v4092_v1, %v3937_v4  ;;  %v4100_v29 = vld [vmem:[#allocation2 + $0x2c] sm:$0xf0] }
 0x49b   :  { %vm2601_vm15 = vcmp.ge.f32.partialorder %v2583_v24, 0.0  ;;  %v2619_v18 = vmul.f32 0.1, %v2583_v24  ;;  %v2591_v14 = vadd.f32 %v4965_v59, %v2561_v7 }
 0x49c   :  { %v2643_v23 = vsel %vm2607_vm13, %v2589_v39, %v2625_v40 }
 0x49d   :  { %v2655_v38 = vpack.c.bf16 %v2644_v33, %v2643_v23  ;;  %v2637_v56 = vsel %vm2601_vm15, %v2583_v24, %v2619_v18  ;;  %v2541_v20 = vpop.f32.mrf.mxu3  ;;  %v2627_v48 = vmul.f32 0.1, %v2591_v14  ;;  %vm2609_vm0 = vcmp.ge.f32.partialorder %v2591_v14, 0.0  ;;  %v3983_v33 = vld [vmem:[#allocation2 + $0xc] sm:$0xf] }
 0x49e   :  { %v2651_v31 = vpack.c.bf16 %v2637_v56, %v2636_v12  ;;  %v2529_v19 = vpop.f32.mrf.mxu2  ;;  %v2554_v11 = vadd.f32 %v2541_v20, %v2360_v35  ;;  %v3919_v0 = vld [vmem:[#allocation2 + $0x10] sm:$0xf]  ;;  %v4084_v17 = vld [vmem:[#allocation2 + $0x14] sm:$0xf]  ;;  %v3975_v35 = vld [vmem:[#allocation2 + $0x4] sm:$0xf] }
 0x49f   :  { %2665 = vst [vmem:[#allocation2 + $0x3c] sm:$0xff] %v2655_v38  ;;  %v2562_v6 = vadd.f32 %v2529_v19, %v2368_v25  ;;  %v4087_v58 = vld [vmem:[#allocation2 + $0x30] sm:$0xf0]  ;;  %v3913_v3 = vld [vmem:[#allocation2 + $0x34] sm:$0xf0]  ;;  %v2645_v16 = vsel %vm2609_vm0, %v2591_v14, %v2627_v48  ;;  %v3976_v23 = vor.u32 %v4100_v29, %v3975_v35 }
 0x4a0   :  { %2661 = vst [vmem:[#allocation2 + $0x18] sm:$0xff] %v2651_v31  ;;  %v2584_v21 = vadd.f32 %v4957_v41, %v2554_v11  ;;  %v5007_v5 = vor.u32 %v4087_v58, %v3911_v46  ;;  %v5009_v57 = vor.u32 %v4083_v13, %v3913_v3  ;;  %v3977_v40 = vld [vmem:[#allocation2 + $0x30] sm:$0xf0]  ;;  %v4101_v18 = vld [vmem:[#allocation2 + $0x34] sm:$0xf0] }
 0x4a1   :  { %v2592_v42 = vadd.f32 %v4965_v59, %v2562_v6  ;;  %v4095_v25 = vld [vmem:[#allocation2 + $0x8] sm:$0xf]  ;;  %v3984_v38 = vor.u32 %v4101_v18, %v3983_v33  ;;  %v3991_v31 = vld [vmem:[#allocation2 + $0x14] sm:$0xf]  ;;  %v4007_v58 = vld [vmem:[#allocation2 + $0x24] sm:$0xf] }
 0x4a2   :  { %vm2602_vm2 = vcmp.ge.f32.partialorder %v2584_v21, 0.0  ;;  %v2620_v45 = vmul.f32 0.1, %v2584_v21  ;;  %2734 = vrot.lane.b32.xlu1 %v5007_v5, %s4132_s5  ;;  %2736 = vrot.lane.b32.xlu2 %v5009_v57, %s4132_s5  ;;  %v3980_v12 = vor.u32 %v4095_v25, %v3977_v40  ;;  %v4104_v3 = vld [vmem:[#allocation2 + $0x4c] sm:$0xf0] }
 0x4a3   :  { %vm2610_vm3 = vcmp.ge.f32.partialorder %v2592_v42, 0.0  ;;  %v2628_v41 = vmul.f32 0.1, %v2592_v42  ;;  %v4009_v48 = vld [vmem:[#allocation2 + $0x50] sm:$0xf0]  ;;  %v4008_v22 = vor.u32 %v4104_v3, %v4007_v58 }
 0x4a4   :  { %v2638_v28 = vsel %vm2602_vm2, %v2584_v21, %v2620_v45  ;;  %v4099_v21 = vld [vmem:[#allocation2 + $0x28] sm:$0xf] }
 0x4a5   :  { %v2646_v27 = vsel %vm2610_vm3, %v2592_v42, %v2628_v41  ;;  %v2652_v43 = vpack.c.bf16 %v2638_v28, %v2638_v28  ;;  %v2543_v52 = vpop.f32.mrf.mxu3  ;;  %v4012_v45 = vor.u32 %v4099_v21, %v4009_v48  ;;  %v4096_v41 = vld [vmem:[#allocation2 + $0x10] sm:$0xf] }
 0x4a6   :  { %v2656_v34 = vpack.c.bf16 %v2646_v27, %v2645_v16  ;;  %v2563_v26 = vadd.f32 %v2543_v52, %v2369_v9  ;;  %v4088_v30 = vld [vmem:[#allocation2 + $0x38] sm:$0xf0]  ;;  %v3921_v49 = vld [vmem:[#allocation2 + $0x3c] sm:$0xf0]  ;;  %v3484_v52 = vld [vmem:[%s5319_s8 + $0x8] sm:$0xff] }
 0x4a7   :  { %2662 = vst [vmem:[#allocation2 + $0x20] sm:$0xf] %v2652_v43  ;;  %v5019_v53 = vor.u32 %v4088_v30, %v3919_v0  ;;  %v3927_v63 = vld [vmem:[#allocation2 + $0x18] sm:$0xf]  ;;  %v4085_v2 = vld [vmem:[#allocation2 + $0x1c] sm:$0xf]  ;;  %v5040_v7 = vor.u32 %v4084_v17, %v3921_v49 }
 0x4a8   :  { %2666 = vst [vmem:[#allocation2 + $0x44] sm:$0xff] %v2656_v34  ;;  %v2593_v32 = vadd.f32 %v4965_v59, %v2563_v26  ;;  %v4102_v56 = vld [vmem:[#allocation2 + $0x3c] sm:$0xf0]  ;;  %v4097_v19 = vld [vmem:[#allocation2 + $0x18] sm:$0xf]  ;;  %v4094_v30 = vld [vmem:[%s5320_s7 + $0x8] sm:$0xff] }
 0x4a9   :  { %2738 = vrot.lane.b32.xlu0 %v5019_v53, %s4132_s5  ;;  %v3999_v11 = vld [vmem:[#allocation2 + $0x1c] sm:$0xf]  ;;  %v3992_v46 = vor.u32 %v4102_v56, %v3991_v31  ;;  %v3483_v43 = vld [vmem:[%s5319_s8] sm:$0xff] }
 0x4aa   :  { %vm2611_vm4 = vcmp.ge.f32.partialorder %v2593_v32, 0.0  ;;  %v2629_v60 = vmul.f32 0.1, %v2593_v32  ;;  %2730 = vrot.lane.b32.xlu1 %v5022_v51, %s4132_s5  ;;  %2732 = vrot.lane.b32.xlu2 %v5024_v62, %s4132_s5  ;;  %v3985_v42 = vld [vmem:[#allocation2 + $0x38] sm:$0xf0] }
 0x4ab   :  { %v3988_v9 = vor.u32 %v4096_v41, %v3985_v42 }
 0x4ac   :  { %v2647_v61 = vsel %vm2611_vm4, %v2593_v32, %v2629_v60 }
 0x4ad   :  { %v2657_v55 = vpack.c.bf16 %v2647_v61, %v2647_v61 }
 0x4ae   :  { %v3935_v39 = vld [vmem:[#allocation2 + $0x20] sm:$0xf] }
 0x4af   :  { %2667 = vst [vmem:[#allocation2 + $0x4c] sm:$0xf] %v2657_v55  ;;  %v4089_v59 = vld [vmem:[#allocation2 + $0x40] sm:$0xf0]  ;;  %v3929_v37 = vld [vmem:[#allocation2 + $0x44] sm:$0xf0] }
 0x4b0   :  { %v5032_v8 = vor.u32 %v4089_v59, %v3927_v63  ;;  %v5034_v47 = vor.u32 %v4085_v2, %v3929_v37  ;;  %v3993_v14 = vld [vmem:[#allocation2 + $0x40] sm:$0xf0]  ;;  %v4103_v20 = vld [vmem:[#allocation2 + $0x44] sm:$0xf0]  ;;  %v4098_v16 = vld [vmem:[#allocation2 + $0x20] sm:$0xf] }
 0x4b1   :  { %v3996_v13 = vor.u32 %v4097_v19, %v3993_v14  ;;  %v4000_v6 = vor.u32 %v4103_v20, %v3999_v11 }
 0x4b2   :  { %2742 = vrot.lane.b32.xlu0 %v5032_v8, %s4132_s5  ;;  %2744 = vrot.lane.b32.xlu1 %v5034_v47, %s4132_s5 }
 0x4b6   :  { %v4093_v50 = vld [vmem:[#allocation2 + $0x48] sm:$0xf0] }
 0x4b7   :  { %v3936_v24 = vor.u32 %v4093_v50, %v3935_v39  ;;  %v4001_v28 = vld [vmem:[#allocation2 + $0x48] sm:$0xf0] }
 0x4b8   :  { %v4004_v27 = vor.u32 %v4098_v16, %v4001_v28  ;;  %v4090_v50 = vld [vmem:[#allocation2 + $0x48] sm:$0xf0] }
 0x4b9   :  { %2746 = vrot.lane.b32.xlu2 %v3936_v24, %s4132_s5  ;;  %v3956_v24 = vld [vmem:[#allocation2 + $0x20] sm:$0xf] }
 0x4ba   :  { %2740 = vrot.lane.b32.xlu0 %v5040_v7, %s4132_s5  ;;  %2748 = vrot.lane.b32.xlu1 %v3940_v54, %s4132_s5 }
 0x4c1   :  { %3104 = vrot.lane.b32.xlu2 %v3976_v23, %s4133_s6 }
 0x4c2   :  { %3106 = vrot.lane.b32.xlu0 %v3980_v12, %s4133_s6  ;;  %3108 = vrot.lane.b32.xlu1 %v3984_v38, %s4133_s6 }
 0x4c9   :  { %3112 = vrot.lane.b32.xlu2 %v3992_v46, %s4133_s6 }
 0x4ca   :  { %3114 = vrot.lane.b32.xlu0 %v3996_v13, %s4133_s6  ;;  %3116 = vrot.lane.b32.xlu1 %v4000_v6, %s4133_s6 }
 0x4d1   :  { %3110 = vrot.lane.b32.xlu2 %v3988_v9, %s4133_s6 }
 0x4d2   :  { %3120 = vrot.lane.b32.xlu0 %v4008_v22, %s4133_s6  ;;  %3122 = vrot.lane.b32.xlu1 %v4012_v45, %s4133_s6 }
 0x4d9   :  { %3298 = vrot.lane.b32.xlu2 %v3976_v23, %s4130_s16 }
 0x4da   :  { %3300 = vrot.lane.b32.xlu0 %v3980_v12, %s4130_s16  ;;  %3118 = vrot.lane.b32.xlu1 %v4004_v27, %s4133_s6  ;;  %v4105_v12 = vld [vmem:[%s5320_s7 + $0x10] sm:$0xff] }
 0x4e1   :  { %3304 = vrot.lane.b32.xlu2 %v3988_v9, %s4130_s16  ;;  %v4106_v9 = vld [vmem:[%s5320_s7 + $0x18] sm:$0xff] }
 0x4e2   :  { %3306 = vrot.lane.b32.xlu0 %v3992_v46, %s4130_s16  ;;  %3308 = vrot.lane.b32.xlu1 %v3996_v13, %s4130_s16 }
 0x4e9   :  { %3302 = vrot.lane.b32.xlu2 %v3984_v38, %s4130_s16 }
 0x4ea   :  { %3312 = vrot.lane.b32.xlu0 %v4004_v27, %s4130_s16  ;;  %3314 = vrot.lane.b32.xlu1 %v4008_v22, %s4130_s16 }
 0x4f1   :  { %3316 = vrot.lane.b32.xlu2 %v4012_v45, %s4130_s16 }
 0x4f2   :  { %3310 = vrot.lane.b32.xlu0 %v4000_v6, %s4130_s16  ;;  %3487 = vperm.xlu1 %4120, %v3483_v43  }
 0x4f9   :  { %3492 = vperm.xlu2 %4121, %v3484_v52  }
 0x4fc   :  { %v2737_v10 = vpop.permute.xlu2 %2736 }
 0x504   :  { %v2733_v44 = vpop.permute.xlu2 %2732 }
 0x513   :  { %v2747_v61 = vpop.permute.xlu2 %2746 }
 0x514   :  { %v2735_v34 = vpop.permute.xlu1 %2734 }
 0x515   :  { %v2752_v26 = vsel %vm2750_vm5, %v2733_v44, %v2735_v34  ;;  %v2753_v0 = vsel %vm2750_vm5, %v2735_v34, %v2737_v10 }
 0x516   :  { %2793 = vmatpush.bf16.msrb.mxu1 %v2752_v26  ;;  %2807 = vmatpush.bf16.msrb.mxu2 %v2753_v0 }
 0x519   :  { %3943 = vmatmul.msk.bf16.vlgmr.msrb.gmra.mxu2 %vm158_vm1, %v4094_v30  ;;  %3942 = vmatmul.msk.bf16.vlgmr.msrb.gmra.mxu1 %vm158_vm1, %v4094_v30 }
 0x51b   :  { %v2739_v15 = vpop.permute.xlu0 %2738  ;;  %v3105_v39 = vpop.permute.xlu2 %3104 }
 0x51c   :  { %v2754_v36 = vsel %vm2750_vm5, %v2737_v10, %v2739_v15  ;;  %v2731_v32 = vpop.permute.xlu1 %2730 }
 0x51d   :  { %v2751_v60 = vsel %vm2750_vm5, %v2731_v32, %v2733_v44  ;;  %2821 = vmatpush.bf16.msrb.mxu3 %v2754_v36 }
 0x51e   :  { %2779 = vmatpush.bf16.msrb.mxu0 %v2751_v60 }
 0x520   :  { %3944 = vmatmul.msk.bf16.vlgmr.msrb.gmra.mxu3 %vm158_vm1, %v4094_v30 }
 0x521   :  { %3941 = vmatmul.msk.bf16.vlgmr.msrb.gmra.mxu0 %vm158_vm1, %v4094_v30 }
 0x524   :  { %v2743_v55 = vpop.permute.xlu0 %2742  ;;  %v2745_v63 = vpop.permute.xlu1 %2744 }
 0x525   :  { %v2757_v2 = vsel %vm2750_vm5, %v2743_v55, %v2745_v63  ;;  %v2758_v59 = vsel %vm2750_vm5, %v2745_v63, %v2747_v61 }
 0x526   :  { %2863 = vmatpush.bf16.msra.mxu2 %v2757_v2  ;;  %2877 = vmatpush.bf16.msra.mxu3 %v2758_v59 }
 0x529   :  { %3947 = vmatmul.msk.bf16.vlgmr.msra.gmra.mxu2 %vm158_vm1, %v4094_v30 }
 0x52a   :  { %2941 = vmatpush.bf16.msrb.mxu2 %v5024_v62  ;;  %2955 = vmatpush.bf16.msrb.mxu3 %v5007_v5  ;;  %v4091_v5 = vld [vmem:[%s5320_s7] sm:$0xff] }
 0x52c   :  { %v2741_v37 = vpop.permute.xlu0 %2740  ;;  %v2749_v1 = vpop.permute.xlu1 %2748 }
 0x52d   :  { %v2755_v4 = vsel %vm2750_vm5, %v2739_v15, %v2741_v37  ;;  %v2756_v49 = vsel %vm2750_vm5, %v2741_v37, %v2743_v55  ;;  %v2759_v54 = vsel %vm2750_vm5, %v2747_v61, %v2749_v1 }
 0x52e   :  { %2997 = vmatpush.bf16.msra.mxu2 %v5040_v7  ;;  %2835 = vmatpush.bf16.msra.mxu0 %v2755_v4 }
 0x52f   :  { %2849 = vmatpush.bf16.msra.mxu1 %v2756_v49 }
 0x530   :  { %3948 = vmatmul.msk.bf16.vlgmr.msra.gmra.mxu3 %vm158_vm1, %v4094_v30 }
 0x531   :  { %3945 = vmatmul.msk.bf16.vlgmr.msra.gmra.mxu0 %vm158_vm1, %v4094_v30  ;;  %3011 = vmatpush.bf16.msra.mxu3 %v5032_v8  ;;  %v3113_v8 = vpop.permute.xlu2 %3112 }
 0x532   :  { %2891 = vmatpush.bf16.msrb.mxu0 %v2759_v54  ;;  %3946 = vmatmul.msk.bf16.vlgmr.msra.gmra.mxu1 %vm158_vm1, %v4094_v30 }
 0x533   :  { %2927 = vmatpush.bf16.msrb.mxu1 %v5022_v51 }
 0x534   :  { %v3107_v62 = vpop.permute.xlu0 %3106  ;;  %v3109_v17 = vpop.permute.xlu1 %3108 }
 0x535   :  { %v3125_v51 = vsel %vm3124_vm6, %v3105_v39, %v3107_v62 }
 0x536   :  { %2969 = vmatpush.bf16.msra.mxu0 %v5009_v57  ;;  %v3957_v57 = vor.u32 %v4090_v50, %v3956_v24 }
 0x537   :  { %2983 = vmatpush.bf16.msra.mxu1 %v5019_v53  ;;  %v3126_v53 = vsel %vm3124_vm6, %v3107_v62, %v3109_v17 }
 0x539   :  { %3959 = vmatmul.msk.bf16.vlgmr.msrb.gmra.mxu2 %vm158_vm1, %v4091_v5  ;;  %v3111_v18 = vpop.permute.xlu2 %3110 }
 0x53a   :  { %3153 = vmatpush.bf16.msrb.mxu2 %v3125_v51  ;;  %v3128_v35 = vsel %vm3124_vm6, %v3111_v18, %v3113_v8  ;;  %v3127_v25 = vsel %vm3124_vm6, %v3109_v17, %v3111_v18 }
 0x53c   :  { %v3115_v7 = vpop.permute.xlu0 %3114  ;;  %v3117_v40 = vpop.permute.xlu1 %3116 }
 0x53d   :  { %v3129_v29 = vsel %vm3124_vm6, %v3113_v8, %v3115_v7 }
 0x540   :  { %3960 = vmatmul.msk.bf16.vlgmr.msrb.gmra.mxu3 %vm158_vm1, %v4091_v5 }
 0x541   :  { %3949 = vmatmul.msk.bf16.vlgmr.msrb.gmra.mxu0 %vm158_vm1, %v4094_v30  ;;  %3167 = vmatpush.bf16.msrb.mxu3 %v3126_v53  ;;  %v3299_v56 = vpop.permute.xlu2 %3298 }
 0x542   :  { %3958 = vmatmul.msk.bf16.vlgmr.msrb.gmra.mxu1 %vm158_vm1, %v4091_v5  ;;  %3025 = vmatpush.bf16.msrb.mxu0 %v5034_v47  ;;  %v3130_v47 = vsel %vm3124_vm6, %v3115_v7, %v3117_v40 }
 0x543   :  { %3039 = vmatpush.bf16.msrb.mxu1 %v3957_v57 }
 0x544   :  { %v3121_v33 = vpop.permute.xlu0 %3120  ;;  %v3123_v23 = vpop.permute.xlu1 %3122 }
 0x545   :  { %v3133_v38 = vsel %vm3124_vm6, %v3121_v33, %v3123_v23 }
 0x549   :  { %3963 = vmatmul.msk.bf16.vlgmr.msra.gmra.mxu2 %vm158_vm1, %v4091_v5  ;;  %v3305_v46 = vpop.permute.xlu2 %3304 }
 0x54a   :  { %3209 = vmatpush.bf16.msra.mxu2 %v3129_v29 }
 0x54c   :  { %v3301_v14 = vpop.permute.xlu0 %3300  ;;  %v3119_v20 = vpop.permute.xlu1 %3118 }
 0x54d   :  { %v3131_v31 = vsel %vm3124_vm6, %v3117_v40, %v3119_v20  ;;  %v3132_v19 = vsel %vm3124_vm6, %v3119_v20, %v3121_v33  ;;  %v3318_v11 = vsel %vm2204_vm14, %v3299_v56, %v3301_v14 }
 0x550   :  { %3964 = vmatmul.msk.bf16.vlgmr.msra.gmra.mxu3 %vm158_vm1, %v4091_v5 }
 0x551   :  { %3961 = vmatmul.msk.bf16.vlgmr.msra.gmra.mxu0 %vm158_vm1, %v4091_v5  ;;  %3223 = vmatpush.bf16.msra.mxu3 %v3130_v47  ;;  %v3303_v3 = vpop.permute.xlu2 %3302 }
 0x552   :  { %3962 = vmatmul.msk.bf16.vlgmr.msra.gmra.mxu1 %vm158_vm1, %v4091_v5  ;;  %3181 = vmatpush.bf16.msra.mxu0 %v3127_v25  ;;  %v3320_v21 = vsel %vm2204_vm14, %v3303_v3, %v3305_v46  ;;  %v3319_v48 = vsel %vm2204_vm14, %v3301_v14, %v3303_v3 }
 0x553   :  { %3195 = vmatpush.bf16.msra.mxu1 %v3128_v35 }
 0x554   :  { %v3307_v13 = vpop.permute.xlu0 %3306  ;;  %v3309_v58 = vpop.permute.xlu1 %3308 }
 0x555   :  { %v3321_v6 = vsel %vm2204_vm14, %v3305_v46, %v3307_v13  ;;  %v3322_v42 = vsel %vm2204_vm14, %v3307_v13, %v3309_v58 }
 0x559   :  { %4013 = vmatmul.msk.bf16.vlgmr.msrb.gmra.mxu2 %vm158_vm1, %v4105_v12  ;;  %v3317_v16 = vpop.permute.xlu2 %3316 }
 0x55a   :  { %3265 = vmatpush.bf16.msrb.mxu2 %v3133_v38 }
 0x55c   :  { %v3313_v22 = vpop.permute.xlu0 %3312  ;;  %v3315_v45 = vpop.permute.xlu1 %3314 }
 0x55d   :  { %v3325_v41 = vsel %vm2204_vm14, %v3313_v22, %v3315_v45  ;;  %v3326_v27 = vsel %vm2204_vm14, %v3315_v45, %v3317_v16 }
 0x560   :  { %4014 = vmatmul.msk.bf16.vlgmr.msrb.gmra.mxu3 %vm158_vm1, %v4105_v12 }
 0x561   :  { %3965 = vmatmul.msk.bf16.vlgmr.msrb.gmra.mxu0 %vm158_vm1, %v4091_v5  ;;  %3346 = vmatpush.bf16.msrb.mxu3 %v3318_v11 }
 0x562   :  { %3966 = vmatmul.msk.bf16.vlgmr.msrb.gmra.mxu1 %vm158_vm1, %v4091_v5  ;;  %3237 = vmatpush.bf16.msrb.mxu0 %v3131_v31 }
 0x563   :  { %3251 = vmatpush.bf16.msrb.mxu1 %v3132_v19 }
 0x564   :  { %v3311_v28 = vpop.permute.xlu0 %3310 }
 0x565   :  { %v3323_v43 = vsel %vm2204_vm14, %v3309_v58, %v3311_v28  ;;  %v3324_v52 = vsel %vm2204_vm14, %v3311_v28, %v3313_v22 }
 0x569   :  { %4017 = vmatmul.msk.bf16.vlgmr.msra.gmra.mxu2 %vm158_vm1, %v4105_v12 }
 0x56a   :  { %3388 = vmatpush.bf16.msra.mxu2 %v3321_v6 }
 0x570   :  { %4018 = vmatmul.msk.bf16.vlgmr.msra.gmra.mxu3 %vm158_vm1, %v4105_v12 }
 0x571   :  { %4015 = vmatmul.msk.bf16.vlgmr.msra.gmra.mxu0 %vm158_vm1, %v4105_v12  ;;  %3402 = vmatpush.bf16.msra.mxu3 %v3322_v42 }
 0x572   :  { %4016 = vmatmul.msk.bf16.vlgmr.msra.gmra.mxu1 %vm158_vm1, %v4105_v12  ;;  %3360 = vmatpush.bf16.msra.mxu0 %v3319_v48 }
 0x573   :  { %3374 = vmatpush.bf16.msra.mxu1 %v3320_v21 }
 0x579   :  { %4021 = vmatmul.msk.bf16.vlgmr.msrb.gmra.mxu2 %vm158_vm1, %v4105_v12 }
 0x57a   :  { %3444 = vmatpush.bf16.msrb.mxu2 %v3325_v41 }
 0x580   :  { %4028 = vmatmul.msk.bf16.vlgmr.msrb.gmra.mxu3 %vm158_vm1, %v4106_v9 }
 0x581   :  { %4019 = vmatmul.msk.bf16.vlgmr.msrb.gmra.mxu0 %vm158_vm1, %v4105_v12  ;;  %3458 = vmatpush.bf16.msrb.mxu3 %v3326_v27 }
 0x582   :  { %4020 = vmatmul.msk.bf16.vlgmr.msrb.gmra.mxu1 %vm158_vm1, %v4105_v12  ;;  %3416 = vmatpush.bf16.msrb.mxu0 %v3323_v43 }
 0x583   :  { %3430 = vmatpush.bf16.msrb.mxu1 %v3324_v52 }
 0x589   :  { %4031 = vmatmul.msk.bf16.vlgmr.msra.gmra.mxu2 %vm158_vm1, %v4106_v9 }
 0x590   :  { %4032 = vmatmul.msk.bf16.vlgmr.msra.gmra.mxu3 %vm158_vm1, %v4106_v9 }
 0x591   :  { %4029 = vmatmul.msk.bf16.vlgmr.msra.gmra.mxu0 %vm158_vm1, %v4106_v9 }
 0x592   :  { %4030 = vmatmul.msk.bf16.vlgmr.msra.gmra.mxu1 %vm158_vm1, %v4106_v9 }
 0x596   :  { %v2795_v44 = vpop.f32.mrf.mxu1 }
 0x599   :  { %4035 = vmatmul.msk.bf16.vlgmr.msrb.gmra.mxu2 %vm158_vm1, %v4106_v9 }
 0x59c   :  { %v2809_v10 = vpop.f32.mrf.mxu2 }
 0x59e   :  { %v2781_v34 = vpop.f32.mrf.mxu0  ;;  %v2797_v15 = vpop.f32.mrf.mxu1 }
 0x5a0   :  { %4036 = vmatmul.msk.bf16.vlgmr.msrb.gmra.mxu3 %vm158_vm1, %v4106_v9 }
 0x5a1   :  { %4033 = vmatmul.msk.bf16.vlgmr.msrb.gmra.mxu0 %vm158_vm1, %v4106_v9 }
 0x5a2   :  { %4034 = vmatmul.msk.bf16.vlgmr.msrb.gmra.mxu1 %vm158_vm1, %v4106_v9 }
 0x5a3   :  { %v5155_v26 = vpop.f32.mrf.mxu3 }
 0x5a4   :  { %v2811_v0 = vpop.f32.mrf.mxu2 }
 0x5a6   :  { %v2783_v30 = vpop.f32.mrf.mxu0 }
 0x5ab   :  { %v5157_v36 = vpop.f32.mrf.mxu3 }
 0x5ac   :  { %v2865_v32 = vpop.f32.mrf.mxu2 }
 0x5ae   :  { %v2837_v60 = vpop.f32.mrf.mxu0 }
 0x5af   :  { %v2851_v61 = vpop.f32.mrf.mxu1 }
 0x5b3   :  { %v5159_v55 = vpop.f32.mrf.mxu3 }
 0x5b4   :  { %v2867_v63 = vpop.f32.mrf.mxu2 }
 0x5b6   :  { %v2839_v2 = vpop.f32.mrf.mxu0 }
 0x5b7   :  { %v2853_v59 = vpop.f32.mrf.mxu1 }
 0x5bb   :  { %v5161_v37 = vpop.f32.mrf.mxu3 }
 0x5bc   :  { %v2943_v1 = vpop.f32.mrf.mxu2 }
 0x5bd   :  { %v5163_v4 = vadd.f32 %v2943_v1, %v2795_v44 }
 0x5be   :  { %v2893_v49 = vpop.f32.mrf.mxu0 }
 0x5bf   :  { %v2929_v54 = vpop.f32.mrf.mxu1 }
 0x5c0   :  { %v2930_v5 = vadd.f32 %v2929_v54, %v2781_v34 }
 0x5c3   :  { %v2957_v62 = vpop.f32.mrf.mxu3 }
 0x5c4   :  { %v2945_v39 = vpop.f32.mrf.mxu2  ;;  %v5165_v51 = vadd.f32 %v2957_v62, %v2809_v10 }
 0x5c5   :  { %v5167_v50 = vadd.f32 %v2945_v39, %v2797_v15  ;;  %v5205_v15 = vpop.permute.xlu1 %3487  ;;  %v5216_v39 = vpop.permute.xlu2 %3492 }
 0x5c6   :  { %v2895_v17 = vpop.f32.mrf.mxu0 }
 0x5c7   :  { %v2931_v24 = vpop.f32.mrf.mxu1 }
 0x5c8   :  { %v2932_v57 = vadd.f32 %v2931_v24, %v2783_v30 }
 0x5cb   :  { %v2959_v53 = vpop.f32.mrf.mxu3 }
 0x5cc   :  { %v5169_v8 = vadd.f32 %v2959_v53, %v2811_v0  ;;  %v2999_v7 = vpop.f32.mrf.mxu2 }
 0x5cd   :  { %v5171_v29 = vadd.f32 %v2999_v7, %v2851_v61 }
 0x5ce   :  { %v2971_v40 = vpop.f32.mrf.mxu0 }
 0x5cf   :  { %v2985_v18 = vpop.f32.mrf.mxu1 }
 0x5d0   :  { %v5173_v35 = vadd.f32 %v2985_v18, %v2837_v60 }
 0x5d3   :  { %v3013_v25 = vpop.f32.mrf.mxu3 }
 0x5d4   :  { %v3001_v47 = vpop.f32.mrf.mxu2  ;;  %v5175_v33 = vadd.f32 %v3013_v25, %v2865_v32 }
 0x5d5   :  { %v5177_v23 = vadd.f32 %v3001_v47, %v2853_v59 }
 0x5d6   :  { %v2973_v12 = vpop.f32.mrf.mxu0 }
 0x5d7   :  { %v2987_v38 = vpop.f32.mrf.mxu1  ;;  %v2974_v47 = vadd.f32 %v2973_v12, %v5157_v36 }
 0x5d8   :  { %v5179_v56 = vadd.f32 %v2987_v38, %v2839_v2  ;;  %v2972_v2 = vadd.f32 %v2971_v40, %v5155_v26 }
 0x5db   :  { %v3015_v14 = vpop.f32.mrf.mxu3 }
 0x5dc   :  { %v5181_v20 = vadd.f32 %v3015_v14, %v2867_v63  ;;  %v3155_v31 = vpop.f32.mrf.mxu2 }
 0x5dd   :  { %v3272_v44 = vadd.f32 %v3155_v31, %v2930_v5 }
 0x5de   :  { %v5183_v19 = vpop.f32.mrf.mxu0 }
 0x5df   :  { %v3041_v11 = vpop.f32.mrf.mxu1 }
 0x5e0   :  { %v5185_v46 = vadd.f32 %v3041_v11, %v2893_v49 }
 0x5e3   :  { %v3169_v13 = vpop.f32.mrf.mxu3 }
 0x5e4   :  { %v3157_v6 = vpop.f32.mrf.mxu2 }
 0x5e5   :  { %v3281_v59 = vadd.f32 %v3157_v6, %v2932_v57 }
 0x5e6   :  { %v5187_v58 = vpop.f32.mrf.mxu0 }
 0x5e7   :  { %v3043_v3 = vpop.f32.mrf.mxu1 }
 0x5e8   :  { %v5189_v21 = vadd.f32 %v3043_v3, %v2895_v17  ;;  %v3273_v17 = vadd.f32 %v3169_v13, %v5163_v4 }
 0x5eb   :  { %v3171_v48 = vpop.f32.mrf.mxu3 }
 0x5ec   :  { %v3211_v42 = vpop.f32.mrf.mxu2 }
 0x5ee   :  { %v3183_v22 = vpop.f32.mrf.mxu0 }
 0x5ef   :  { %v3197_v45 = vpop.f32.mrf.mxu1  ;;  %v3274_v24 = vadd.f32 %v3183_v22, %v5165_v51  ;;  %v3276_v51 = vadd.f32 %v3211_v42, %v5173_v35  ;;  %v3282_v35 = vadd.f32 %v3171_v48, %v5167_v50 }
 0x5f0   :  { %v3275_v49 = vadd.f32 %v3197_v45, %v2972_v2 }
 0x5f3   :  { %v5191_v41 = vpop.f32.mrf.mxu3 }
 0x5f4   :  { %v5193_v9 = vpop.f32.mrf.mxu2 }
 0x5f6   :  { %v3185_v28 = vpop.f32.mrf.mxu0 }
 0x5f7   :  { %v3199_v16 = vpop.f32.mrf.mxu1  ;;  %v3283_v42 = vadd.f32 %v3185_v28, %v5169_v8  ;;  %v3028_v8 = vadd.f32 %v5183_v19, %v5159_v55 }
 0x5f8   :  { %v3284_v11 = vadd.f32 %v3199_v16, %v2974_v47 }
 0x5fb   :  { %v5195_v27 = vpop.f32.mrf.mxu3 }
 0x5fc   :  { %v5197_v43 = vpop.f32.mrf.mxu2 }
 0x5fe   :  { %v5199_v52 = vpop.f32.mrf.mxu0 }
 0x5ff   :  { %v5201_v10 = vpop.f32.mrf.mxu1 }
 0x603   :  { %v3348_v34 = vpop.f32.mrf.mxu3 }
 0x604   :  { %v5203_v0 = vpop.f32.mrf.mxu2  ;;  %v3465_v30 = vadd.f32 %v3348_v34, %v3272_v44 }
 0x606   :  { %v3495_v32 = vadd.f32 %v5205_v15, %v3465_v30  ;;  %v5208_v60 = vpop.f32.mrf.mxu0 }
 0x607   :  { %v5210_v61 = vpop.f32.mrf.mxu1 }
 0x608   :  { %vm3513_vm1 = vcmp.ge.f32.partialorder %v3495_v32, 0.0  ;;  %v3531_v63 = vmul.f32 0.1, %v3495_v32 }
 0x60a   :  { %v3549_v1 = vsel %vm3513_vm1, %v3495_v32, %v3531_v63 }
 0x60b   :  { %3567 = vst [vmem:[%s5321_s9] sm:$0xff] %v3549_v1  ;;  %v3350_v54 = vpop.f32.mrf.mxu3 }
 0x60c   :  { %v3474_v5 = vadd.f32 %v3350_v54, %v3281_v59  ;;  %v3390_v62 = vpop.f32.mrf.mxu2  ;;  %v3285_v54 = vadd.f32 %v5193_v9, %v5179_v56  ;;  %v3277_v56 = vadd.f32 %v5191_v41, %v5171_v29  ;;  %v3278_v9 = vadd.f32 %v5199_v52, %v5175_v33 }
 0x60d   :  { %v3468_v53 = vadd.f32 %v3390_v62, %v3275_v49  ;;  %v3030_v33 = vadd.f32 %v5187_v58, %v5161_v37 }
 0x60e   :  { %v3504_v7 = vadd.f32 %v5216_v39, %v3474_v5  ;;  %v3362_v26 = vpop.f32.mrf.mxu0  ;;  %v3279_v5 = vadd.f32 %v5201_v10, %v3028_v8 }
 0x60f   :  { %v3376_v57 = vpop.f32.mrf.mxu1  ;;  %v3498_v40 = vadd.f32 %v5205_v15, %v3468_v53  ;;  %v3466_v18 = vadd.f32 %v3362_v26, %v3273_v17 }
 0x610   :  { %v3467_v25 = vadd.f32 %v3376_v57, %v3274_v24  ;;  %vm3522_vm14 = vcmp.ge.f32.partialorder %v3504_v7, 0.0  ;;  %v3540_v38 = vmul.f32 0.1, %v3504_v7 }
 0x611   :  { %vm3516_vm7 = vcmp.ge.f32.partialorder %v3498_v40, 0.0  ;;  %v3534_v14 = vmul.f32 0.1, %v3498_v40  ;;  %v3496_v31 = vadd.f32 %v5205_v15, %v3466_v18 }
 0x612   :  { %v3497_v4 = vadd.f32 %v5205_v15, %v3467_v25  ;;  %v3558_v13 = vsel %vm3522_vm14, %v3504_v7, %v3540_v38 }
 0x613   :  { %3576 = vst [vmem:[%s5321_s9 + $0x48] sm:$0xff] %v3558_v13  ;;  %v3552_v6 = vsel %vm3516_vm7, %v3498_v40, %v3534_v14  ;;  %vm3514_vm8 = vcmp.ge.f32.partialorder %v3496_v31, 0.0  ;;  %v3532_v3 = vmul.f32 0.1, %v3496_v31  ;;  %v3404_v36 = vpop.f32.mrf.mxu3 }
 0x614   :  { %vm3515_vm9 = vcmp.ge.f32.partialorder %v3497_v4, 0.0  ;;  %3570 = vst [vmem:[%s5321_s9 + $0x18] sm:$0xff] %v3552_v6  ;;  %v3533_v12 = vmul.f32 0.1, %v3497_v4  ;;  %v3392_v22 = vpop.f32.mrf.mxu2  ;;  %v3469_v45 = vadd.f32 %v3404_v36, %v3276_v51  ;;  %v3288_v51 = vadd.f32 %v5210_v61, %v3030_v33 }
 0x615   :  { %v3550_v16 = vsel %vm3514_vm8, %v3496_v31, %v3532_v3  ;;  %v3477_v44 = vadd.f32 %v3392_v22, %v3284_v11 }
 0x616   :  { %3568 = vst [vmem:[%s5321_s9 + $0x8] sm:$0xff] %v3550_v16  ;;  %v3551_v34 = vsel %vm3515_vm9, %v3497_v4, %v3533_v12  ;;  %v3499_v30 = vadd.f32 %v5205_v15, %v3469_v45  ;;  %v3364_v32 = vpop.f32.mrf.mxu0  ;;  %v3280_v4 = vadd.f32 %v5197_v43, %v5185_v46  ;;  %v3286_v46 = vadd.f32 %v5195_v27, %v5177_v23 }
 0x617   :  { %v3378_v63 = vpop.f32.mrf.mxu1  ;;  %3569 = vst [vmem:[%s5321_s9 + $0x10] sm:$0xff] %v3551_v34  ;;  %v3507_v2 = vadd.f32 %v5216_v39, %v3477_v44  ;;  %v3475_v50 = vadd.f32 %v3364_v32, %v3282_v35  ;;  %v3287_v43 = vadd.f32 %v5208_v60, %v5181_v20 }
 0x618   :  { %v3476_v48 = vadd.f32 %v3378_v63, %v3283_v42  ;;  %vm3517_vm10 = vcmp.ge.f32.partialorder %v3499_v30, 0.0  ;;  %v3535_v28 = vmul.f32 0.1, %v3499_v30 }
 0x619   :  { %vm3525_vm11 = vcmp.ge.f32.partialorder %v3507_v2, 0.0  ;;  %v3543_v59 = vmul.f32 0.1, %v3507_v2  ;;  %v3505_v1 = vadd.f32 %v5216_v39, %v3475_v50 }
 0x61a   :  { %v3506_v49 = vadd.f32 %v5216_v39, %v3476_v48  ;;  %v3553_v62 = vsel %vm3517_vm10, %v3499_v30, %v3535_v28 }
 0x61b   :  { %v3561_v17 = vsel %vm3525_vm11, %v3507_v2, %v3543_v59  ;;  %3571 = vst [vmem:[%s5321_s9 + $0x20] sm:$0xff] %v3553_v62  ;;  %vm3523_vm12 = vcmp.ge.f32.partialorder %v3505_v1, 0.0  ;;  %v3541_v55 = vmul.f32 0.1, %v3505_v1  ;;  %v3406_v19 = vpop.f32.mrf.mxu3 }
 0x61c   :  { %vm3524_vm13 = vcmp.ge.f32.partialorder %v3506_v49, 0.0  ;;  %3579 = vst [vmem:[%s5321_s9 + $0x60] sm:$0xff] %v3561_v17  ;;  %v3542_v24 = vmul.f32 0.1, %v3506_v49  ;;  %v3478_v53 = vadd.f32 %v3406_v19, %v3285_v54  ;;  %v3446_v7 = vpop.f32.mrf.mxu2 }
 0x61d   :  { %v3559_v10 = vsel %vm3523_vm12, %v3505_v1, %v3541_v55  ;;  %v3472_v26 = vadd.f32 %v3446_v7, %v3279_v5 }
 0x61e   :  { %3577 = vst [vmem:[%s5321_s9 + $0x50] sm:$0xff] %v3559_v10  ;;  %v3560_v57 = vsel %vm3524_vm13, %v3506_v49, %v3542_v24  ;;  %v3508_v40 = vadd.f32 %v5216_v39, %v3478_v53  ;;  %v3418_v18 = vpop.f32.mrf.mxu0 }
 0x61f   :  { %v3432_v25 = vpop.f32.mrf.mxu1  ;;  %3578 = vst [vmem:[%s5321_s9 + $0x58] sm:$0xff] %v3560_v57  ;;  %v3502_v29 = vadd.f32 %v5205_v15, %v3472_v26  ;;  %v3470_v41 = vadd.f32 %v3418_v18, %v3277_v56 }
 0x620   :  { %v3471_v47 = vadd.f32 %v3432_v25, %v3278_v9  ;;  %vm3526_vm15 = vcmp.ge.f32.partialorder %v3508_v40, 0.0  ;;  %v3544_v52 = vmul.f32 0.1, %v3508_v40 }
 0x621   :  { %vm3520_vm0 = vcmp.ge.f32.partialorder %v3502_v29, 0.0  ;;  %v3538_v38 = vmul.f32 0.1, %v3502_v29  ;;  %v3500_v14 = vadd.f32 %v5205_v15, %v3470_v41 }
 0x622   :  { %v3501_v31 = vadd.f32 %v5205_v15, %v3471_v47  ;;  %v3562_v11 = vsel %vm3526_vm15, %v3508_v40, %v3544_v52 }
 0x623   :  { %3580 = vst [vmem:[%s5321_s9 + $0x68] sm:$0xff] %v3562_v11  ;;  %v3556_v13 = vsel %vm3520_vm0, %v3502_v29, %v3538_v38  ;;  %vm3518_vm2 = vcmp.ge.f32.partialorder %v3500_v14, 0.0  ;;  %v3536_v37 = vmul.f32 0.1, %v3500_v14  ;;  %v3460_v58 = vpop.f32.mrf.mxu3 }
 0x624   :  { %vm3519_vm3 = vcmp.ge.f32.partialorder %v3501_v31, 0.0  ;;  %3574 = vst [vmem:[%s5321_s9 + $0x38] sm:$0xff] %v3556_v13  ;;  %v3537_v6 = vmul.f32 0.1, %v3501_v31  ;;  %v3448_v3 = vpop.f32.mrf.mxu2  ;;  %v3473_v36 = vadd.f32 %v3460_v58, %v3280_v4 }
 0x625   :  { %v3554_v61 = vsel %vm3518_vm2, %v3500_v14, %v3536_v37  ;;  %v3481_v12 = vadd.f32 %v3448_v3, %v3288_v51 }
 0x626   :  { %3572 = vst [vmem:[%s5321_s9 + $0x28] sm:$0xff] %v3554_v61  ;;  %v3555_v22 = vsel %vm3519_vm3, %v3501_v31, %v3537_v6  ;;  %v3503_v45 = vadd.f32 %v5205_v15, %v3473_v36  ;;  %v3420_v35 = vpop.f32.mrf.mxu0  ;;  %v3289_v15 = vadd.f32 %v5203_v0, %v5189_v21 }
 0x627   :  { %v3434_v42 = vpop.f32.mrf.mxu1  ;;  %3573 = vst [vmem:[%s5321_s9 + $0x30] sm:$0xff] %v3555_v22  ;;  %v3511_v23 = vadd.f32 %v5216_v39, %v3481_v12  ;;  %v3479_v27 = vadd.f32 %v3420_v35, %v3286_v46 }
 0x628   :  { %v3480_v16 = vadd.f32 %v3434_v42, %v3287_v43  ;;  %vm3521_vm4 = vcmp.ge.f32.partialorder %v3503_v45, 0.0  ;;  %v3539_v20 = vmul.f32 0.1, %v3503_v45 }
 0x629   :  { %vm3529_vm5 = vcmp.ge.f32.partialorder %v3511_v23, 0.0  ;;  %v3547_v60 = vmul.f32 0.1, %v3511_v23  ;;  %v3509_v44 = vadd.f32 %v5216_v39, %v3479_v27 }
 0x62a   :  { %v3510_v34 = vadd.f32 %v5216_v39, %v3480_v16  ;;  %v3557_v30 = vsel %vm3521_vm4, %v3503_v45, %v3539_v20 }
 0x62b   :  { %v3565_v32 = vsel %vm3529_vm5, %v3511_v23, %v3547_v60  ;;  %3575 = vst [vmem:[%s5321_s9 + $0x40] sm:$0xff] %v3557_v30  ;;  %vm3527_vm6 = vcmp.ge.f32.partialorder %v3509_v44, 0.0  ;;  %v3545_v63 = vmul.f32 0.1, %v3509_v44  ;;  %v3462_v2 = vpop.f32.mrf.mxu3 }
 0x62c   :  { %vm3528_vm1 = vcmp.ge.f32.partialorder %v3510_v34, 0.0  ;;  %3583 = vst [vmem:[%s5321_s9 + $0x80] sm:$0xff] %v3565_v32  ;;  %v3546_v50 = vmul.f32 0.1, %v3510_v34  ;;  %v3482_v48 = vadd.f32 %v3462_v2, %v3289_v15 }
 0x62d   :  { %v3563_v8 = vsel %vm3527_vm6, %v3509_v44, %v3545_v63 }
 0x62e   :  { %3581 = vst [vmem:[%s5321_s9 + $0x70] sm:$0xff] %v3563_v8  ;;  %v3564_v21 = vsel %vm3528_vm1, %v3510_v34, %v3546_v50  ;;  %v3512_v0 = vadd.f32 %v5216_v39, %v3482_v48 }
 0x62f   :  { %3582 = vst [vmem:[%s5321_s9 + $0x78] sm:$0xff] %v3564_v21 }
 0x630   :  { %vm3530_vm14 = vcmp.ge.f32.partialorder %v3512_v0, 0.0  ;;  %v3548_v28 = vmul.f32 0.1, %v3512_v0 }
 0x632   :  { %v3566_v59 = vsel %vm3530_vm14, %v3512_v0, %v3548_v28 }
 0x633   :  { %3584 = vst [vmem:[%s5321_s9 + $0x88] sm:$0xff] %v3566_v59 }

</bundles_post_ra>
